<compile_context>
chip_gen: v6e
topology: v6e:2x2x1
jax: 0.10.0
libtpu: 0.0.40
codegen_flags: <defaults>
</compile_context>

<pallas_src>
from types import SimpleNamespace

import jax
import jax.numpy as jnp
from jax.experimental import pallas as pl
from jax.experimental.pallas import tpu as pltpu

_LN_EPS = 1e-5
_NORM_EPS_SQ = 1e-24      # == (1e-12)**2, matches F.normalize(eps=1e-12)
_MAX_BM = 256             # max batch-tile rows
_MAX_TK = 1024            # max K (input-feature) tile for the first matmul
_STEP_FLOPS = 2.0e6       # per-grid-step FLOPs needed to amortise step overhead


def _round_up(x, m):
    return -(-x // m) * m


# ----------------------------------------------------------------------------
# Fused branch kernel:
#   x -> encoder(MLPLN) -> embedding -> projhead(MLPLN) -> L2-normalize -> latent
# ----------------------------------------------------------------------------
def _make_branch_kernel(enc_kinds, proj_kinds):
    """Kernel for one branch.

    Ref order (positional):
      refs[0]                 : x tile        (bm, tk)     float32
      for each layer l (encoder layers, then projhead layers):
        refs[1+2l]            : W_l  (K_l, N_l)            bfloat16
        refs[2+2l]            : p_l  (3,N_l)=[bias;gamma;beta] or (1,N_l)=[bias]
      refs[n_in]              : embedding out (bm, H)
      refs[n_in+1]            : latent    out (bm, H)
      refs[n_in+2]            : acc scratch   (bm, N_0)    float32

    Grid = (batch_tiles, k_tiles).  The first layer's matmul is accumulated
    over the trailing "arbitrary" k axis; everything else runs on the last
    k step under pl.when.
    """
    kinds = tuple(enc_kinds) + tuple(proj_kinds)
    assert len(enc_kinds) >= 1
    n_layers = len(kinds)
    n_in = 1 + 2 * n_layers
    n_enc = len(enc_kinds)

    def finish_layer(kind, y, p):
        # y: f32 pre-activation (no bias). All elementwise math stays f32.
        y = y + p[0:1, :]
        if kind == "ln_silu":
            mean = jnp.mean(y, axis=-1, keepdims=True)
            var = jnp.mean(jnp.square(y - mean), axis=-1, keepdims=True)
            y = (y - mean) * jax.lax.rsqrt(var + _LN_EPS)
            y = y * p[1:2, :] + p[2:3, :]
            y = y * jax.nn.sigmoid(y)          # SiLU
        return y

    def kernel(*refs):
        emb_ref = refs[n_in]
        lat_ref = refs[n_in + 1]
        acc_ref = refs[n_in + 2]

        k = pl.program_id(1)
        nk = pl.num_programs(1)

        @pl.when(k == 0)
        def _():
            acc_ref[...] = jnp.zeros_like(acc_ref)

        # First layer matmul, K-tiled: bf16 into the MXU, f32 accumulation.
        xb = refs[0][...].astype(jnp.bfloat16)
        acc_ref[...] += jnp.dot(xb, refs[1][...],
                                preferred_element_type=jnp.float32)

        @pl.when(k == nk - 1)
        def _():
            x = finish_layer(kinds[0], acc_ref[...], refs[2][...])
            idx = 3
            for li in range(1, n_layers):
                if li == n_enc:                       # encoder output
                    emb_ref[...] = x.astype(emb_ref.dtype)
                y = jnp.dot(x.astype(jnp.bfloat16), refs[idx][...],
                            preferred_element_type=jnp.float32)
                x = finish_layer(kinds[li], y, refs[idx + 1][...])
                idx += 2
            if n_enc == n_layers:                     # empty projhead ('none')
                emb_ref[...] = x.astype(emb_ref.dtype)
            # F.normalize(dim=1, eps=1e-12): x / max(||x||, 1e-12)
            sumsq = jnp.sum(x * x, axis=-1, keepdims=True)
            lat_ref[...] = (x * jax.lax.rsqrt(jnp.maximum(sumsq, _NORM_EPS_SQ))
                            ).astype(lat_ref.dtype)

    return kernel


# ----------------------------------------------------------------------------
# VMEM budgeting + tile-size selection
# ----------------------------------------------------------------------------
def _vmem_budget_bytes():
    """~75% of this chip's physical VMEM (~96 MiB v5e/v6e, ~48 MiB v7x)."""
    try:
        cap = int(pltpu.get_tpu_info().vmem_capacity_bytes)
        return (cap * 3) // 4
    except Exception:
        return 32 * 1024 * 1024                      # conservative fallback


def _estimate_vmem_bytes(bm, tk, flat, out_w):
    """Rough upper bound on the kernel's VMEM footprint."""
    n0 = flat[0].shape[-1]
    total = 2 * bm * tk * 4                          # x tile (f32), double-buffered
    total += 2 * tk * n0 * 2                         # first W tile (bf16), x2 buffers
    for a in flat[1:]:
        total += 2 * a.size * a.dtype.itemsize       # other weights/params (x2)
    total += 2 * 2 * bm * out_w * 4                  # two f32 outputs, x2 buffers
    total += bm * n0 * 4                             # f32 accumulator scratch
    max_w = max(a.shape[-1] for a in flat[0::2])
    total += 4 * bm * max_w * 4                      # live activations / spill headroom
    return total


def _choose_bm(B, flops_per_row, tk, flat, out_w, budget):
    """Batch tile: as big as possible (<= _MAX_BM); never split tiny batches
    just to create grid steps; shrink only to fit the VMEM budget."""
    if B <= 128:
        bm = B                                       # single tile
    else:
        bm = min(B, _MAX_BM)
        if bm == B:
            # Optional megacore split (v7x): only when each half keeps >=128
            # rows and per-step work dwarfs the ~600-cycle step overhead.
            half = _round_up(_round_up(B, 2) // 2, 8)
            if half >= 128 and flops_per_row * half >= _STEP_FLOPS:
                bm = half
    while bm > 8 and _estimate_vmem_bytes(bm, tk, flat, out_w) > budget:
        new_bm = max(8, _round_up(bm // 2, 8))
        if new_bm >= bm:
            break
        bm = new_bm
    return bm


# ----------------------------------------------------------------------------
# One branch = one pallas_call
# ----------------------------------------------------------------------------
def fused_branch(x, enc_kinds, enc_flat, proj_kinds, proj_flat, enc_hiddim):
    """Encoder -> projhead -> L2-normalize in a single pallas_call.
    Returns (latent, embedding)."""
    B, in_dim = x.shape
    flat = list(enc_flat) + list(proj_flat)
    n0 = flat[0].shape[-1]

    # --- K tiling of the first matmul (gene_dim axis) ----------------------
    if in_dim <= _MAX_TK:
        tk, k_pad = in_dim, in_dim
    else:
        tk = _MAX_TK
        k_pad = _round_up(in_dim, tk)
    if k_pad != in_dim:                              # zero-pad K: contributes 0
        x = jnp.pad(x, ((0, 0), (0, k_pad - in_dim)))
        flat[0] = jnp.pad(flat[0], ((0, k_pad - in_dim), (0, 0)))
    nk = k_pad // tk

    # --- batch tiling -------------------------------------------------------
    flops_per_row = sum(2 * w.shape[0] * w.shape[1] for w in flat[0::2])
    budget = _vmem_budget_bytes()
    bm = _choose_bm(B, flops_per_row, tk, flat, enc_hiddim, budget)
    b_pad = _round_up(B, bm)
    if b_pad != B:
        x = jnp.pad(x, ((0, b_pad - B), (0, 0)))
    grid = (b_pad // bm, nk)

    in_specs = [pl.BlockSpec((bm, tk), lambda i, k: (i, k)),
                pl.BlockSpec((tk, n0), lambda i, k: (k, 0))]
    for arr in flat[1:]:                             # resident whole-array operands
        in_specs.append(pl.BlockSpec(arr.shape, lambda i, k: (0, 0)))

    out_specs = [pl.BlockSpec((bm, enc_hiddim), lambda i, k: (i, 0)),
                 pl.BlockSpec((bm, enc_hiddim), lambda i, k: (i, 0))]
    out_shape = [jax.ShapeDtypeStruct((b_pad, enc_hiddim), x.dtype),
                 jax.ShapeDtypeStruct((b_pad, enc_hiddim), x.dtype)]

    emb, lat = pl.pallas_call(
        _make_branch_kernel(enc_kinds, proj_kinds),
        out_shape=out_shape,
        grid=grid,
        in_specs=in_specs,
        out_specs=out_specs,
        scratch_shapes=[pltpu.VMEM((bm, n0), jnp.float32)],
        compiler_params=pltpu.CompilerParams(
            dimension_semantics=("parallel", "arbitrary"),
            vmem_limit_bytes=int(budget),
        ),
    )(x, *flat)

    if b_pad != B:
        emb, lat = emb[:B], lat[:B]
    return lat, emb


# ----------------------------------------------------------------------------
# Parameter construction / packing
# ----------------------------------------------------------------------------
def init_mlpln_params(key, sizes):
    """MLPLN(sizes) params: (n-1) layers; hidden layers carry LN gamma/beta.
    Weights are stored (in, out) so the kernel computes x @ W + b
    (== torch x @ weight.T + bias).  sizes=None -> identity (proj='none')."""
    params = []
    if sizes is None or len(sizes) < 2:
        return params
    n = len(sizes) - 1
    for s in range(n):
        key, kw, kb = jax.random.split(key, 3)
        bound = 1.0 / float(sizes[s]) ** 0.5
        W = jax.random.uniform(kw, (sizes[s], sizes[s + 1]), jnp.float32,
                               -bound, bound)
        b = jax.random.uniform(kb, (sizes[s + 1],), jnp.float32, -bound, bound)
        if s < n - 1:
            params.append(("ln_silu", W, b,
                           jnp.ones((sizes[s + 1],), jnp.float32),
                           jnp.zeros((sizes[s + 1],), jnp.float32)))
        else:
            params.append(("linear", W, b))
    return params


def flatten_mlpln(params):
    """-> (kinds, flat arrays) in kernel format.  W is cast to bf16 (MXU input,
    halves weight DMA); bias/gamma/beta are packed into one f32 (3,N) array
    ((1,N) for the final linear)."""
    kinds, flat = [], []
    for layer in params:
        if layer[0] == "ln_silu":
            _, W, b, g, beta = layer
            kinds.append("ln_silu")
            flat += [W.astype(jnp.bfloat16), jnp.stack([b, g, beta], axis=0)]
        else:
            _, W, b = layer
            kinds.append("linear")
            flat += [W.astype(jnp.bfloat16), b.reshape(1, -1)]
    return tuple(kinds), flat


# ----------------------------------------------------------------------------
# Pure-JAX reference (mirrors the kernel's bf16-MXU / f32-accumulate numerics)
# ----------------------------------------------------------------------------
def _ref_mlpln(params, x):
    for layer in params:
        W, b = layer[1], layer[2]
        xq = x.astype(jnp.bfloat16).astype(jnp.float32)
        Wq = W.astype(jnp.bfloat16).astype(jnp.float32)
        y = jnp.dot(xq, Wq, precision=jax.lax.Precision.HIGHEST) + b
        if layer[0] == "ln_silu":
            g, beta = layer[3], layer[4]
            mean = y.mean(-1, keepdims=True)
            var = ((y - mean) ** 2).mean(-1, keepdims=True)
            y = (y - mean) / jnp.sqrt(var + _LN_EPS) * g + beta
            y = y * jax.nn.sigmoid(y)
        x = y
    return x


def _ref_normalize(x):
    n = jnp.linalg.norm(x, axis=1, keepdims=True)
    return x / jnp.maximum(n, 1e-12)


# ----------------------------------------------------------------------------
# ContrastPair forward (JAX glue around the fused Pallas kernels)
# ----------------------------------------------------------------------------
class ContrastPairPallas:
    def __init__(self, args, drug_repr_dict, key):
        self.args = args
        self.drug_repr_dict = drug_repr_dict
        self.drug_dim = list(drug_repr_dict.values())[0].shape[0]

        # TODO(synk): cellproj ModuleDict dispatch (python string keys) is not
        # implemented in the kernel path.
        assert not args.cellproj, "cellproj path not implemented"

        k1, k2, k3, k4 = jax.random.split(key, 4)
        ges_sizes = ([args.gene_dim]
                     + (args.enc_nlayers - 1) * [args.enc_intldim]
                     + [args.enc_hiddim])
        dc_sizes = ([self.drug_dim]
                    + args.dc_nlayers * [args.dc_intldim]
                    + [args.enc_hiddim])
        if args.proj == "linear":
            proj_sizes = [args.enc_hiddim] * 2
        elif args.proj == "mlp":
            proj_sizes = [args.enc_hiddim] * 3
        elif args.proj == "none":
            proj_sizes = None                       # identity projhead
        else:
            raise ValueError(args.proj)

        self.ges_encoder = init_mlpln_params(k1, ges_sizes)
        self.dc_encoder = init_mlpln_params(k2, dc_sizes)
        self.ges_projhead = init_mlpln_params(k3, proj_sizes)
        self.dc_projhead = init_mlpln_params(k4, proj_sizes)

        # Kernel-format params (bf16 weights, packed LN params), built once.
        self._ges_enc = flatten_mlpln(self.ges_encoder)
        self._ges_proj = flatten_mlpln(self.ges_projhead)
        self._dc_enc = flatten_mlpln(self.dc_encoder)
        self._dc_proj = flatten_mlpln(self.dc_projhead)

        # One jitted forward: both pallas_calls dispatched back-to-back with
        # no host sync in between.
        self._fwd = jax.jit(self._forward_impl)

    def _forward_impl(self, diff_ges, drug_repr):
        h = self.args.enc_hiddim
        ges_latent, ges_embedding = fused_branch(
            diff_ges, self._ges_enc[0], self._ges_enc[1],
            self._ges_proj[0], self._ges_proj[1], h)
        dc_latent, dc_embedding = fused_branch(
            drug_repr, self._dc_enc[0], self._dc_enc[1],
            self._dc_proj[0], self._dc_proj[1], h)
        return ges_latent, dc_latent, ges_embedding, dc_embedding

    def get_drug_emb(self, drug):
        # torch.cat(...).view(len(drug), -1) == stack of per-drug vectors.
        return jnp.stack([self.drug_repr_dict[d] for d in drug],
                         axis=0).astype(jnp.float32)

    def forward(self, diff_ges, cell, drug, index_tensor=None, epoch=None):
        if index_tensor is not None:
            cell = [cell[i] for i in index_tensor]
            drug = [drug[i] for i in index_tensor]
        drug_repr = self.get_drug_emb(drug)
        return self._fwd(diff_ges, drug_repr)

    # Pure-JAX reference forward (no Pallas), used for the self-check.
    def forward_ref(self, diff_ges, cell, drug):
        ges_embedding = _ref_mlpln(self.ges_encoder, diff_ges)
        ges_latent = _ref_normalize(_ref_mlpln(self.ges_projhead,
                                               ges_embedding))
        drug_repr = self.get_drug_emb(drug)
        dc_embedding = _ref_mlpln(self.dc_encoder, drug_repr)
        dc_latent = _ref_normalize(_ref_mlpln(self.dc_projhead, dc_embedding))
        return ges_latent, dc_latent, ges_embedding, dc_embedding


# ----------------------------------------------------------------------------
if __name__ == "__main__":
    key = jax.random.PRNGKey(0)

    # Small but lane-dense sizes (feature dims multiples of 128): unmasked
    # stores and full MXU N-dimension utilization.
    args = SimpleNamespace(
        gene_dim=256,
        enc_nlayers=2,
        enc_intldim=128,
        enc_hiddim=128,
        dc_nlayers=1,
        dc_intldim=128,
        proj="linear",
        cellproj=False,
        cellproj_epoch=0,
    )

    batch = 256          # splits into 2 x 128-row "parallel" tiles (megacore)
    drug_dim = 128
    drug_names = [f"drug_{i}" for i in range(4)]

    k_in, k_drug, k_model = jax.random.split(key, 3)
    drug_repr_dict = {
        name: jax.random.normal(jax.random.fold_in(k_drug, i),
                                (drug_dim,), jnp.float32)
        for i, name in enumerate(drug_names)
    }

    model = ContrastPairPallas(args, drug_repr_dict, k_model)

    diff_ges = jax.random.normal(k_in, (batch, args.gene_dim), jnp.float32)
    cell_pool = ["A375", "A549", "MCF7", "PC3", "HT29", "VCAP", "HA1E",
                 "HEPG2"]
    cell = [cell_pool[i % len(cell_pool)] for i in range(batch)]
    drug = [drug_names[i % len(drug_names)] for i in range(batch)]

    outs = model.forward(diff_ges, cell, drug)
    jax.block_until_ready(outs)
    ges_latent, dc_latent, ges_embedding, dc_embedding = outs

    # shape checks
    assert ges_latent.shape == (batch, args.enc_hiddim)
    assert dc_latent.shape == (batch, args.enc_hiddim)
    assert ges_embedding.shape == (batch, args.enc_hiddim)
    assert dc_embedding.shape == (batch, args.enc_hiddim)
    # latent rows should be unit-norm
    assert jnp.allclose(jnp.linalg.norm(ges_latent, axis=1), 1.0, atol=1e-3)
    assert jnp.allclose(jnp.linalg.norm(dc_latent, axis=1), 1.0, atol=1e-3)

    # numerical check against a pure-JAX reference that mirrors the kernel's
    # bf16-MXU-inputs / f32-accumulate numerics
    refs = model.forward_ref(diff_ges, cell, drug)
    for got, want in zip(outs, refs):
        assert jnp.allclose(got, want, rtol=5e-3, atol=5e-3), (
            float(jnp.max(jnp.abs(got - want))))

    print("KERNEL_OK")
</pallas_src>

<mosaic_0001>
module attributes {stable_mosaic.version = 11 : i64} {
  func.func @kernel(%arg0: i32, %arg1: i32, %arg2: memref<128x128xf32, #tpu.memory_space<vmem>>, %arg3: memref<128x128xbf16, #tpu.memory_space<vmem>>, %arg4: memref<3x128xf32, #tpu.memory_space<vmem>>, %arg5: memref<128x128xbf16, #tpu.memory_space<vmem>>, %arg6: memref<1x128xf32, #tpu.memory_space<vmem>>, %arg7: memref<128x128xbf16, #tpu.memory_space<vmem>>, %arg8: memref<1x128xf32, #tpu.memory_space<vmem>>, %arg9: memref<128x128xf32, #tpu.memory_space<vmem>>, %arg10: memref<128x128xf32, #tpu.memory_space<vmem>>, %arg11: memref<128x128xf32, #tpu.memory_space<vmem>>) attributes {dimension_semantics = [#tpu.dimension_semantics<parallel>, #tpu.dimension_semantics<arbitrary>], iteration_bounds = array<i64: 2, 1>, scalar_prefetch = 0 : i64, scratch_operands = 1 : i64, tpu.core_type = #tpu.core_type<tc>, window_params = [{transform_indices = @transform_0, window_bounds = array<i64: 128, 128>}, {transform_indices = @transform_1, window_bounds = array<i64: 128, 128>}, {pipeline_mode = #tpu.pipeline_mode<synchronous>, transform_indices = @transform_2, window_bounds = array<i64: 3, 128>}, {pipeline_mode = #tpu.pipeline_mode<synchronous>, transform_indices = @transform_3, window_bounds = array<i64: 128, 128>}, {pipeline_mode = #tpu.pipeline_mode<synchronous>, transform_indices = @transform_4, window_bounds = array<i64: 1, 128>}, {pipeline_mode = #tpu.pipeline_mode<synchronous>, transform_indices = @transform_5, window_bounds = array<i64: 128, 128>}, {pipeline_mode = #tpu.pipeline_mode<synchronous>, transform_indices = @transform_6, window_bounds = array<i64: 1, 128>}, {transform_indices = @transform_7, window_bounds = array<i64: 128, 128>}, {transform_indices = @transform_8, window_bounds = array<i64: 128, 128>}]} {
    %c0_i32 = arith.constant 0 : i32
    %0 = arith.cmpi eq, %arg1, %c0_i32 : i32
    %1 = arith.extui %0 : i1 to i32
    %c0_i32_0 = arith.constant 0 : i32
    %2 = arith.cmpi ne, %1, %c0_i32_0 : i32
    scf.if %2 {
      %cst_10 = arith.constant 0.000000e+00 : f32
      %13 = vector.broadcast %cst_10 : f32 to vector<128x128xf32>
      %c0_11 = arith.constant 0 : index
      %c0_12 = arith.constant 0 : index
      %14 = vector.load %arg11[%c0_11, %c0_12] : memref<128x128xf32, #tpu.memory_space<vmem>>, vector<128x128xf32>
      tpu.vector_store %arg11[%c0_11, %c0_12], %13 {strides = array<i32>} : memref<128x128xf32, #tpu.memory_space<vmem>>, vector<128x128xf32>,
    } else {
    }
    %c0 = arith.constant 0 : index
    %c0_1 = arith.constant 0 : index
    %3 = vector.load %arg2[%c0, %c0_1] : memref<128x128xf32, #tpu.memory_space<vmem>>, vector<128x128xf32>
    %4 = arith.truncf %3 : vector<128x128xf32> to vector<128x128xbf16>
    %c0_2 = arith.constant 0 : index
    %c0_3 = arith.constant 0 : index
    %5 = vector.load %arg11[%c0_2, %c0_3] : memref<128x128xf32, #tpu.memory_space<vmem>>, vector<128x128xf32>
    %c0_4 = arith.constant 0 : index
    %c0_5 = arith.constant 0 : index
    %6 = vector.load %arg3[%c0_4, %c0_5] : memref<128x128xbf16, #tpu.memory_space<vmem>>, vector<128x128xbf16>
    %cst = arith.constant dense<0.000000e+00> : vector<128x128xf32>
    %7 = tpu.matmul %4, %6, %cst {dimension_numbers = #tpu.dot_dimension_numbers<[1], [0], [0], [1], [0, 0, 1, 1], [], []>} : vector<128x128xbf16>, vector<128x128xbf16>, vector<128x128xf32> -> vector<128x128xf32>
    %8 = arith.addf %5, %7 : vector<128x128xf32>
    %c0_6 = arith.constant 0 : index
    %c0_7 = arith.constant 0 : index
    %9 = vector.load %arg11[%c0_6, %c0_7] : memref<128x128xf32, #tpu.memory_space<vmem>>, vector<128x128xf32>
    tpu.vector_store %arg11[%c0_6, %c0_7], %8 {strides = array<i32>} : memref<128x128xf32, #tpu.memory_space<vmem>>, vector<128x128xf32>,
    %c0_i32_8 = arith.constant 0 : i32
    %10 = arith.cmpi eq, %arg1, %c0_i32_8 : i32
    %11 = arith.extui %10 : i1 to i32
    %c0_i32_9 = arith.constant 0 : i32
    %12 = arith.cmpi ne, %11, %c0_i32_9 : i32
    scf.if %12 {
      %c0_10 = arith.constant 0 : index
      %c0_11 = arith.constant 0 : index
      %13 = vector.load %arg11[%c0_10, %c0_11] : memref<128x128xf32, #tpu.memory_space<vmem>>, vector<128x128xf32>
      %c0_12 = arith.constant 0 : index
      %c0_13 = arith.constant 0 : index
      %14 = vector.load %arg4[%c0_12, %c0_13] : memref<3x128xf32, #tpu.memory_space<vmem>>, vector<3x128xf32>
      %15 = vector.extract_strided_slice %14 {offsets = [0, 0], sizes = [1, 128], strides = [1, 1]} : vector<3x128xf32> to vector<1x128xf32>
      %16 = vector.broadcast %15 : vector<1x128xf32> to vector<128x128xf32>
      %17 = arith.addf %13, %16 : vector<128x128xf32>
      %cst_14 = arith.constant dense<0.000000e+00> : vector<128xf32>
      %18 = vector.multi_reduction <add>, %17, %cst_14 [1] : vector<128x128xf32> to vector<128xf32>
      %19 = vector.shape_cast %18 : vector<128xf32> to vector<128x1xf32>
      %cst_15 = arith.constant 1.280000e+02 : f32
      %20 = vector.broadcast %cst_15 : f32 to vector<128x1xf32>
      %21 = arith.divf %19, %20 : vector<128x1xf32>
      %22 = vector.broadcast %21 : vector<128x1xf32> to vector<128x128xf32>
      %23 = arith.subf %17, %22 : vector<128x128xf32>
      %24 = arith.mulf %23, %23 : vector<128x128xf32>
      %cst_16 = arith.constant dense<0.000000e+00> : vector<128xf32>
      %25 = vector.multi_reduction <add>, %24, %cst_16 [1] : vector<128x128xf32> to vector<128xf32>
      %26 = vector.shape_cast %25 : vector<128xf32> to vector<128x1xf32>
      %cst_17 = arith.constant 1.280000e+02 : f32
      %27 = vector.broadcast %cst_17 : f32 to vector<128x1xf32>
      %28 = arith.divf %26, %27 : vector<128x1xf32>
      %29 = vector.broadcast %21 : vector<128x1xf32> to vector<128x128xf32>
      %30 = arith.subf %17, %29 : vector<128x128xf32>
      %cst_18 = arith.constant 9.99999974E-6 : f32
      %31 = vector.broadcast %cst_18 : f32 to vector<128x1xf32>
      %32 = arith.addf %28, %31 : vector<128x1xf32>
      %33 = math.rsqrt %32 : vector<128x1xf32>
      %34 = vector.broadcast %33 : vector<128x1xf32> to vector<128x128xf32>
      %35 = arith.mulf %30, %34 : vector<128x128xf32>
      %36 = vector.extract_strided_slice %14 {offsets = [1, 0], sizes = [1, 128], strides = [1, 1]} : vector<3x128xf32> to vector<1x128xf32>
      %37 = vector.broadcast %36 : vector<1x128xf32> to vector<128x128xf32>
      %38 = arith.mulf %35, %37 : vector<128x128xf32>
      %39 = vector.extract_strided_slice %14 {offsets = [2, 0], sizes = [1, 128], strides = [1, 1]} : vector<3x128xf32> to vector<1x128xf32>
      %40 = vector.broadcast %39 : vector<1x128xf32> to vector<128x128xf32>
      %41 = arith.addf %38, %40 : vector<128x128xf32>
      %42 = arith.negf %41 : vector<128x128xf32>
      %43 = math.exp %42 : vector<128x128xf32>
      %cst_19 = arith.constant 1.000000e+00 : f32
      %44 = vector.broadcast %cst_19 : f32 to vector<128x128xf32>
      %45 = arith.addf %44, %43 : vector<128x128xf32>
      %46 = arith.divf %44, %45 : vector<128x128xf32>
      %47 = arith.mulf %41, %46 : vector<128x128xf32>
      %48 = arith.truncf %47 : vector<128x128xf32> to vector<128x128xbf16>
      %c0_20 = arith.constant 0 : index
      %c0_21 = arith.constant 0 : index
      %49 = vector.load %arg5[%c0_20, %c0_21] : memref<128x128xbf16, #tpu.memory_space<vmem>>, vector<128x128xbf16>
      %cst_22 = arith.constant dense<0.000000e+00> : vector<128x128xf32>
      %50 = tpu.matmul %48, %49, %cst_22 {dimension_numbers = #tpu.dot_dimension_numbers<[1], [0], [0], [1], [0, 0, 1, 1], [], []>} : vector<128x128xbf16>, vector<128x128xbf16>, vector<128x128xf32> -> vector<128x128xf32>
      %c0_23 = arith.constant 0 : index
      %c0_24 = arith.constant 0 : index
      %51 = vector.load %arg6[%c0_23, %c0_24] : memref<1x128xf32, #tpu.memory_space<vmem>>, vector<1x128xf32>
      %52 = vector.broadcast %51 : vector<1x128xf32> to vector<128x128xf32>
      %53 = arith.addf %50, %52 : vector<128x128xf32>
      %c0_25 = arith.constant 0 : index
      %c0_26 = arith.constant 0 : index
      %54 = vector.load %arg9[%c0_25, %c0_26] : memref<128x128xf32, #tpu.memory_space<vmem>>, vector<128x128xf32>
      tpu.vector_store %arg9[%c0_25, %c0_26], %53 {strides = array<i32>} : memref<128x128xf32, #tpu.memory_space<vmem>>, vector<128x128xf32>,
      %55 = arith.truncf %53 : vector<128x128xf32> to vector<128x128xbf16>
      %c0_27 = arith.constant 0 : index
      %c0_28 = arith.constant 0 : index
      %56 = vector.load %arg7[%c0_27, %c0_28] : memref<128x128xbf16, #tpu.memory_space<vmem>>, vector<128x128xbf16>
      %cst_29 = arith.constant dense<0.000000e+00> : vector<128x128xf32>
      %57 = tpu.matmul %55, %56, %cst_29 {dimension_numbers = #tpu.dot_dimension_numbers<[1], [0], [0], [1], [0, 0, 1, 1], [], []>} : vector<128x128xbf16>, vector<128x128xbf16>, vector<128x128xf32> -> vector<128x128xf32>
      %c0_30 = arith.constant 0 : index
      %c0_31 = arith.constant 0 : index
      %58 = vector.load %arg8[%c0_30, %c0_31] : memref<1x128xf32, #tpu.memory_space<vmem>>, vector<1x128xf32>
      %59 = vector.broadcast %58 : vector<1x128xf32> to vector<128x128xf32>
      %60 = arith.addf %57, %59 : vector<128x128xf32>
      %61 = arith.mulf %60, %60 : vector<128x128xf32>
      %cst_32 = arith.constant dense<0.000000e+00> : vector<128xf32>
      %62 = vector.multi_reduction <add>, %61, %cst_32 [1] : vector<128x128xf32> to vector<128xf32>
      %63 = vector.shape_cast %62 : vector<128xf32> to vector<128x1xf32>
      %cst_33 = arith.constant 1.000000e-24 : f32
      %64 = vector.broadcast %cst_33 : f32 to vector<128x1xf32>
      %65 = arith.maximumf %63, %64 : vector<128x1xf32>
      %66 = math.rsqrt %65 : vector<128x1xf32>
      %67 = vector.broadcast %66 : vector<128x1xf32> to vector<128x128xf32>
      %68 = arith.mulf %60, %67 : vector<128x128xf32>
      %c0_34 = arith.constant 0 : index
      %c0_35 = arith.constant 0 : index
      %69 = vector.load %arg10[%c0_34, %c0_35] : memref<128x128xf32, #tpu.memory_space<vmem>>, vector<128x128xf32>
      tpu.vector_store %arg10[%c0_34, %c0_35], %68 {strides = array<i32>} : memref<128x128xf32, #tpu.memory_space<vmem>>, vector<128x128xf32>,
    } else {
    }
    return
  }
  func.func @transform_0(%arg0: i32, %arg1: i32) -> (i32, i32) {
    %c0_i32 = arith.constant 0 : i32
    return %arg0, %arg1 : i32, i32
  }
  func.func @transform_1(%arg0: i32, %arg1: i32) -> (i32, i32) {
    %c0_i32 = arith.constant 0 : i32
    %c0_i32_0 = arith.constant 0 : i32
    return %arg1, %c0_i32 : i32, i32
  }
  func.func @transform_2(%arg0: i32, %arg1: i32) -> (i32, i32) {
    %c0_i32 = arith.constant 0 : i32
    %c0_i32_0 = arith.constant 0 : i32
    %c0_i32_1 = arith.constant 0 : i32
    return %c0_i32, %c0_i32_0 : i32, i32
  }
  func.func @transform_3(%arg0: i32, %arg1: i32) -> (i32, i32) {
    %c0_i32 = arith.constant 0 : i32
    %c0_i32_0 = arith.constant 0 : i32
    %c0_i32_1 = arith.constant 0 : i32
    return %c0_i32, %c0_i32_0 : i32, i32
  }
  func.func @transform_4(%arg0: i32, %arg1: i32) -> (i32, i32) {
    %c0_i32 = arith.constant 0 : i32
    %c0_i32_0 = arith.constant 0 : i32
    %c0_i32_1 = arith.constant 0 : i32
    return %c0_i32, %c0_i32_0 : i32, i32
  }
  func.func @transform_5(%arg0: i32, %arg1: i32) -> (i32, i32) {
    %c0_i32 = arith.constant 0 : i32
    %c0_i32_0 = arith.constant 0 : i32
    %c0_i32_1 = arith.constant 0 : i32
    return %c0_i32, %c0_i32_0 : i32, i32
  }
  func.func @transform_6(%arg0: i32, %arg1: i32) -> (i32, i32) {
    %c0_i32 = arith.constant 0 : i32
    %c0_i32_0 = arith.constant 0 : i32
    %c0_i32_1 = arith.constant 0 : i32
    return %c0_i32, %c0_i32_0 : i32, i32
  }
  func.func @transform_7(%arg0: i32, %arg1: i32) -> (i32, i32) {
    %c0_i32 = arith.constant 0 : i32
    %c0_i32_0 = arith.constant 0 : i32
    return %arg0, %c0_i32 : i32, i32
  }
  func.func @transform_8(%arg0: i32, %arg1: i32) -> (i32, i32) {
    %c0_i32 = arith.constant 0 : i32
    %c0_i32_0 = arith.constant 0 : i32
    return %arg0, %c0_i32 : i32, i32
  }
}

module attributes {stable_mosaic.version = 11 : i64} {
  func.func @kernel(%arg0: i32, %arg1: i32, %arg2: memref<128x256xf32, #tpu.memory_space<vmem>>, %arg3: memref<256x128xbf16, #tpu.memory_space<vmem>>, %arg4: memref<3x128xf32, #tpu.memory_space<vmem>>, %arg5: memref<128x128xbf16, #tpu.memory_space<vmem>>, %arg6: memref<1x128xf32, #tpu.memory_space<vmem>>, %arg7: memref<128x128xbf16, #tpu.memory_space<vmem>>, %arg8: memref<1x128xf32, #tpu.memory_space<vmem>>, %arg9: memref<128x128xf32, #tpu.memory_space<vmem>>, %arg10: memref<128x128xf32, #tpu.memory_space<vmem>>, %arg11: memref<128x128xf32, #tpu.memory_space<vmem>>) attributes {dimension_semantics = [#tpu.dimension_semantics<parallel>, #tpu.dimension_semantics<arbitrary>], iteration_bounds = array<i64: 2, 1>, scalar_prefetch = 0 : i64, scratch_operands = 1 : i64, tpu.core_type = #tpu.core_type<tc>, window_params = [{transform_indices = @transform_0, window_bounds = array<i64: 128, 256>}, {transform_indices = @transform_1, window_bounds = array<i64: 256, 128>}, {pipeline_mode = #tpu.pipeline_mode<synchronous>, transform_indices = @transform_2, window_bounds = array<i64: 3, 128>}, {pipeline_mode = #tpu.pipeline_mode<synchronous>, transform_indices = @transform_3, window_bounds = array<i64: 128, 128>}, {pipeline_mode = #tpu.pipeline_mode<synchronous>, transform_indices = @transform_4, window_bounds = array<i64: 1, 128>}, {pipeline_mode = #tpu.pipeline_mode<synchronous>, transform_indices = @transform_5, window_bounds = array<i64: 128, 128>}, {pipeline_mode = #tpu.pipeline_mode<synchronous>, transform_indices = @transform_6, window_bounds = array<i64: 1, 128>}, {transform_indices = @transform_7, window_bounds = array<i64: 128, 128>}, {transform_indices = @transform_8, window_bounds = array<i64: 128, 128>}]} {
    %c0_i32 = arith.constant 0 : i32
    %0 = arith.cmpi eq, %arg1, %c0_i32 : i32
    %1 = arith.extui %0 : i1 to i32
    %c0_i32_0 = arith.constant 0 : i32
    %2 = arith.cmpi ne, %1, %c0_i32_0 : i32
    scf.if %2 {
      %cst_10 = arith.constant 0.000000e+00 : f32
      %13 = vector.broadcast %cst_10 : f32 to vector<128x128xf32>
      %c0_11 = arith.constant 0 : index
      %c0_12 = arith.constant 0 : index
      %14 = vector.load %arg11[%c0_11, %c0_12] : memref<128x128xf32, #tpu.memory_space<vmem>>, vector<128x128xf32>
      tpu.vector_store %arg11[%c0_11, %c0_12], %13 {strides = array<i32>} : memref<128x128xf32, #tpu.memory_space<vmem>>, vector<128x128xf32>,
    } else {
    }
    %c0 = arith.constant 0 : index
    %c0_1 = arith.constant 0 : index
    %3 = vector.load %arg2[%c0, %c0_1] : memref<128x256xf32, #tpu.memory_space<vmem>>, vector<128x256xf32>
    %4 = arith.truncf %3 : vector<128x256xf32> to vector<128x256xbf16>
    %c0_2 = arith.constant 0 : index
    %c0_3 = arith.constant 0 : index
    %5 = vector.load %arg11[%c0_2, %c0_3] : memref<128x128xf32, #tpu.memory_space<vmem>>, vector<128x128xf32>
    %c0_4 = arith.constant 0 : index
    %c0_5 = arith.constant 0 : index
    %6 = vector.load %arg3[%c0_4, %c0_5] : memref<256x128xbf16, #tpu.memory_space<vmem>>, vector<256x128xbf16>
    %cst = arith.constant dense<0.000000e+00> : vector<128x128xf32>
    %7 = tpu.matmul %4, %6, %cst {dimension_numbers = #tpu.dot_dimension_numbers<[1], [0], [0], [1], [0, 0, 1, 1], [], []>} : vector<128x256xbf16>, vector<256x128xbf16>, vector<128x128xf32> -> vector<128x128xf32>
    %8 = arith.addf %5, %7 : vector<128x128xf32>
    %c0_6 = arith.constant 0 : index
    %c0_7 = arith.constant 0 : index
    %9 = vector.load %arg11[%c0_6, %c0_7] : memref<128x128xf32, #tpu.memory_space<vmem>>, vector<128x128xf32>
    tpu.vector_store %arg11[%c0_6, %c0_7], %8 {strides = array<i32>} : memref<128x128xf32, #tpu.memory_space<vmem>>, vector<128x128xf32>,
    %c0_i32_8 = arith.constant 0 : i32
    %10 = arith.cmpi eq, %arg1, %c0_i32_8 : i32
    %11 = arith.extui %10 : i1 to i32
    %c0_i32_9 = arith.constant 0 : i32
    %12 = arith.cmpi ne, %11, %c0_i32_9 : i32
    scf.if %12 {
      %c0_10 = arith.constant 0 : index
      %c0_11 = arith.constant 0 : index
      %13 = vector.load %arg11[%c0_10, %c0_11] : memref<128x128xf32, #tpu.memory_space<vmem>>, vector<128x128xf32>
      %c0_12 = arith.constant 0 : index
      %c0_13 = arith.constant 0 : index
      %14 = vector.load %arg4[%c0_12, %c0_13] : memref<3x128xf32, #tpu.memory_space<vmem>>, vector<3x128xf32>
      %15 = vector.extract_strided_slice %14 {offsets = [0, 0], sizes = [1, 128], strides = [1, 1]} : vector<3x128xf32> to vector<1x128xf32>
      %16 = vector.broadcast %15 : vector<1x128xf32> to vector<128x128xf32>
      %17 = arith.addf %13, %16 : vector<128x128xf32>
      %cst_14 = arith.constant dense<0.000000e+00> : vector<128xf32>
      %18 = vector.multi_reduction <add>, %17, %cst_14 [1] : vector<128x128xf32> to vector<128xf32>
      %19 = vector.shape_cast %18 : vector<128xf32> to vector<128x1xf32>
      %cst_15 = arith.constant 1.280000e+02 : f32
      %20 = vector.broadcast %cst_15 : f32 to vector<128x1xf32>
      %21 = arith.divf %19, %20 : vector<128x1xf32>
      %22 = vector.broadcast %21 : vector<128x1xf32> to vector<128x128xf32>
      %23 = arith.subf %17, %22 : vector<128x128xf32>
      %24 = arith.mulf %23, %23 : vector<128x128xf32>
      %cst_16 = arith.constant dense<0.000000e+00> : vector<128xf32>
      %25 = vector.multi_reduction <add>, %24, %cst_16 [1] : vector<128x128xf32> to vector<128xf32>
      %26 = vector.shape_cast %25 : vector<128xf32> to vector<128x1xf32>
      %cst_17 = arith.constant 1.280000e+02 : f32
      %27 = vector.broadcast %cst_17 : f32 to vector<128x1xf32>
      %28 = arith.divf %26, %27 : vector<128x1xf32>
      %29 = vector.broadcast %21 : vector<128x1xf32> to vector<128x128xf32>
      %30 = arith.subf %17, %29 : vector<128x128xf32>
      %cst_18 = arith.constant 9.99999974E-6 : f32
      %31 = vector.broadcast %cst_18 : f32 to vector<128x1xf32>
      %32 = arith.addf %28, %31 : vector<128x1xf32>
      %33 = math.rsqrt %32 : vector<128x1xf32>
      %34 = vector.broadcast %33 : vector<128x1xf32> to vector<128x128xf32>
      %35 = arith.mulf %30, %34 : vector<128x128xf32>
      %36 = vector.extract_strided_slice %14 {offsets = [1, 0], sizes = [1, 128], strides = [1, 1]} : vector<3x128xf32> to vector<1x128xf32>
      %37 = vector.broadcast %36 : vector<1x128xf32> to vector<128x128xf32>
      %38 = arith.mulf %35, %37 : vector<128x128xf32>
      %39 = vector.extract_strided_slice %14 {offsets = [2, 0], sizes = [1, 128], strides = [1, 1]} : vector<3x128xf32> to vector<1x128xf32>
      %40 = vector.broadcast %39 : vector<1x128xf32> to vector<128x128xf32>
      %41 = arith.addf %38, %40 : vector<128x128xf32>
      %42 = arith.negf %41 : vector<128x128xf32>
      %43 = math.exp %42 : vector<128x128xf32>
      %cst_19 = arith.constant 1.000000e+00 : f32
      %44 = vector.broadcast %cst_19 : f32 to vector<128x128xf32>
      %45 = arith.addf %44, %43 : vector<128x128xf32>
      %46 = arith.divf %44, %45 : vector<128x128xf32>
      %47 = arith.mulf %41, %46 : vector<128x128xf32>
      %48 = arith.truncf %47 : vector<128x128xf32> to vector<128x128xbf16>
      %c0_20 = arith.constant 0 : index
      %c0_21 = arith.constant 0 : index
      %49 = vector.load %arg5[%c0_20, %c0_21] : memref<128x128xbf16, #tpu.memory_space<vmem>>, vector<128x128xbf16>
      %cst_22 = arith.constant dense<0.000000e+00> : vector<128x128xf32>
      %50 = tpu.matmul %48, %49, %cst_22 {dimension_numbers = #tpu.dot_dimension_numbers<[1], [0], [0], [1], [0, 0, 1, 1], [], []>} : vector<128x128xbf16>, vector<128x128xbf16>, vector<128x128xf32> -> vector<128x128xf32>
      %c0_23 = arith.constant 0 : index
      %c0_24 = arith.constant 0 : index
      %51 = vector.load %arg6[%c0_23, %c0_24] : memref<1x128xf32, #tpu.memory_space<vmem>>, vector<1x128xf32>
      %52 = vector.broadcast %51 : vector<1x128xf32> to vector<128x128xf32>
      %53 = arith.addf %50, %52 : vector<128x128xf32>
      %c0_25 = arith.constant 0 : index
      %c0_26 = arith.constant 0 : index
      %54 = vector.load %arg9[%c0_25, %c0_26] : memref<128x128xf32, #tpu.memory_space<vmem>>, vector<128x128xf32>
      tpu.vector_store %arg9[%c0_25, %c0_26], %53 {strides = array<i32>} : memref<128x128xf32, #tpu.memory_space<vmem>>, vector<128x128xf32>,
      %55 = arith.truncf %53 : vector<128x128xf32> to vector<128x128xbf16>
      %c0_27 = arith.constant 0 : index
      %c0_28 = arith.constant 0 : index
      %56 = vector.load %arg7[%c0_27, %c0_28] : memref<128x128xbf16, #tpu.memory_space<vmem>>, vector<128x128xbf16>
      %cst_29 = arith.constant dense<0.000000e+00> : vector<128x128xf32>
      %57 = tpu.matmul %55, %56, %cst_29 {dimension_numbers = #tpu.dot_dimension_numbers<[1], [0], [0], [1], [0, 0, 1, 1], [], []>} : vector<128x128xbf16>, vector<128x128xbf16>, vector<128x128xf32> -> vector<128x128xf32>
      %c0_30 = arith.constant 0 : index
      %c0_31 = arith.constant 0 : index
      %58 = vector.load %arg8[%c0_30, %c0_31] : memref<1x128xf32, #tpu.memory_space<vmem>>, vector<1x128xf32>
      %59 = vector.broadcast %58 : vector<1x128xf32> to vector<128x128xf32>
      %60 = arith.addf %57, %59 : vector<128x128xf32>
      %61 = arith.mulf %60, %60 : vector<128x128xf32>
      %cst_32 = arith.constant dense<0.000000e+00> : vector<128xf32>
      %62 = vector.multi_reduction <add>, %61, %cst_32 [1] : vector<128x128xf32> to vector<128xf32>
      %63 = vector.shape_cast %62 : vector<128xf32> to vector<128x1xf32>
      %cst_33 = arith.constant 1.000000e-24 : f32
      %64 = vector.broadcast %cst_33 : f32 to vector<128x1xf32>
      %65 = arith.maximumf %63, %64 : vector<128x1xf32>
      %66 = math.rsqrt %65 : vector<128x1xf32>
      %67 = vector.broadcast %66 : vector<128x1xf32> to vector<128x128xf32>
      %68 = arith.mulf %60, %67 : vector<128x128xf32>
      %c0_34 = arith.constant 0 : index
      %c0_35 = arith.constant 0 : index
      %69 = vector.load %arg10[%c0_34, %c0_35] : memref<128x128xf32, #tpu.memory_space<vmem>>, vector<128x128xf32>
      tpu.vector_store %arg10[%c0_34, %c0_35], %68 {strides = array<i32>} : memref<128x128xf32, #tpu.memory_space<vmem>>, vector<128x128xf32>,
    } else {
    }
    return
  }
  func.func @transform_0(%arg0: i32, %arg1: i32) -> (i32, i32) {
    %c0_i32 = arith.constant 0 : i32
    return %arg0, %arg1 : i32, i32
  }
  func.func @transform_1(%arg0: i32, %arg1: i32) -> (i32, i32) {
    %c0_i32 = arith.constant 0 : i32
    %c0_i32_0 = arith.constant 0 : i32
    return %arg1, %c0_i32 : i32, i32
  }
  func.func @transform_2(%arg0: i32, %arg1: i32) -> (i32, i32) {
    %c0_i32 = arith.constant 0 : i32
    %c0_i32_0 = arith.constant 0 : i32
    %c0_i32_1 = arith.constant 0 : i32
    return %c0_i32, %c0_i32_0 : i32, i32
  }
  func.func @transform_3(%arg0: i32, %arg1: i32) -> (i32, i32) {
    %c0_i32 = arith.constant 0 : i32
    %c0_i32_0 = arith.constant 0 : i32
    %c0_i32_1 = arith.constant 0 : i32
    return %c0_i32, %c0_i32_0 : i32, i32
  }
  func.func @transform_4(%arg0: i32, %arg1: i32) -> (i32, i32) {
    %c0_i32 = arith.constant 0 : i32
    %c0_i32_0 = arith.constant 0 : i32
    %c0_i32_1 = arith.constant 0 : i32
    return %c0_i32, %c0_i32_0 : i32, i32
  }
  func.func @transform_5(%arg0: i32, %arg1: i32) -> (i32, i32) {
    %c0_i32 = arith.constant 0 : i32
    %c0_i32_0 = arith.constant 0 : i32
    %c0_i32_1 = arith.constant 0 : i32
    return %c0_i32, %c0_i32_0 : i32, i32
  }
  func.func @transform_6(%arg0: i32, %arg1: i32) -> (i32, i32) {
    %c0_i32 = arith.constant 0 : i32
    %c0_i32_0 = arith.constant 0 : i32
    %c0_i32_1 = arith.constant 0 : i32
    return %c0_i32, %c0_i32_0 : i32, i32
  }
  func.func @transform_7(%arg0: i32, %arg1: i32) -> (i32, i32) {
    %c0_i32 = arith.constant 0 : i32
    %c0_i32_0 = arith.constant 0 : i32
    return %arg0, %c0_i32 : i32, i32
  }
  func.func @transform_8(%arg0: i32, %arg1: i32) -> (i32, i32) {
    %c0_i32 = arith.constant 0 : i32
    %c0_i32_0 = arith.constant 0 : i32
    return %arg0, %c0_i32 : i32, i32
  }
}

</mosaic_0001>

<bundles_post_ra>
// kernel: _forward_impl.2
= control target key start
LH: loop header
LB: loop body
LE: loop exit
PB: predicated region body
PF: predicated region fallthrough
CT: control target
= control target key end

     0   :  { %s3241_s0 = inlined_call_operand.hbm [shape: f32[256,256], index: 0, kind: input, shape index: {}]   ;;  %s3242_s1 = inlined_call_operand.hbm [shape: bf16[256,128], index: 1, kind: input, shape index: {}]   ;;  %s3243_s2 = inlined_call_operand.vmem [shape: f32[3,128], index: 2, kind: input, shape index: {}]   ;;  %s3244_s3 = inlined_call_operand.hbm [shape: bf16[128,128], index: 3, kind: input, shape index: {}]   ;;  %s3245_s4 = inlined_call_operand.vmem [shape: f32[1,128], index: 4, kind: input, shape index: {}]   ;;  %s3246_s5 = inlined_call_operand.hbm [shape: bf16[128,128], index: 5, kind: input, shape index: {}]   ;;  %s3247_s6 = inlined_call_operand.vmem [shape: f32[1,128], index: 6, kind: input, shape index: {}]   ;;  %s3248_s7 = inlined_call_operand.hbm [shape: f32[256,128], index: 7, kind: output, shape index: {0}]   ;;  %s3249_s8 = inlined_call_operand.hbm [shape: f32[256,128], index: 8, kind: output, shape index: {1}]  }
   0x1   :  { %3255 = sst [smem:[#allocation20_spill]] %s3242_s1 }
   0x2   :  { %3256 = sst [smem:[#allocation21_spill]] %s3244_s3 }
   0x3   :  { %3257 = sst [smem:[#allocation22_spill]] %s3246_s5 }
   0x4   :  { %14 = vsyncpa [#allocation4], 0 }
   0x5   :  { %16 = vsyncpa [#allocation4 + $0x1], 0 }
   0x6   :  { %17 = vsyncpa [#allocation7], 0 }
   0x7   :  { %18 = vsyncpa [#allocation10], 0 }
   0x8   :  { %19 = vsyncpa [#allocation5], 0 }
   0x9   :  { %21 = vsyncpa [#allocation5 + $0x1], 0 }
   0xa   :  { %22 = vsyncpa [#allocation13], 0 }
   0xb   :  { %24 = vsyncpa [#allocation13 + $0x1], 0  ;;  %s2569_s27 = smov 0   ;;  %s2571_s28 = smov 0  }
   0xc   :  { %s2573_s29 = smov 0   ;;  %s2575_s30 = smov 0  }
   0xd   :  { %s2577_s9 = smov 0   ;;  %s2579_s10 = smov 0  }
   0xe LB: > { %s1782_s11 = sadd.s32 4294967295, %s2510_s10   ;;  %s1783_s12 = sadd.s32 4294967294, %s2510_s10   ;;  %s2510_s10 = sphi %s2579_s10, %s30_s10   ;;  %s2506_s9 = sphi %s2577_s9, %s3280_s9   ;;  %s2502_s30 = sphi %s2575_s30, %s3279_s30   ;;  %s2498_s29 = sphi %s2573_s29, %s3278_s29   ;;  %s2494_s28 = sphi %s2571_s28, %s3277_s28   ;;  %s2490_s27 = sphi %s2569_s27, %s3276_s27  }
   0xf   : > { %p64_p0 = scmp.ne.s32.totalorder %s2494_s28, %s2490_s27  ;;  %p2603_p1 = scmp.eq.s32.totalorder %s1782_s11, 0 }
  0x10   : > { %p2607_p2 = scmp.eq.s32.totalorder %s1782_s11, 1  ;;  %p225_p3 = scmp.eq.s32.totalorder %s1783_s12, 1 }
  0x11   : > { %s3258_s13 = scalar_select %p2603_p1, 1, 0 }
  0x12   : > { %p2613_p4 = por %p2603_p1, %p64_p0  ;;  %p1784_p5 = scmp.ge.s32.totalorder %s2510_s10, 1 }
  0x13   : > { %p2618_p6 = por %p225_p3, %p64_p0  ;;  %p258_p7 = scmp.lt.s32.totalorder %s2510_s10, 3 }
  0x14   : > { %s3260_s15 = scalar_select %p2613_p4, 1, 0 }
  0x15   : > { %s3261_s16 = scalar_select %p2618_p6, 1, 0 }
  0x16   : > { %p2623_p8 = pnand %p1784_p5, %p258_p7  ;;  %s2512_s18 = smov [#allocation6]  }
  0x17   : > { %s273_s19 = sshll.u32 %s2512_s18, 4  ;;  %s2513_s21 = smov [#allocation8]   ;;  %s274_s19 = int_to_ptr.vmem [resolvable:$true] %s273_s19 }
  0x18   : > { %s3262_s17 = scalar_select %p2623_p8, 1, 0 }
  0x19   : > { %p2040_p9 = pneg %p2623_p8  ;;  %s289_s22 = sshll.u32 %s2513_s21, 4  ;;  %s290_s22 = int_to_ptr.vmem [resolvable:$true] %s289_s22 }
  0x1a   : > { %s2514_s23 = smov [#allocation9]   ;;  %s2297_s25 = scalar_lea.vmem %s274_s19, 2048 }
  0x1b   : > { %p2632_p11 = pnand %p2040_p9, %p2603_p1  ;;  %s305_s24 = sshll.u32 %s2514_s23, 4  ;;  %s306_s24 = int_to_ptr.vmem [resolvable:$true] %s305_s24 }
  0x1c   : > { %p2298_p13 = scmp.ne.s32.totalorder %s274_s19, %s2297_s25  ;;  %p2305_p5 = scmp.lt.s32.totalorder %s274_s19, %s274_s19 }
  0x1d   : > { %p2288_p12 = pneg %p2632_p11  ;;  %p2306_p7 = scmp.lt.s32.totalorder %s2297_s25, %s2297_s25 }
  0x1f   : > { %p2300_p0 = pnand %p2298_p13, %p2288_p12  ;;  %p2307_p9 = por %p2306_p7, %p2305_p5 }
  0x21   : > { %p2301_p3 = pneg %p2300_p0 }
  0x23   : > { %p2308_p10 = pnand %p2307_p9, %p2301_p3 }
  0x25   : > { %2311 = shalt.err (!%p2308_p10)
}
  0x26   : > { %s2515_s26 = smov 64   ;;  %s2516_s11 = smov 4  }
  0x27   : > { %s3264_s1 = sld [smem:[#allocation20_spill]]  ;;  %s2323_s21 = scalar_lea.vmem %s290_s22, 1024 }
  0x28   : > { %p2324_p6 = scmp.ne.s32.totalorder %s290_s22, %s2323_s21  ;;  %p2331_p1 = scmp.lt.s32.totalorder %s290_s22, %s290_s22 }
  0x29   : > { %p2332_p4 = scmp.lt.s32.totalorder %s2323_s21, %s2323_s21 }
  0x2a   : > { %p2326_p13 = pnand %p2324_p6, %p2288_p12 }
  0x2b   : > { %p2333_p5 = por %p2332_p4, %p2331_p1 }
  0x2c   : > { %p2327_p0 = pneg %p2326_p13 }
  0x2d   : > { %2043 = dma.hbm_to_vmem [thread:$0]  (!%p2632_p11), %s3264_s1, 2048, %s274_s19, [#allocation7], %s2515_s26, %s2515_s26, %s2516_s11  }
  0x2e   : > { %p2334_p3 = pnand %p2333_p5, %p2327_p0 }
  0x30   : > { %2337 = shalt.err (!%p2334_p3)
}
  0x31   : > { %s3265_s3 = sld [smem:[#allocation21_spill]]  ;;  %s2349_s19 = scalar_lea.vmem %s306_s24, 1024 }
  0x32   : > { %p2350_p10 = scmp.ne.s32.totalorder %s306_s24, %s2349_s19  ;;  %p2357_p9 = scmp.lt.s32.totalorder %s306_s24, %s306_s24 }
  0x33   : > { %p2358_p13 = scmp.lt.s32.totalorder %s2349_s19, %s2349_s19 }
  0x34   : > { %p2352_p7 = pnand %p2350_p10, %p2288_p12 }
  0x35   : > { %p2359_p8 = por %p2358_p13, %p2357_p9 }
  0x36   : > { %p2353_p6 = pneg %p2352_p7 }
  0x37   : > { %2046 = dma.hbm_to_vmem [thread:$0]  (!%p2632_p11), %s3265_s3, 1024, %s290_s22, [#allocation7], %s2515_s26, %s2515_s26, %s2516_s11  }
  0x38   : > { %p2360_p1 = pnand %p2359_p8, %p2353_p6 }
  0x3a   : > { %2363 = shalt.err (!%p2360_p1)
}
  0x3b   : > { %s3266_s5 = sld [smem:[#allocation22_spill]]  ;;  %s51_s22 = sadd.s32 1, %s2498_s29 }
  0x3c   : > { %s42_s21 = sadd.s32 1, %s2506_s9  ;;  %p58_p4 = scmp.ne.s32.totalorder %s2498_s29, %s2494_s28 }
  0x3d   : > { %p44_p8 = scmp.ge.s32.totalorder %s42_s21, 2  ;;  %p59_p12 = scmp.eq.s32.totalorder %s2510_s10, 0 }
  0x3e   : > { %p2669_p0 = por %p2607_p2, %p58_p4  ;;  %p2064_p5 = scmp.lt.s32.totalorder %s2510_s10, 2 }
  0x3f   : > { %s3282_s21 = smov (%p44_p8, %s42_s21), 0  ;;  %p60_p3 = por %p59_p12, %p58_p4 }
  0x40   : > { %3268 = sst [smem:[#allocation19_spill]] %s3282_s21  ;;  %s322_s23 = sand.u32 1, %s2498_s29  }
  0x41   : > { %2049 = dma.hbm_to_vmem [thread:$0]  (!%p2632_p11), %s3266_s5, 1024, %s306_s24, [#allocation10], %s2515_s26, %s2515_s26, %s2516_s11  }
  0x42   : > { %s46_s25 = ssub.s32 %s2506_s9, %s3282_s21  ;;  %s1789_s24 = sshll.u32 %s322_s23, 8 }
  0x43   : > { %p49_p10 = scmp.eq.s32.totalorder %s46_s25, 0  ;;  %s1859_s26 = sshll.u32 %s2506_s9, 12 }
  0x44   : > { %s335_s14 = scalar_lea.hbm %s3241_s0, %s1859_s26  ;;  %s326_s18 = scalar_lea.vmem [#allocation3], %s1789_s24 }
  0x45   : > { %s2681_s11 = scalar_select %p49_p10, %s2498_s29, %s51_s22  }
  0x46   : > { %s336_s1 = sshll.u32 %s326_s18, 4  ;;  %p2688_p2 = pnand %p2064_p5, %p60_p3  ;;  %s337_s1 = int_to_ptr.vmem [resolvable:$true] %s336_s1 }
  0x47   : > { %s323_s5 = scalar_lea.sflag [#allocation4], %s322_s23  ;;  %s2377_s25 = scalar_lea.vmem %s337_s1, 4096 }
  0x48   : > { %p2366_p11 = pneg %p2688_p2  ;;  %p2378_p7 = scmp.ne.s32.totalorder %s337_s1, %s2377_s25 }
  0x49   : > { %s2517_s22 = smov [#allocation3]  }
  0x4a   : > { %p2380_p6 = pnand %p2378_p7, %p2366_p11  ;;  %s2382_s21 = sshll.u32 %s2517_s22, 4  ;;  %s2383_s21 = int_to_ptr.vmem [resolvable:$false] %s2382_s21 }
  0x4b   : > { %s2384_s26 = scalar_lea.vmem %s2383_s21, 8192  ;;  %p2385_p13 = scmp.lt.s32.totalorder %s337_s1, %s2383_s21 }
  0x4c   : > { %p2381_p9 = pneg %p2380_p6  ;;  %p2386_p1 = scmp.lt.s32.totalorder %s2384_s26, %s2377_s25 }
  0x4e   : > { %p2387_p4 = por %p2386_p1, %p2385_p13 }
  0x50   : > { %p2388_p8 = pnand %p2387_p4, %p2381_p9 }
  0x52   : > { %2391 = shalt.err (!%p2388_p8)
}
  0x53   : > { %s2518_s24 = smov 256   ;;  %s2519_s19 = smov 16  }
  0x54   : > { %2053 = dma.hbm_to_vmem [thread:$0]  (!%p2688_p2), %s335_s14, 4096, %s337_s1, %s323_s5, %s2518_s24, %s2518_s24, %s2519_s19  }
  0x55   : > { %p3270_p12 = scmp.ne.s32.totalorder %s3262_s17, 0 }
  0x56   : > { %s2699_s23 = sand.u32 (!%p3270_p12), 1, %s2494_s28   ;;  %p3271_p5 = scmp.ne.s32.totalorder (!%p3270_p12), %s3260_s15, 0 }
  0x57   : > { %348 = sbr.rel (%p3270_p12) target bundleno = 1313 (0x521), region = 48  ;;  %s1794_s12 = sshll.u32 (!%p3270_p12), %s2699_s23, 8 }
  0x58   : > { %s351_s21 = scalar_lea.sflag (!%p3270_p12), [#allocation4], %s2699_s23  ;;  %s2703_s18 = scalar_lea.vmem (!%p3270_p12), [#allocation3], %s1794_s12 }
  0x5c   : > { %2469 = dma.done.wait (%p3271_p5), %s351_s21, 4096  }
  0x5d   : > { %2471 = vsyncadd (%p3271_p5), %s351_s21, 4294963200  ;;  %p3272_p3 = scmp.ne.s32.totalorder %s3258_s13, 0 }
  0x5f   : > { %2473 = dma.done.wait (%p3272_p3), [#allocation7], 3072  }
  0x60   : > { %2475 = vsyncadd (%p3272_p3), [#allocation7], 4294964224 }
  0x61   : > { %2477 = dma.done.wait (%p3272_p3), [#allocation10], 1024  }
  0x62   : > { %2479 = vsyncadd (%p3272_p3), [#allocation10], 4294966272  ;;  %v2126_v0 = vld [vmem:[#allocation6 + $0x78] sm:$0xff]   ;;  %v2128_v2 = vld [vmem:[#allocation6 + $0x70] sm:$0xff]   ;;  %s1798_s5 = sshll.u32 %s2699_s23, 7  ;;  %s1860_s22 = sshll.u32 %s2502_s30, 11 }
  0x63   : > { %v2127_v1 = vld [vmem:[#allocation6 + $0x38] sm:$0xff]   ;;  %1862 = vmatprep.subr.bf16.mxu0 %v2126_v0  ;;  %v2129_v3 = vld [vmem:[#allocation6 + $0x30] sm:$0xff]   ;;  %v2130_v4 = vld [vmem:[#allocation6 + $0x68] sm:$0xff]   ;;  %v771_v0 = vlaneseq  ;;  %s3026_s17 = scalar_lea.vmem [#allocation11], %s1798_s5  ;;  %s3117_s19 = scalar_lea.hbm %s3248_s7, %s1860_s22 }
  0x64   : > { %1863 = vmatpush3.bf16.msra.mxu0 %v2127_v1  ;;  %v2131_v5 = vld [vmem:[#allocation6 + $0x28] sm:$0xff]   ;;  %v2132_v6 = vld [vmem:[#allocation6 + $0x60] sm:$0xff]   ;;  %v2134_v8 = vld [vmem:[#allocation6 + $0x58] sm:$0xff]   ;;  %s1619_s12 = sshll.u32 %s3026_s17, 4  ;;  %s1601_s21 = scalar_lea.sflag [#allocation5], %s2699_s23  ;;  %s3120_s12 = int_to_ptr.vmem [resolvable:$true] %s1619_s12 }
  0x65   : > { %1864 = vmatprep.subr.bf16.mxu0 %v2128_v2  ;;  %v2133_v7 = vld [vmem:[#allocation6 + $0x20] sm:$0xff]   ;;  %v2135_v9 = vld [vmem:[#allocation6 + $0x18] sm:$0xff]   ;;  %v2136_v10 = vld [vmem:[#allocation6 + $0x50] sm:$0xff]   ;;  %v2749_v1 = vshrl.u32 %v771_v0, 7  ;;  %s2520_s1 = smov [#allocation11]  }
  0x66   : > { %v431_v11 = vld [vmem:[%s2703_s18 + $0x8] sm:$0xff]  ;;  %v433_v12 = vld [vmem:[%s2703_s18 + $0x18] sm:$0xff]  ;;  %v2137_v14 = vld [vmem:[#allocation6 + $0x10] sm:$0xff]   ;;  %s2396_s3 = sshll.u32 %s2520_s1, 4  ;;  %s2397_s3 = int_to_ptr.vmem [resolvable:$false] %s2396_s3 }
  0x67   : > { %v463_v13 = vpack.c.bf16 %v433_v12, %v431_v11  ;;  %v2138_v15 = vld [vmem:[#allocation6 + $0x48] sm:$0xff]   ;;  %v2140_v17 = vld [vmem:[#allocation6 + $0x40] sm:$0xff]   ;;  %v432_v20 = vld [vmem:[%s2703_s18 + $0x10] sm:$0xff]  ;;  %v773_v2 = vsub.s32 0, %v2749_v1  ;;  %s2398_s13 = scalar_lea.vmem %s2397_s3, 4096  ;;  %p2399_p7 = scmp.lt.s32.totalorder %s3120_s12, %s2397_s3 }
  0x68   : > { %1865 = vmatpush3.bf16.msra.mxu0 %v2129_v3  ;;  %v2139_v16 = vld [vmem:[#allocation6 + $0x8] sm:$0xff]   ;;  %v2141_v18 = vld [vmem:[#allocation6] sm:$0xff]   ;;  %v437_v22 = vld [vmem:[%s2703_s18 + $0x38] sm:$0xff] }
  0x69   : > { %1866 = vmatprep.subr.bf16.mxu0 %v2130_v4  ;;  %654 = vmatprep.mubr.bf16.mxu0 %v463_v13  ;;  %v430_v19 = vld [vmem:[%s2703_s18] sm:$0xff]  ;;  %v435_v21 = vld [vmem:[%s2703_s18 + $0x28] sm:$0xff]  ;;  %v436_v26 = vld [vmem:[%s2703_s18 + $0x30] sm:$0xff] }
  0x6a   : > { %v462_v23 = vpack.c.bf16 %v432_v20, %v430_v19  ;;  %v465_v24 = vpack.c.bf16 %v437_v22, %v435_v21  ;;  %v434_v25 = vld [vmem:[%s2703_s18 + $0x20] sm:$0xff]  ;;  %v439_v27 = vld [vmem:[%s2703_s18 + $0x48] sm:$0xff]  ;;  %v441_v28 = vld [vmem:[%s2703_s18 + $0x58] sm:$0xff] }
  0x6b   : > { %v464_v29 = vpack.c.bf16 %v436_v26, %v434_v25  ;;  %v467_v30 = vpack.c.bf16 %v441_v28, %v439_v27  ;;  %v438_v31 = vld [vmem:[%s2703_s18 + $0x40] sm:$0xff]  ;;  %v440_v32 = vld [vmem:[%s2703_s18 + $0x50] sm:$0xff]  ;;  %v443_v33 = vld [vmem:[%s2703_s18 + $0x68] sm:$0xff] }
  0x6c   : > { %1867 = vmatpush3.bf16.msra.mxu0 %v2131_v5  ;;  %v445_v34 = vld [vmem:[%s2703_s18 + $0x78] sm:$0xff]  ;;  %v466_v35 = vpack.c.bf16 %v440_v32, %v438_v31  ;;  %v442_v37 = vld [vmem:[%s2703_s18 + $0x60] sm:$0xff]  ;;  %v444_v38 = vld [vmem:[%s2703_s18 + $0x70] sm:$0xff] }
  0x6d   : > { %1868 = vmatprep.subr.bf16.mxu0 %v2132_v6  ;;  %v469_v36 = vpack.c.bf16 %v445_v34, %v443_v33  ;;  %v447_v39 = vld [vmem:[%s2703_s18 + $0x88] sm:$0xff]  ;;  %v449_v40 = vld [vmem:[%s2703_s18 + $0x98] sm:$0xff]  ;;  %v468_v41 = vpack.c.bf16 %v444_v38, %v442_v37  ;;  %v446_v43 = vld [vmem:[%s2703_s18 + $0x80] sm:$0xff] }
  0x6e   : > { %v471_v42 = vpack.c.bf16 %v449_v40, %v447_v39  ;;  %v448_v44 = vld [vmem:[%s2703_s18 + $0x90] sm:$0xff]  ;;  %v451_v45 = vld [vmem:[%s2703_s18 + $0xa8] sm:$0xff]  ;;  %v453_v46 = vld [vmem:[%s2703_s18 + $0xb8] sm:$0xff] }
  0x6f   : > { %v470_v47 = vpack.c.bf16 %v448_v44, %v446_v43  ;;  %v473_v48 = vpack.c.bf16 %v453_v46, %v451_v45  ;;  %v450_v49 = vld [vmem:[%s2703_s18 + $0xa0] sm:$0xff]  ;;  %v452_v50 = vld [vmem:[%s2703_s18 + $0xb0] sm:$0xff]  ;;  %v455_v51 = vld [vmem:[%s2703_s18 + $0xc8] sm:$0xff] }
  0x70   : > { %1869 = vmatpush3.bf16.msra.mxu0 %v2133_v7  ;;  %v457_v52 = vld [vmem:[%s2703_s18 + $0xd8] sm:$0xff]  ;;  %v472_v53 = vpack.c.bf16 %v452_v50, %v450_v49  ;;  %v454_v55 = vld [vmem:[%s2703_s18 + $0xc0] sm:$0xff]  ;;  %v456_v56 = vld [vmem:[%s2703_s18 + $0xd0] sm:$0xff] }
  0x71   : > { %1870 = vmatprep.subr.bf16.mxu0 %v2134_v8  ;;  %v475_v54 = vpack.c.bf16 %v457_v52, %v455_v51  ;;  %v459_v57 = vld [vmem:[%s2703_s18 + $0xe8] sm:$0xff]  ;;  %v461_v58 = vld [vmem:[%s2703_s18 + $0xf8] sm:$0xff]  ;;  %v474_v59 = vpack.c.bf16 %v456_v56, %v454_v55  ;;  %v458_v61 = vld [vmem:[%s2703_s18 + $0xe0] sm:$0xff] }
  0x72   : > { %v477_v60 = vpack.c.bf16 %v461_v58, %v459_v57  ;;  %v460_v62 = vld [vmem:[%s2703_s18 + $0xf0] sm:$0xff]  ;;  %v2755_v3 = vld [vmem:[%s3243_s2] sm:$0x7]  ;;  %s2392_s18 = scalar_lea.vmem %s3120_s12, 2048 }
  0x73   : > { %v476_v63 = vpack.c.bf16 %v460_v62, %v458_v61  ;;  %v2758_v5 = vrot.slane %v2755_v3, %v773_v2  ;;  %p2393_p10 = scmp.ne.s32.totalorder %s3120_s12, %s2392_s18  ;;  %p2400_p6 = scmp.lt.s32.totalorder %s2398_s13, %s2392_s18 }
  0x74   : > { %1871 = vmatpush3.bf16.msra.mxu0 %v2135_v9 }
  0x75   : > { %1872 = vmatprep.subr.bf16.mxu0 %v2136_v10  ;;  %p2394_p2 = pnand %p2393_p10, %p2669_p0  ;;  %p2401_p9 = por %p2400_p6, %p2399_p7 }
  0x77   : > { %p2395_p11 = pneg %p2394_p2 }
  0x78   : > { %1873 = vmatpush3.bf16.msra.mxu0 %v2137_v14 }
  0x79   : > { %1874 = vmatprep.subr.bf16.mxu0 %v2138_v15  ;;  %p2402_p13 = pnand %p2401_p9, %p2395_p11 }
  0x7c   : > { %1875 = vmatpush3.bf16.msra.mxu0 %v2139_v16 }
  0x7d   : > { %1876 = vmatprep.subr.bf16.mxu0 %v2140_v17 }
  0x80   : > { %1877 = vmatpush3.bf16.msra.mxu0 %v2141_v18 }
  0x83   : > { %655 = vmatmul.mubr.bf16.vlgmr.msra.gmra.mxu0 %v462_v23 }
  0x84   : > { %662 = vmatprep.mubr.bf16.mxu0 %v465_v24 }
  0x8b   : > { %663 = vmatmul.mubr.bf16.gmra.mxu0 %v464_v29 }
  0x8c   : > { %670 = vmatprep.mubr.bf16.mxu0 %v467_v30 }
  0x93   : > { %671 = vmatmul.mubr.bf16.gmra.mxu0 %v466_v35 }
  0x94   : > { %678 = vmatprep.mubr.bf16.mxu0 %v469_v36 }
  0x9b   : > { %679 = vmatmul.mubr.bf16.gmra.mxu0 %v468_v41 }
  0x9c   : > { %686 = vmatprep.mubr.bf16.mxu0 %v471_v42 }
  0xa3   : > { %687 = vmatmul.mubr.bf16.gmra.mxu0 %v470_v47 }
  0xa4   : > { %694 = vmatprep.mubr.bf16.mxu0 %v473_v48 }
  0xab   : > { %695 = vmatmul.mubr.bf16.gmra.mxu0 %v472_v53 }
  0xac   : > { %702 = vmatprep.mubr.bf16.mxu0 %v475_v54 }
  0xb3   : > { %703 = vmatmul.mubr.bf16.gmra.mxu0 %v474_v59 }
  0xb4   : > { %710 = vmatprep.mubr.bf16.mxu0 %v477_v60 }
  0xbb   : > { %711 = vmatmul.mubr.bf16.gmra.mxu0 %v476_v63 }
 0x143   : > { %v1878_v4 = vpop.f32.mrf.mxu0 }
 0x145   : > { %v1879_v6 = vpop.f32.mrf.mxu0 }
 0x146   : > { %v1880_v7 = vadd.f32 %v1879_v6, %v1878_v4 }
 0x147   : > { %v1881_v8 = vpop.f32.mrf.mxu0 }
 0x148   : > { %v2761_v9 = vadd.f32 %v1880_v7, %v2758_v5 }
 0x149   : > { %v1882_v10 = vpop.f32.mrf.mxu0 }
 0x14a   : > { %v1883_v11 = vadd.f32 %v1882_v10, %v1881_v8  ;;  %791 = vadd.xlane.f32.xlu0 %v2761_v9 }
 0x14b   : > { %v1884_v12 = vpop.f32.mrf.mxu0 }
 0x14c   : > { %v2765_v13 = vadd.f32 %v1883_v11, %v2758_v5 }
 0x14d   : > { %v1885_v14 = vpop.f32.mrf.mxu0 }
 0x14e   : > { %v1886_v15 = vadd.f32 %v1885_v14, %v1884_v12  ;;  %793 = vadd.xlane.f32.xlu0 %v2765_v13 }
 0x14f   : > { %v1887_v16 = vpop.f32.mrf.mxu0 }
 0x150   : > { %v2769_v17 = vadd.f32 %v1886_v15, %v2758_v5 }
 0x151   : > { %v1888_v18 = vpop.f32.mrf.mxu0 }
 0x152   : > { %v1889_v19 = vadd.f32 %v1888_v18, %v1887_v16  ;;  %795 = vadd.xlane.f32.xlu1 %v2769_v17 }
 0x153   : > { %v1890_v20 = vpop.f32.mrf.mxu0 }
 0x154   : > { %v2773_v21 = vadd.f32 %v1889_v19, %v2758_v5 }
 0x155   : > { %v1891_v22 = vpop.f32.mrf.mxu0 }
 0x156   : > { %v1892_v23 = vadd.f32 %v1891_v22, %v1890_v20  ;;  %797 = vadd.xlane.f32.xlu1 %v2773_v21 }
 0x157   : > { %v1893_v24 = vpop.f32.mrf.mxu0 }
 0x158   : > { %v2777_v25 = vadd.f32 %v1892_v23, %v2758_v5 }
 0x159   : > { %v1894_v26 = vpop.f32.mrf.mxu0 }
 0x15a   : > { %v1895_v27 = vadd.f32 %v1894_v26, %v1893_v24  ;;  %799 = vadd.xlane.f32.xlu0 %v2777_v25 }
 0x15b   : > { %v1896_v28 = vpop.f32.mrf.mxu0 }
 0x15c   : > { %v2781_v29 = vadd.f32 %v1895_v27, %v2758_v5 }
 0x15d   : > { %v1897_v30 = vpop.f32.mrf.mxu0 }
 0x15e   : > { %v1898_v31 = vadd.f32 %v1897_v30, %v1896_v28  ;;  %801 = vadd.xlane.f32.xlu1 %v2781_v29 }
 0x15f   : > { %v1899_v32 = vpop.f32.mrf.mxu0 }
 0x160   : > { %v2785_v33 = vadd.f32 %v1898_v31, %v2758_v5 }
 0x161   : > { %v1900_v34 = vpop.f32.mrf.mxu0 }
 0x162   : > { %v1901_v35 = vadd.f32 %v1900_v34, %v1899_v32  ;;  %803 = vadd.xlane.f32.xlu0 %v2785_v33 }
 0x163   : > { %v1902_v36 = vpop.f32.mrf.mxu0 }
 0x164   : > { %v2789_v37 = vadd.f32 %v1901_v35, %v2758_v5 }
 0x165   : > { %v1903_v38 = vpop.f32.mrf.mxu0 }
 0x166   : > { %v1904_v39 = vadd.f32 %v1903_v38, %v1902_v36  ;;  %805 = vadd.xlane.f32.xlu1 %v2789_v37 }
 0x167   : > { %v1905_v40 = vpop.f32.mrf.mxu0 }
 0x168   : > { %v2793_v41 = vadd.f32 %v1904_v39, %v2758_v5 }
 0x169   : > { %v1906_v42 = vpop.f32.mrf.mxu0 }
 0x16a   : > { %v1907_v43 = vadd.f32 %v1906_v42, %v1905_v40  ;;  %807 = vadd.xlane.f32.xlu0 %v2793_v41 }
 0x16b   : > { %v1908_v44 = vpop.f32.mrf.mxu0 }
 0x16c   : > { %v2797_v45 = vadd.f32 %v1907_v43, %v2758_v5 }
 0x16d   : > { %v1909_v46 = vpop.f32.mrf.mxu0 }
 0x16e   : > { %v1910_v47 = vadd.f32 %v1909_v46, %v1908_v44  ;;  %809 = vadd.xlane.f32.xlu1 %v2797_v45 }
 0x16f   : > { %v1911_v48 = vpop.f32.mrf.mxu0 }
 0x170   : > { %v2801_v49 = vadd.f32 %v1910_v47, %v2758_v5 }
 0x171   : > { %v1912_v50 = vpop.f32.mrf.mxu0 }
 0x172   : > { %v1913_v51 = vadd.f32 %v1912_v50, %v1911_v48  ;;  %811 = vadd.xlane.f32.xlu0 %v2801_v49 }
 0x173   : > { %v1914_v52 = vpop.f32.mrf.mxu0 }
 0x174   : > { %v2805_v53 = vadd.f32 %v1913_v51, %v2758_v5 }
 0x175   : > { %v1915_v54 = vpop.f32.mrf.mxu0 }
 0x176   : > { %v1916_v55 = vadd.f32 %v1915_v54, %v1914_v52  ;;  %813 = vadd.xlane.f32.xlu1 %v2805_v53 }
 0x177   : > { %v1917_v56 = vpop.f32.mrf.mxu0 }
 0x178   : > { %v2809_v57 = vadd.f32 %v1916_v55, %v2758_v5 }
 0x179   : > { %v1918_v58 = vpop.f32.mrf.mxu0 }
 0x17a   : > { %v1919_v59 = vadd.f32 %v1918_v58, %v1917_v56  ;;  %815 = vadd.xlane.f32.xlu0 %v2809_v57 }
 0x17b   : > { %v1920_v60 = vpop.f32.mrf.mxu0 }
 0x17c   : > { %v2813_v61 = vadd.f32 %v1919_v59, %v2758_v5 }
 0x17d   : > { %v1921_v62 = vpop.f32.mrf.mxu0 }
 0x17e   : > { %v1922_v63 = vadd.f32 %v1921_v62, %v1920_v60  ;;  %817 = vadd.xlane.f32.xlu1 %v2813_v61 }
 0x17f   : > { %v1923_v0 = vpop.f32.mrf.mxu0 }
 0x180   : > { %v2817_v2 = vadd.f32 %v1922_v63, %v2758_v5 }
 0x181   : > { %v1924_v4 = vpop.f32.mrf.mxu0 }
 0x182   : > { %v1925_v6 = vadd.f32 %v1924_v4, %v1923_v0  ;;  %819 = vadd.xlane.f32.xlu0 %v2817_v2 }
 0x184   : > { %v2821_v7 = vadd.f32 %v1925_v6, %v2758_v5 }
 0x186   : > { %821 = vadd.xlane.f32.xlu1 %v2821_v7 }
 0x1d3   : > { %v792_v8 = vpop.xlane.xlu0 %791 }
 0x1d4   : > { %v824_v10 = vmul.f32 0.0078125, %v792_v8 }
 0x1d6   : > { %v2825_v11 = vsub.f32 %v2761_v9, %v824_v10  ;;  %v2143_v10 = vld [vmem:[#allocation8 + $0x30] sm:$0xff]  }
 0x1d7   : > { %v794_v12 = vpop.xlane.xlu0 %793 }
 0x1d8   : > { %v825_v14 = vmul.f32 0.0078125, %v794_v12  ;;  %v856_v15 = vmul.f32 %v2825_v11, %v2825_v11 }
 0x1da   : > { %v2830_v16 = vsub.f32 %v2765_v13, %v825_v14  ;;  %872 = vadd.xlane.f32.xlu0 %v856_v15 }
 0x1db   : > { %v796_v18 = vpop.xlane.xlu1 %795 }
 0x1dc   : > { %v826_v19 = vmul.f32 0.0078125, %v796_v18  ;;  %v857_v5 = vmul.f32 %v2830_v16, %v2830_v16  ;;  %v2144_v18 = vld [vmem:[#allocation8 + $0x28] sm:$0xff]  }
 0x1de   : > { %v2835_v20 = vsub.f32 %v2769_v17, %v826_v19  ;;  %874 = vadd.xlane.f32.xlu1 %v857_v5  ;;  %v2146_v5 = vld [vmem:[#allocation8 + $0x18] sm:$0xff]  }
 0x1df   : > { %v798_v9 = vpop.xlane.xlu1 %797 }
 0x1e0   : > { %v827_v22 = vmul.f32 0.0078125, %v798_v9  ;;  %v858_v23 = vmul.f32 %v2835_v20, %v2835_v20  ;;  %v2147_v9 = vld [vmem:[#allocation8 + $0x10] sm:$0xff]  }
 0x1e2   : > { %v2840_v24 = vsub.f32 %v2773_v21, %v827_v22  ;;  %876 = vadd.xlane.f32.xlu0 %v858_v23  ;;  %v2148_v22 = vld [vmem:[#allocation8 + $0x8] sm:$0xff]   ;;  %v2904_v23 = vld [vmem:[#allocation9 + $0x38] sm:$0xff]  }
 0x1e3   : > { %v800_v13 = vpop.xlane.xlu0 %799 }
 0x1e4   : > { %v828_v26 = vmul.f32 0.0078125, %v800_v13  ;;  %v859_v27 = vmul.f32 %v2840_v24, %v2840_v24 }
 0x1e6   : > { %v2845_v28 = vsub.f32 %v2777_v25, %v828_v26  ;;  %878 = vadd.xlane.f32.xlu1 %v859_v27 }
 0x1e7   : > { %v802_v17 = vpop.xlane.xlu1 %801 }
 0x1e8   : > { %v829_v30 = vmul.f32 0.0078125, %v802_v17  ;;  %v860_v31 = vmul.f32 %v2845_v28, %v2845_v28 }
 0x1ea   : > { %v2850_v32 = vsub.f32 %v2781_v29, %v829_v30  ;;  %880 = vadd.xlane.f32.xlu0 %v860_v31 }
 0x1eb   : > { %v804_v21 = vpop.xlane.xlu0 %803 }
 0x1ec   : > { %v830_v34 = vmul.f32 0.0078125, %v804_v21  ;;  %v861_v35 = vmul.f32 %v2850_v32, %v2850_v32 }
 0x1ee   : > { %v2855_v36 = vsub.f32 %v2785_v33, %v830_v34  ;;  %882 = vadd.xlane.f32.xlu1 %v861_v35 }
 0x1ef   : > { %v806_v25 = vpop.xlane.xlu1 %805 }
 0x1f0   : > { %v831_v38 = vmul.f32 0.0078125, %v806_v25  ;;  %v862_v39 = vmul.f32 %v2855_v36, %v2855_v36 }
 0x1f2   : > { %v2860_v40 = vsub.f32 %v2789_v37, %v831_v38  ;;  %884 = vadd.xlane.f32.xlu0 %v862_v39  ;;  %v970_v39 = vsub.s32 1, %v2749_v1 }
 0x1f3   : > { %v808_v29 = vpop.xlane.xlu0 %807 }
 0x1f4   : > { %v832_v42 = vmul.f32 0.0078125, %v808_v29  ;;  %v863_v43 = vmul.f32 %v2860_v40, %v2860_v40 }
 0x1f6   : > { %v2865_v44 = vsub.f32 %v2793_v41, %v832_v42  ;;  %886 = vadd.xlane.f32.xlu1 %v863_v43  ;;  %v990_v42 = vsub.s32 2, %v2749_v1 }
 0x1f7   : > { %v810_v33 = vpop.xlane.xlu1 %809 }
 0x1f8   : > { %v833_v46 = vmul.f32 0.0078125, %v810_v33  ;;  %v864_v47 = vmul.f32 %v2865_v44, %v2865_v44 }
 0x1fa   : > { %v2870_v48 = vsub.f32 %v2797_v45, %v833_v46  ;;  %888 = vadd.xlane.f32.xlu0 %v864_v47  ;;  %v2910_v46 = vrot.slane %v2755_v3, %v970_v39 }
 0x1fb   : > { %v812_v37 = vpop.xlane.xlu0 %811 }
 0x1fc   : > { %v834_v50 = vmul.f32 0.0078125, %v812_v37  ;;  %v865_v51 = vmul.f32 %v2870_v48, %v2870_v48 }
 0x1fe   : > { %v2875_v52 = vsub.f32 %v2801_v49, %v834_v50  ;;  %890 = vadd.xlane.f32.xlu1 %v865_v51  ;;  %v2914_v51 = vrot.slane %v2755_v3, %v990_v42 }
 0x1ff   : > { %v814_v41 = vpop.xlane.xlu1 %813 }
 0x200   : > { %v835_v54 = vmul.f32 0.0078125, %v814_v41  ;;  %v866_v55 = vmul.f32 %v2875_v52, %v2875_v52 }
 0x202   : > { %v2880_v56 = vsub.f32 %v2805_v53, %v835_v54  ;;  %892 = vadd.xlane.f32.xlu0 %v866_v55  ;;  %v2142_v53 = vld [vmem:[#allocation8 + $0x38] sm:$0xff]  }
 0x203   : > { %v816_v45 = vpop.xlane.xlu0 %815  ;;  %1958 = vmatprep.subr.bf16.mxu1 %v2142_v53 }
 0x204   : > { %v836_v58 = vmul.f32 0.0078125, %v816_v45  ;;  %v867_v59 = vmul.f32 %v2880_v56, %v2880_v56  ;;  %1959 = vmatpush3.bf16.msra.mxu1 %v2142_v53 }
 0x205   : > { %1960 = vmatprep.subr.bf16.mxu1 %v2143_v10 }
 0x206   : > { %v2885_v60 = vsub.f32 %v2809_v57, %v836_v58  ;;  %894 = vadd.xlane.f32.xlu1 %v867_v59 }
 0x207   : > { %v818_v49 = vpop.xlane.xlu1 %817 }
 0x208   : > { %v837_v62 = vmul.f32 0.0078125, %v818_v49  ;;  %v868_v63 = vmul.f32 %v2885_v60, %v2885_v60  ;;  %1961 = vmatpush3.bf16.msra.mxu1 %v2143_v10 }
 0x209   : > { %1962 = vmatprep.subr.bf16.mxu1 %v2144_v18 }
 0x20a   : > { %v2890_v0 = vsub.f32 %v2813_v61, %v837_v62  ;;  %896 = vadd.xlane.f32.xlu0 %v868_v63 }
 0x20b   : > { %v820_v4 = vpop.xlane.xlu0 %819 }
 0x20c   : > { %v838_v6 = vmul.f32 0.0078125, %v820_v4  ;;  %v869_v8 = vmul.f32 %v2890_v0, %v2890_v0  ;;  %1963 = vmatpush3.bf16.msra.mxu1 %v2144_v18 }
 0x20e   : > { %v2895_v57 = vsub.f32 %v2817_v2, %v838_v6  ;;  %898 = vadd.xlane.f32.xlu1 %v869_v8  ;;  %v2145_v2 = vld [vmem:[#allocation8 + $0x20] sm:$0xff]  }
 0x20f   : > { %v822_v12 = vpop.xlane.xlu1 %821  ;;  %1964 = vmatprep.subr.bf16.mxu1 %v2145_v2 }
 0x210   : > { %v839_v14 = vmul.f32 0.0078125, %v822_v12  ;;  %v870_v61 = vmul.f32 %v2895_v57, %v2895_v57  ;;  %1965 = vmatpush3.bf16.msra.mxu1 %v2145_v2 }
 0x211   : > { %1966 = vmatprep.subr.bf16.mxu1 %v2146_v5 }
 0x212   : > { %v2900_v15 = vsub.f32 %v2821_v7, %v839_v14  ;;  %900 = vadd.xlane.f32.xlu0 %v870_v61  ;;  %v2149_v7 = vld [vmem:[#allocation8] sm:$0xff]  }
 0x214   : > { %v871_v19 = vmul.f32 %v2900_v15, %v2900_v15  ;;  %1967 = vmatpush3.bf16.msra.mxu1 %v2146_v5 }
 0x215   : > { %1968 = vmatprep.subr.bf16.mxu1 %v2147_v9 }
 0x216   : > { %902 = vadd.xlane.f32.xlu1 %v871_v19 }
 0x218   : > { %1969 = vmatpush3.bf16.msra.mxu1 %v2147_v9 }
 0x219   : > { %1970 = vmatprep.subr.bf16.mxu1 %v2148_v22 }
 0x21c   : > { %1971 = vmatpush3.bf16.msra.mxu1 %v2148_v22 }
 0x21d   : > { %1972 = vmatprep.subr.bf16.mxu1 %v2149_v7 }
 0x220   : > { %1973 = vmatpush3.bf16.msra.mxu1 %v2149_v7 }
 0x221   : > { %1990 = vmatprep.subr.bf16.mxu1 %v2904_v23 }
 0x263   : > { %v873_v13 = vpop.xlane.xlu0 %872 }
 0x264   : > { %v904_v26 = vmul.f32 0.0078125, %v873_v13 }
 0x266   : > { %v920_v27 = vadd.f32 1e-05, %v904_v26 }
 0x267   : > { %v875_v17 = vpop.xlane.xlu1 %874 }
 0x268   : > { %2158 = vrsqrt.f32 %v920_v27  ;;  %v905_v30 = vmul.f32 0.0078125, %v875_v17 }
 0x26a   : > { %v921_v31 = vadd.f32 1e-05, %v905_v30 }
 0x26b   : > { %v877_v21 = vpop.xlane.xlu0 %876 }
 0x26c   : > { %2160 = vrsqrt.f32 %v921_v31  ;;  %v906_v34 = vmul.f32 0.0078125, %v877_v21 }
 0x26e   : > { %v922_v35 = vadd.f32 1e-05, %v906_v34 }
 0x26f   : > { %v879_v25 = vpop.xlane.xlu1 %878 }
 0x270   : > { %2162 = vrsqrt.f32 %v922_v35  ;;  %v907_v38 = vmul.f32 0.0078125, %v879_v25 }
 0x272   : > { %v923_v29 = vadd.f32 1e-05, %v907_v38 }
 0x273   : > { %v881_v43 = vpop.xlane.xlu0 %880 }
 0x274   : > { %2164 = vrsqrt.f32 %v923_v29  ;;  %v908_v33 = vmul.f32 0.0078125, %v881_v43 }
 0x275   : > { %v2159_v47 = vpop.eup %2158 }
 0x276   : > { %v924_v37 = vadd.f32 1e-05, %v908_v33  ;;  %v952_v50 = vmul.f32 %v2159_v47, %v2825_v11 }
 0x277   : > { %v883_v41 = vpop.xlane.xlu1 %882 }
 0x278   : > { %2166 = vrsqrt.f32 %v924_v37  ;;  %v909_v54 = vmul.f32 0.0078125, %v883_v41  ;;  %v972_v55 = vmul.f32 %v2910_v46, %v952_v50 }
 0x279   : > { %v2161_v45 = vpop.eup %2160 }
 0x27a   : > { %v925_v1 = vadd.f32 1e-05, %v909_v54  ;;  %v953_v58 = vmul.f32 %v2161_v45, %v2830_v16  ;;  %v2919_v59 = vadd.f32 %v2914_v51, %v972_v55 }
 0x27b   : > { %v885_v49 = vpop.xlane.xlu0 %884 }
 0x27c   : > { %2168 = vrsqrt.f32 %v925_v1  ;;  %v910_v62 = vmul.f32 0.0078125, %v885_v49  ;;  %v973_v11 = vmul.f32 %v2910_v46, %v953_v58  ;;  %v1816_v3 = vmul.f32 -1.442695, %v2919_v59 }
 0x27d   : > { %v2163_v63 = vpop.eup %2162 }
 0x27e   : > { %v926_v53 = vadd.f32 1e-05, %v910_v62  ;;  %v2924_v4 = vadd.f32 %v2914_v51, %v973_v11  ;;  %2170 = vpow2.f32 %v1816_v3  ;;  %v954_v6 = vmul.f32 %v2163_v63, %v2835_v20 }
 0x27f   : > { %v887_v8 = vpop.xlane.xlu1 %886 }
 0x280   : > { %2172 = vrsqrt.f32 %v926_v53  ;;  %v911_v16 = vmul.f32 0.0078125, %v887_v8  ;;  %v1817_v10 = vmul.f32 -1.442695, %v2924_v4  ;;  %v974_v12 = vmul.f32 %v2910_v46, %v954_v6 }
 0x281   : > { %v2165_v14 = vpop.eup %2164 }
 0x282   : > { %v927_v61 = vadd.f32 1e-05, %v911_v16  ;;  %2174 = vpow2.f32 %v1817_v10  ;;  %v955_v18 = vmul.f32 %v2165_v14, %v2840_v24  ;;  %v2931_v19 = vadd.f32 %v2914_v51, %v974_v12 }
 0x283   : > { %v889_v2 = vpop.xlane.xlu0 %888 }
 0x284   : > { %2176 = vrsqrt.f32 %v927_v61  ;;  %v912_v5 = vmul.f32 0.0078125, %v889_v2  ;;  %v975_v20 = vmul.f32 %v2910_v46, %v955_v18  ;;  %v1818_v9 = vmul.f32 -1.442695, %v2931_v19 }
 0x285   : > { %v2167_v22 = vpop.eup %2166 }
 0x286   : > { %v928_v7 = vadd.f32 1e-05, %v912_v5  ;;  %v2936_v13 = vadd.f32 %v2914_v51, %v975_v20  ;;  %2178 = vpow2.f32 %v1818_v9  ;;  %v956_v26 = vmul.f32 %v2167_v22, %v2845_v28 }
 0x287   : > { %v891_v27 = vpop.xlane.xlu1 %890 }
 0x288   : > { %2180 = vrsqrt.f32 %v928_v7  ;;  %v913_v24 = vmul.f32 0.0078125, %v891_v27  ;;  %v1819_v17 = vmul.f32 -1.442695, %v2936_v13  ;;  %v976_v30 = vmul.f32 %v2910_v46, %v956_v26 }
 0x289   : > { %v2169_v31 = vpop.eup %2168 }
 0x28a   : > { %v929_v21 = vadd.f32 1e-05, %v913_v24  ;;  %2182 = vpow2.f32 %v1819_v17  ;;  %v957_v34 = vmul.f32 %v2169_v31, %v2850_v32  ;;  %v2943_v35 = vadd.f32 %v2914_v51, %v976_v30 }
 0x28b   : > { %v2171_v25 = vpop.eup %2170  ;;  %v893_v38 = vpop.xlane.xlu0 %892 }
 0x28c   : > { %2184 = vrsqrt.f32 %v929_v21  ;;  %v914_v39 = vmul.f32 0.0078125, %v893_v38  ;;  %v1056_v28 = vadd.f32 1.0, %v2171_v25  ;;  %v977_v29 = vmul.f32 %v2910_v46, %v957_v34 }
 0x28d   : > { %v2173_v42 = vpop.eup %2172  ;;  %v1820_v43 = vmul.f32 -1.442695, %v2943_v35 }
 0x28e   : > { %v930_v33 = vadd.f32 1e-05, %v914_v39  ;;  %2186 = vrcp.f32 %v1056_v28  ;;  %v2948_v47 = vadd.f32 %v2914_v51, %v977_v29  ;;  %v958_v32 = vmul.f32 %v2173_v42, %v2855_v36 }
 0x28f   : > { %v2175_v37 = vpop.eup %2174  ;;  %v895_v50 = vpop.xlane.xlu1 %894  ;;  %2188 = vpow2.f32 %v1820_v43 }
 0x290   : > { %2190 = vrsqrt.f32 %v930_v33  ;;  %v915_v41 = vmul.f32 0.0078125, %v895_v50  ;;  %v1057_v54 = vadd.f32 1.0, %v2175_v37  ;;  %v1821_v55 = vmul.f32 -1.442695, %v2948_v47 }
 0x291   : > { %v2177_v45 = vpop.eup %2176  ;;  %v978_v1 = vmul.f32 %v2910_v46, %v958_v32 }
 0x292   : > { %v931_v58 = vadd.f32 1e-05, %v915_v41  ;;  %2192 = vrcp.f32 %v1057_v54  ;;  %v959_v49 = vmul.f32 %v2177_v45, %v2860_v40 }
 0x293   : > { %v2179_v62 = vpop.eup %2178  ;;  %v897_v11 = vpop.xlane.xlu0 %896  ;;  %2194 = vpow2.f32 %v1821_v55  ;;  %v2955_v36 = vadd.f32 %v2914_v51, %v978_v1 }
 0x294   : > { %2196 = vrsqrt.f32 %v931_v58  ;;  %v916_v3 = vmul.f32 0.0078125, %v897_v11  ;;  %v1058_v63 = vadd.f32 1.0, %v2179_v62  ;;  %v979_v53 = vmul.f32 %v2910_v46, %v959_v49 }
 0x295   : > { %v2181_v6 = vpop.eup %2180  ;;  %v1822_v8 = vmul.f32 -1.442695, %v2955_v36 }
 0x296   : > { %v932_v16 = vadd.f32 1e-05, %v916_v3  ;;  %2198 = vrcp.f32 %v1058_v63  ;;  %v2960_v10 = vadd.f32 %v2914_v51, %v979_v53  ;;  %v960_v40 = vmul.f32 %v2181_v6, %v2865_v44 }
 0x297   : > { %v2183_v12 = vpop.eup %2182  ;;  %v899_v14 = vpop.xlane.xlu1 %898  ;;  %2200 = vpow2.f32 %v1822_v8 }
 0x298   : > { %2202 = vrsqrt.f32 %v932_v16  ;;  %v917_v61 = vmul.f32 0.0078125, %v899_v14  ;;  %v1059_v18 = vadd.f32 1.0, %v2183_v12  ;;  %v1823_v2 = vmul.f32 -1.442695, %v2960_v10 }
 0x299   : > { %v2185_v5 = vpop.eup %2184  ;;  %v980_v20 = vmul.f32 %v2910_v46, %v960_v40 }
 0x29a   : > { %v933_v9 = vadd.f32 1e-05, %v917_v61  ;;  %2204 = vrcp.f32 %v1059_v18  ;;  %v961_v22 = vmul.f32 %v2185_v5, %v2870_v48  ;;  %v2151_v61 = vld [vmem:[#allocation9 + $0x30] sm:$0xff]  }
 0x29b   : > { %v2187_v7 = vpop.eup %2186  ;;  %v901_v26 = vpop.xlane.xlu0 %900  ;;  %2206 = vpow2.f32 %v1823_v2  ;;  %v2967_v44 = vadd.f32 %v2914_v51, %v980_v20 }
 0x29c   : > { %v2189_v27 = vpop.eup %2188  ;;  %2208 = vrsqrt.f32 %v933_v9  ;;  %v918_v24 = vmul.f32 0.0078125, %v901_v26  ;;  %v981_v17 = vmul.f32 %v2910_v46, %v961_v22  ;;  %v1104_v28 = vmul.f32 %v2187_v7, %v2919_v59  ;;  %v2152_v9 = vld [vmem:[#allocation9 + $0x28] sm:$0xff]  }
 0x29d   : > { %v2191_v30 = vpop.eup %2190  ;;  %v1060_v31 = vadd.f32 1.0, %v2189_v27  ;;  %v1824_v21 = vmul.f32 -1.442695, %v2967_v44 }
 0x29e   : > { %v934_v34 = vadd.f32 1e-05, %v918_v24  ;;  %v2972_v25 = vadd.f32 %v2914_v51, %v981_v17  ;;  %v962_v48 = vmul.f32 %v2191_v30, %v2875_v52 }
 0x29f   : > { %v2193_v38 = vpop.eup %2192  ;;  %v903_v39 = vpop.xlane.xlu1 %902  ;;  %2210 = vrcp.f32 %v1060_v31 }
 0x2a0   : > { %v2195_v29 = vpop.eup %2194  ;;  %2212 = vrsqrt.f32 %v934_v34  ;;  %v919_v42 = vmul.f32 0.0078125, %v903_v39  ;;  %v1105_v43 = vmul.f32 %v2193_v38, %v2924_v4  ;;  %v1825_v33 = vmul.f32 -1.442695, %v2972_v25  ;;  %v2153_v34 = vld [vmem:[#allocation9 + $0x20] sm:$0xff]  }
 0x2a1   : > { %v2197_v32 = vpop.eup %2196  ;;  %v1061_v37 = vadd.f32 1.0, %v2195_v29  ;;  %2214 = vpow2.f32 %v1824_v21  ;;  %v982_v50 = vmul.f32 %v2910_v46, %v962_v48 }
 0x2a2   : > { %v935_v41 = vadd.f32 1e-05, %v919_v42  ;;  %v1120_v54 = vpack.c.bf16 %v1105_v43, %v1104_v28  ;;  %2216 = vpow2.f32 %v1825_v33  ;;  %v963_v52 = vmul.f32 %v2197_v32, %v2880_v56  ;;  %v2154_v42 = vld [vmem:[#allocation9 + $0x18] sm:$0xff]  }
 0x2a3   : > { %v2199_v55 = vpop.eup %2198  ;;  %2218 = vrcp.f32 %v1061_v37  ;;  %v2981_v59 = vadd.f32 %v2914_v51, %v982_v50 }
 0x2a4   : > { %v2201_v45 = vpop.eup %2200  ;;  %2220 = vrsqrt.f32 %v935_v41  ;;  %1974 = vmatprep.mubr.bf16.mxu1 %v1120_v54  ;;  %v983_v4 = vmul.f32 %v2910_v46, %v963_v52  ;;  %v1106_v3 = vmul.f32 %v2199_v55, %v2931_v19 }
 0x2a5   : > { %v2203_v1 = vpop.eup %2202  ;;  %v1062_v58 = vadd.f32 1.0, %v2201_v45  ;;  %v1826_v49 = vmul.f32 -1.442695, %v2981_v59 }
 0x2a6   : > { %v2986_v62 = vadd.f32 %v2914_v51, %v983_v4  ;;  %v964_v11 = vmul.f32 %v2203_v1, %v2885_v60 }
 0x2a7   : > { %v2205_v56 = vpop.eup %2204  ;;  %2222 = vpow2.f32 %v1826_v49 }
 0x2a8   : > { %v2207_v63 = vpop.eup %2206  ;;  %v1107_v53 = vmul.f32 %v2205_v56, %v2936_v13  ;;  %v1827_v6 = vmul.f32 -1.442695, %v2986_v62  ;;  %v984_v8 = vmul.f32 %v2910_v46, %v964_v11  ;;  %2224 = vrcp.f32 %v1062_v58 }
 0x2a9   : > { %v2209_v16 = vpop.eup %2208  ;;  %v1063_v40 = vadd.f32 1.0, %v2207_v63 }
 0x2aa   : > { %v1121_v12 = vpack.c.bf16 %v1107_v53, %v1106_v3  ;;  %2226 = vpow2.f32 %v1827_v6  ;;  %v965_v14 = vmul.f32 %v2209_v16, %v2890_v0  ;;  %v2995_v60 = vadd.f32 %v2914_v51, %v984_v8 }
 0x2ab   : > { %2228 = vrcp.f32 %v1063_v40 }
 0x2ac   : > { %v2211_v19 = vpop.eup %2210  ;;  %1975 = vmatmul.mubr.bf16.vlgmr.msra.gmra.mxu1 %v1121_v12  ;;  %v985_v13 = vmul.f32 %v2910_v46, %v965_v14  ;;  %v1828_v18 = vmul.f32 -1.442695, %v2995_v60 }
 0x2ad   : > { %v2213_v2 = vpop.eup %2212  ;;  %1991 = vmatpush3.bf16.msra.mxu1 %v2904_v23  ;;  %v1108_v23 = vmul.f32 %v2211_v19, %v2943_v35 }
 0x2ae   : > { %v2215_v5 = vpop.eup %2214  ;;  %v3001_v20 = vadd.f32 %v2914_v51, %v985_v13  ;;  %2230 = vpow2.f32 %v1828_v18  ;;  %v966_v0 = vmul.f32 %v2213_v2, %v2895_v57  ;;  %1992 = vmatprep.subr.bf16.mxu1 %v2151_v61  ;;  %v2156_v13 = vld [vmem:[#allocation9 + $0x8] sm:$0xff]   ;;  %v2157_v18 = vld [vmem:[#allocation9] sm:$0xff]  }
 0x2af   : > { %v2217_v22 = vpop.eup %2216  ;;  %v1064_v7 = vadd.f32 1.0, %v2215_v5 }
 0x2b0   : > { %v2219_v26 = vpop.eup %2218  ;;  %v1065_v27 = vadd.f32 1.0, %v2217_v22  ;;  %v1829_v24 = vmul.f32 -1.442695, %v3001_v20  ;;  %v986_v17 = vmul.f32 %v2910_v46, %v966_v0 }
 0x2b1   : > { %v2221_v30 = vpop.eup %2220  ;;  %v1109_v31 = vmul.f32 %v2219_v26, %v2948_v47  ;;  %2232 = vrcp.f32 %v1064_v7  ;;  %1993 = vmatpush3.bf16.msra.mxu1 %v2151_v61 }
 0x2b2   : > { %2234 = vrcp.f32 %v1065_v27  ;;  %v967_v57 = vmul.f32 %v2221_v30, %v2900_v15  ;;  %v1006_v21 = vadd.f32 %v2914_v51, %v986_v17  ;;  %1994 = vmatprep.subr.bf16.mxu1 %v2152_v9 }
 0x2b3   : > { %v1122_v48 = vpack.c.bf16 %v1109_v31, %v1108_v23  ;;  %2236 = vpow2.f32 %v1829_v24 }
 0x2b4   : > { %v987_v38 = vmul.f32 %v2910_v46, %v967_v57  ;;  %v1830_v39 = vmul.f32 -1.442695, %v1006_v21  ;;  %v2223_v28 = vpop.eup %2222 }
 0x2b5   : > { %1978 = vmatprep.mubr.bf16.mxu1 %v1122_v48  ;;  %1995 = vmatpush3.bf16.msra.mxu1 %v2152_v9  ;;  %v2225_v35 = vpop.eup %2224  ;;  %v1066_v29 = vadd.f32 1.0, %v2223_v28 }
 0x2b6   : > { %v1007_v47 = vadd.f32 %v2914_v51, %v987_v38  ;;  %2238 = vpow2.f32 %v1830_v39  ;;  %1996 = vmatprep.subr.bf16.mxu1 %v2153_v34  ;;  %v1110_v37 = vmul.f32 %v2225_v35, %v2955_v36 }
 0x2b7   : > { %v2227_v15 = vpop.eup %2226  ;;  %2240 = vrcp.f32 %v1066_v29 }
 0x2b8   : > { %v2229_v43 = vpop.eup %2228  ;;  %v1067_v33 = vadd.f32 1.0, %v2227_v15  ;;  %v1831_v32 = vmul.f32 -1.442695, %v1007_v47 }
 0x2b9   : > { %v1111_v46 = vmul.f32 %v2229_v43, %v2960_v10  ;;  %1997 = vmatpush3.bf16.msra.mxu1 %v2153_v34 }
 0x2ba   : > { %2242 = vrcp.f32 %v1067_v33  ;;  %1998 = vmatprep.subr.bf16.mxu1 %v2154_v42 }
 0x2bb   : > { %v2231_v50 = vpop.eup %2230  ;;  %v1123_v41 = vpack.c.bf16 %v1111_v46, %v1110_v37  ;;  %2244 = vpow2.f32 %v1831_v32 }
 0x2bc   : > { %v1068_v51 = vadd.f32 1.0, %v2231_v50 }
 0x2bd   : > { %1979 = vmatmul.mubr.bf16.gmra.mxu1 %v1123_v41 }
 0x2be   : > { %v2233_v54 = vpop.eup %2232  ;;  %1999 = vmatpush3.bf16.msra.mxu1 %v2154_v42  ;;  %2246 = vrcp.f32 %v1068_v51 }
 0x2bf   : > { %v2235_v52 = vpop.eup %2234  ;;  %v1112_v45 = vmul.f32 %v2233_v54, %v2967_v44 }
 0x2c0   : > { %v2237_v55 = vpop.eup %2236  ;;  %v1113_v4 = vmul.f32 %v2235_v52, %v2972_v25 }
 0x2c1   : > { %v1069_v1 = vadd.f32 1.0, %v2237_v55 }
 0x2c2   : > { %v1124_v36 = vpack.c.bf16 %v1113_v4, %v1112_v45 }
 0x2c3   : > { %v2239_v10 = vpop.eup %2238  ;;  %2248 = vrcp.f32 %v1069_v1 }
 0x2c4   : > { %1982 = vmatprep.mubr.bf16.mxu1 %v1124_v36  ;;  %v2241_v58 = vpop.eup %2240  ;;  %v1070_v49 = vadd.f32 1.0, %v2239_v10  ;;  %v1841_v36 = vld [vmem:[%s3247_s6] ss:$0 sm:$0xff] }
 0x2c5   : > { %v1114_v3 = vmul.f32 %v2241_v58, %v2981_v59 }
 0x2c6   : > { %2250 = vrcp.f32 %v1070_v49 }
 0x2c7   : > { %v2243_v11 = vpop.eup %2242 }
 0x2c8   : > { %v2245_v56 = vpop.eup %2244  ;;  %v1115_v63 = vmul.f32 %v2243_v11, %v2986_v62  ;;  %v2155_v62 = vld [vmem:[#allocation9 + $0x10] sm:$0xff]  }
 0x2c9   : > { %v1071_v53 = vadd.f32 1.0, %v2245_v56  ;;  %2000 = vmatprep.subr.bf16.mxu1 %v2155_v62 }
 0x2ca   : > { %v1125_v6 = vpack.c.bf16 %v1115_v63, %v1114_v3  ;;  %2001 = vmatpush3.bf16.msra.mxu1 %v2155_v62 }
 0x2cb   : > { %2252 = vrcp.f32 %v1071_v53  ;;  %v2247_v44 = vpop.eup %2246  ;;  %2002 = vmatprep.subr.bf16.mxu1 %v2156_v13 }
 0x2cc   : > { %1983 = vmatmul.mubr.bf16.gmra.mxu1 %v1125_v6  ;;  %v1116_v8 = vmul.f32 %v2247_v44, %v2995_v60  ;;  %v1832_v60 = vld [vmem:[%s3245_s4] ss:$0 sm:$0xff] }
 0x2ce   : > { %2003 = vmatpush3.bf16.msra.mxu1 %v2156_v13 }
 0x2cf   : > { %2004 = vmatprep.subr.bf16.mxu1 %v2157_v18 }
 0x2d0   : > { %v2249_v25 = vpop.eup %2248 }
 0x2d1   : > { %v1117_v16 = vmul.f32 %v2249_v25, %v3001_v20 }
 0x2d2   : > { %2005 = vmatpush3.bf16.msra.mxu1 %v2157_v18 }
 0x2d3   : > { %v1126_v40 = vpack.c.bf16 %v1117_v16, %v1116_v8  ;;  %v2251_v12 = vpop.eup %2250 }
 0x2d4   : > { %v1118_v61 = vmul.f32 %v2251_v12, %v1006_v21 }
 0x2d5   : > { %1986 = vmatprep.mubr.bf16.mxu1 %v1126_v40 }
 0x2d8   : > { %v2253_v14 = vpop.eup %2252 }
 0x2d9   : > { %v1119_v59 = vmul.f32 %v2253_v14, %v1007_v47 }
 0x2db   : > { %v1127_v19 = vpack.c.bf16 %v1119_v59, %v1118_v61 }
 0x2dd   : > { %1987 = vmatmul.mubr.bf16.gmra.mxu1 %v1127_v19 }
 0x36c   : > { %v1976_v2 = vpop.f32.mrf.mxu1 }
 0x36d   : > { %v1242_v5 = vadd.f32 %v1976_v2, %v1832_v60 }
 0x36e   : > { %v1233_v20 = vpop.f32.mrf.mxu1 }
 0x36f   : > { %1298 = vst [vmem:[%s3026_s17 + $0x10] sm:$0xff] %v1242_v5  ;;  %v1234_v0 = vadd.f32 %v1832_v60, %v1233_v20 }
 0x370   : > { %v1977_v9 = vpop.f32.mrf.mxu1 }
 0x371   : > { %1296 = vst [vmem:[%s3026_s17] sm:$0xff] %v1234_v0  ;;  %v1245_v22 = vadd.f32 %v1977_v9, %v1832_v60 }
 0x372   : > { %v1236_v7 = vpop.f32.mrf.mxu1 }
 0x373   : > { %1299 = vst [vmem:[%s3026_s17 + $0x18] sm:$0xff] %v1245_v22  ;;  %v1237_v26 = vadd.f32 %v1832_v60, %v1236_v7  ;;  %v1313_v24 = vpack.c.bf16 %v1245_v22, %v1242_v5 }
 0x375   : > { %1297 = vst [vmem:[%s3026_s17 + $0x8] sm:$0xff] %v1237_v26  ;;  %v1312_v27 = vpack.c.bf16 %v1237_v26, %v1234_v0 }
 0x377   : > { %2006 = vmatprep.mubr.bf16.mxu1 %v1312_v27 }
 0x378   : > { %2007 = vmatmul.mubr.bf16.vlgmr.msra.gmra.mxu1 %v1313_v24 }
 0x37d   : > { %v1980_v17 = vpop.f32.mrf.mxu1 }
 0x37e   : > { %v1258_v30 = vadd.f32 %v1980_v17, %v1832_v60 }
 0x37f   : > { %v1249_v23 = vpop.f32.mrf.mxu1 }
 0x380   : > { %1302 = vst [vmem:[%s3026_s17 + $0x30] sm:$0xff] %v1258_v30  ;;  %v1250_v31 = vadd.f32 %v1832_v60, %v1249_v23 }
 0x381   : > { %v1981_v57 = vpop.f32.mrf.mxu1 }
 0x382   : > { %1300 = vst [vmem:[%s3026_s17 + $0x20] sm:$0xff] %v1250_v31  ;;  %v1261_v21 = vadd.f32 %v1981_v57, %v1832_v60 }
 0x383   : > { %v1252_v34 = vpop.f32.mrf.mxu1 }
 0x384   : > { %1303 = vst [vmem:[%s3026_s17 + $0x38] sm:$0xff] %v1261_v21  ;;  %v1253_v48 = vadd.f32 %v1832_v60, %v1252_v34  ;;  %v1315_v39 = vpack.c.bf16 %v1261_v21, %v1258_v30 }
 0x386   : > { %1301 = vst [vmem:[%s3026_s17 + $0x28] sm:$0xff] %v1253_v48  ;;  %v1314_v38 = vpack.c.bf16 %v1253_v48, %v1250_v31 }
 0x388   : > { %2010 = vmatprep.mubr.bf16.mxu1 %v1314_v38 }
 0x389   : > { %2011 = vmatmul.mubr.bf16.gmra.mxu1 %v1315_v39 }
 0x38c   : > { %v1984_v28 = vpop.f32.mrf.mxu1 }
 0x38d   : > { %v1274_v35 = vadd.f32 %v1984_v28, %v1832_v60 }
 0x38e   : > { %v1265_v29 = vpop.f32.mrf.mxu1 }
 0x38f   : > { %1306 = vst [vmem:[%s3026_s17 + $0x50] sm:$0xff] %v1274_v35  ;;  %v1266_v47 = vadd.f32 %v1832_v60, %v1265_v29 }
 0x390   : > { %v1985_v42 = vpop.f32.mrf.mxu1 }
 0x391   : > { %1304 = vst [vmem:[%s3026_s17 + $0x40] sm:$0xff] %v1266_v47  ;;  %v1277_v15 = vadd.f32 %v1985_v42, %v1832_v60 }
 0x392   : > { %v1268_v43 = vpop.f32.mrf.mxu1 }
 0x393   : > { %1307 = vst [vmem:[%s3026_s17 + $0x58] sm:$0xff] %v1277_v15  ;;  %v1269_v33 = vadd.f32 %v1832_v60, %v1268_v43  ;;  %v1317_v37 = vpack.c.bf16 %v1277_v15, %v1274_v35 }
 0x395   : > { %1305 = vst [vmem:[%s3026_s17 + $0x48] sm:$0xff] %v1269_v33  ;;  %v1316_v32 = vpack.c.bf16 %v1269_v33, %v1266_v47 }
 0x397   : > { %2014 = vmatprep.mubr.bf16.mxu1 %v1316_v32 }
 0x398   : > { %2015 = vmatmul.mubr.bf16.gmra.mxu1 %v1317_v37 }
 0x39d   : > { %v1988_v46 = vpop.f32.mrf.mxu1 }
 0x39e   : > { %v1290_v50 = vadd.f32 %v1988_v46, %v1832_v60 }
 0x39f   : > { %v1281_v41 = vpop.f32.mrf.mxu1 }
 0x3a0   : > { %1310 = vst [vmem:[%s3026_s17 + $0x70] sm:$0xff] %v1290_v50  ;;  %v1282_v51 = vadd.f32 %v1832_v60, %v1281_v41 }
 0x3a1   : > { %v1989_v54 = vpop.f32.mrf.mxu1 }
 0x3a2   : > { %1308 = vst [vmem:[%s3026_s17 + $0x60] sm:$0xff] %v1282_v51  ;;  %v1293_v52 = vadd.f32 %v1989_v54, %v1832_v60 }
 0x3a3   : > { %v1284_v55 = vpop.f32.mrf.mxu1 }
 0x3a4   : > { %1311 = vst [vmem:[%s3026_s17 + $0x78] sm:$0xff] %v1293_v52  ;;  %v1285_v45 = vadd.f32 %v1832_v60, %v1284_v55  ;;  %v1319_v1 = vpack.c.bf16 %v1293_v52, %v1290_v50 }
 0x3a6   : > { %1309 = vst [vmem:[%s3026_s17 + $0x68] sm:$0xff] %v1285_v45  ;;  %v1318_v4 = vpack.c.bf16 %v1285_v45, %v1282_v51 }
 0x3a8   : > { %2018 = vmatprep.mubr.bf16.mxu1 %v1318_v4 }
 0x3a9   : > { %2019 = vmatmul.mubr.bf16.gmra.mxu1 %v1319_v1 }
 0x438   : > { %v2008_v10 = vpop.f32.mrf.mxu1 }
 0x439   : > { %v3047_v58 = vadd.f32 %v2008_v10, %v1841_v36 }
 0x43a   : > { %v1425_v49 = vpop.f32.mrf.mxu1 }
 0x43b   : > { %v3049_v11 = vadd.f32 %v1841_v36, %v1425_v49  ;;  %v1490_v56 = vmul.f32 %v3047_v58, %v3047_v58 }
 0x43c   : > { %v2009_v3 = vpop.f32.mrf.mxu1 }
 0x43d   : > { %v3053_v63 = vadd.f32 %v2009_v3, %v1841_v36  ;;  %1508 = vadd.xlane.f32.xlu0 %v1490_v56  ;;  %v1488_v25 = vmul.f32 %v3049_v11, %v3049_v11 }
 0x43e   : > { %v1428_v53 = vpop.f32.mrf.mxu1 }
 0x43f   : > { %v3055_v6 = vadd.f32 %v1841_v36, %v1428_v53  ;;  %v1491_v44 = vmul.f32 %v3053_v63, %v3053_v63 }
 0x441   : > { %1510 = vadd.xlane.f32.xlu1 %v1491_v44  ;;  %1504 = vadd.xlane.f32.xlu0 %v1488_v25  ;;  %v1489_v8 = vmul.f32 %v3055_v6, %v3055_v6 }
 0x445   : > { %1506 = vadd.xlane.f32.xlu1 %v1489_v8 }
 0x449   : > { %v2012_v16 = vpop.f32.mrf.mxu1 }
 0x44a   : > { %v3063_v40 = vadd.f32 %v2012_v16, %v1841_v36 }
 0x44b   : > { %v1441_v12 = vpop.f32.mrf.mxu1 }
 0x44c   : > { %v3065_v14 = vadd.f32 %v1841_v36, %v1441_v12  ;;  %v1494_v61 = vmul.f32 %v3063_v40, %v3063_v40 }
 0x44d   : > { %v2013_v59 = vpop.f32.mrf.mxu1 }
 0x44e   : > { %v3069_v19 = vadd.f32 %v2013_v59, %v1841_v36  ;;  %1516 = vadd.xlane.f32.xlu0 %v1494_v61  ;;  %v1492_v60 = vmul.f32 %v3065_v14, %v3065_v14 }
 0x44f   : > { %v1444_v62 = vpop.f32.mrf.mxu1 }
 0x450   : > { %v3071_v13 = vadd.f32 %v1841_v36, %v1444_v62  ;;  %v1495_v18 = vmul.f32 %v3069_v19, %v3069_v19 }
 0x452   : > { %1518 = vadd.xlane.f32.xlu1 %v1495_v18  ;;  %1512 = vadd.xlane.f32.xlu0 %v1492_v60  ;;  %v1493_v2 = vmul.f32 %v3071_v13, %v3071_v13 }
 0x456   : > { %1514 = vadd.xlane.f32.xlu1 %v1493_v2 }
 0x458   : > { %v2016_v5 = vpop.f32.mrf.mxu1 }
 0x459   : > { %v3079_v20 = vadd.f32 %v2016_v5, %v1841_v36 }
 0x45a   : > { %v1457_v0 = vpop.f32.mrf.mxu1 }
 0x45b   : > { %v3081_v9 = vadd.f32 %v1841_v36, %v1457_v0  ;;  %v1498_v22 = vmul.f32 %v3079_v20, %v3079_v20 }
 0x45c   : > { %v2017_v7 = vpop.f32.mrf.mxu1 }
 0x45d   : > { %v3085_v26 = vadd.f32 %v2017_v7, %v1841_v36  ;;  %1524 = vadd.xlane.f32.xlu0 %v1498_v22  ;;  %v1496_v30 = vmul.f32 %v3081_v9, %v3081_v9 }
 0x45e   : > { %v1460_v27 = vpop.f32.mrf.mxu1 }
 0x45f   : > { %v3087_v24 = vadd.f32 %v1841_v36, %v1460_v27  ;;  %v1499_v17 = vmul.f32 %v3085_v26, %v3085_v26 }
 0x461   : > { %1526 = vadd.xlane.f32.xlu1 %v1499_v17  ;;  %1520 = vadd.xlane.f32.xlu0 %v1496_v30  ;;  %v1497_v23 = vmul.f32 %v3087_v24, %v3087_v24 }
 0x465   : > { %1522 = vadd.xlane.f32.xlu1 %v1497_v23 }
 0x469   : > { %v2020_v31 = vpop.f32.mrf.mxu1 }
 0x46a   : > { %v3097_v48 = vadd.f32 %v2020_v31, %v1841_v36 }
 0x46b   : > { %v1473_v57 = vpop.f32.mrf.mxu1 }
 0x46c   : > { %v3095_v21 = vadd.f32 %v1841_v36, %v1473_v57  ;;  %v1502_v47 = vmul.f32 %v3097_v48, %v3097_v48 }
 0x46d   : > { %v2021_v34 = vpop.f32.mrf.mxu1 }
 0x46e   : > { %v1500_v38 = vmul.f32 %v3095_v21, %v3095_v21  ;;  %v3103_v35 = vadd.f32 %v2021_v34, %v1841_v36 }
 0x46f   : > { %v1476_v39 = vpop.f32.mrf.mxu1 }
 0x470   : > { %v3101_v28 = vadd.f32 %v1841_v36, %v1476_v39  ;;  %1528 = vadd.xlane.f32.xlu0 %v1500_v38  ;;  %v1503_v42 = vmul.f32 %v3103_v35, %v3103_v35 }
 0x472   : > { %v1501_v29 = vmul.f32 %v3101_v28, %v3101_v28 }
 0x474   : > { %1530 = vadd.xlane.f32.xlu1 %v1501_v29  ;;  %1532 = vadd.xlane.f32.xlu0 %v1502_v47 }
 0x478   : > { %1534 = vadd.xlane.f32.xlu1 %v1503_v42 }
 0x479   : > { %2405 = shalt.err (!%p2402_p13)
}
 0x47a   : > { %s2406_s15 = scalar_lea.hbm %s3117_s19, 2048  ;;  %s2410_s25 = scalar_lea.hbm %s3248_s7, 4096 }
 0x47b   : > { %p2407_p1 = scmp.ne.s32.totalorder %s3117_s19, %s2406_s15  ;;  %p2411_p12 = scmp.lt.s32.totalorder %s3117_s19, %s3248_s7 }
 0x47c   : > { %p2412_p5 = scmp.lt.s32.totalorder %s2410_s25, %s2406_s15 }
 0x47d   : > { %p2408_p4 = pnand %p2407_p1, %p2669_p0 }
 0x47e   : > { %p2413_p3 = por %p2412_p5, %p2411_p12 }
 0x47f   : > { %p2409_p8 = pneg %p2408_p4 }
 0x481   : > { %p2414_p10 = pnand %p2413_p3, %p2409_p8 }
 0x483   : > { %2417 = shalt.err (!%p2414_p10)
}
 0x484   : > { %s2521_s18 = smov 128   ;;  %s2522_s1 = smov 8  }
 0x485   : > { %2036 = dma.vmem_to_hbm [thread:$0]  (%p2669_p0), %s3120_s12, 2048, %s3117_s19, %s1601_s21, %s2521_s18, %s2521_s18, %s2522_s1  }
 0x486   : > { %s3151_s19 = scalar_lea.vmem [#allocation12], %s1798_s5  ;;  %s3189_s3 = scalar_lea.hbm %s3249_s8, %s1860_s22 }
 0x487   : > { %s1635_s5 = sshll.u32 %s3151_s19, 4  ;;  %s1606_s13 = scalar_lea.sflag [#allocation13], %s2699_s23  ;;  %s3191_s5 = int_to_ptr.vmem [resolvable:$true] %s1635_s5 }
 0x488   : > { %s2418_s15 = scalar_lea.vmem %s3191_s5, 2048  ;;  %s2523_s17 = smov [#allocation12]  }
 0x489   : > { %p2419_p2 = scmp.ne.s32.totalorder %s3191_s5, %s2418_s15  ;;  %s2422_s14 = sshll.u32 %s2523_s17, 4  ;;  %s2423_s14 = int_to_ptr.vmem [resolvable:$false] %s2422_s14 }
 0x48a   : > { %s2424_s30 = scalar_lea.vmem %s2423_s14, 4096  ;;  %p2425_p6 = scmp.lt.s32.totalorder %s3191_s5, %s2423_s14 }
 0x48b   : > { %p2420_p11 = pnand %p2419_p2, %p2669_p0  ;;  %p2426_p9 = scmp.lt.s32.totalorder %s2424_s30, %s2418_s15 }
 0x48d   : > { %p2421_p7 = pneg %p2420_p11  ;;  %p2427_p13 = por %p2426_p9, %p2425_p6 }
 0x48f   : > { %p2428_p1 = pnand %p2427_p13, %p2421_p7 }
 0x4c6   : > { %v1509_v15 = vpop.xlane.xlu0 %1508 }
 0x4c7   : > { %v1538_v43 = vmax.f32 %v1509_v15, 1e-24 }
 0x4c9   : > { %2254 = vrsqrt.f32 %v1538_v43 }
 0x4ca   : > { %v1511_v33 = vpop.xlane.xlu1 %1510  ;;  %v1505_v32 = vpop.xlane.xlu0 %1504 }
 0x4cb   : > { %v1539_v37 = vmax.f32 %v1511_v33, 1e-24  ;;  %v1536_v46 = vmax.f32 %v1505_v32, 1e-24 }
 0x4cd   : > { %2256 = vrsqrt.f32 %v1539_v37 }
 0x4ce   : > { %2258 = vrsqrt.f32 %v1536_v46  ;;  %v1507_v50 = vpop.xlane.xlu1 %1506 }
 0x4cf   : > { %v1537_v41 = vmax.f32 %v1507_v50, 1e-24 }
 0x4d1   : > { %2260 = vrsqrt.f32 %v1537_v41 }
 0x4d6   : > { %v2255_v51 = vpop.eup %2254 }
 0x4d7   : > { %v1570_v54 = vmul.f32 %v2255_v51, %v3047_v58  ;;  %v1517_v52 = vpop.xlane.xlu0 %1516 }
 0x4d8   : > { %v1542_v55 = vmax.f32 %v1517_v52, 1e-24 }
 0x4d9   : > { %1586 = vst [vmem:[%s3151_s19 + $0x10] sm:$0xff] %v1570_v54 }
 0x4da   : > { %v2257_v45 = vpop.eup %2256  ;;  %2262 = vrsqrt.f32 %v1542_v55 }
 0x4db   : > { %v2259_v4 = vpop.eup %2258  ;;  %v1571_v1 = vmul.f32 %v2257_v45, %v3053_v63  ;;  %v1519_v36 = vpop.xlane.xlu1 %1518 }
 0x4dc   : > { %v1513_v10 = vpop.xlane.xlu0 %1512  ;;  %v1568_v49 = vmul.f32 %v2259_v4, %v3049_v11  ;;  %v1543_v58 = vmax.f32 %v1519_v36, 1e-24 }
 0x4dd   : > { %v1540_v56 = vmax.f32 %v1513_v10, 1e-24  ;;  %1587 = vst [vmem:[%s3151_s19 + $0x18] sm:$0xff] %v1571_v1 }
 0x4de   : > { %v2261_v3 = vpop.eup %2260  ;;  %1584 = vst [vmem:[%s3151_s19] sm:$0xff] %v1568_v49  ;;  %2264 = vrsqrt.f32 %v1543_v58 }
 0x4df   : > { %v1569_v53 = vmul.f32 %v2261_v3, %v3055_v6  ;;  %2266 = vrsqrt.f32 %v1540_v56  ;;  %v1515_v44 = vpop.xlane.xlu1 %1514 }
 0x4e0   : > { %v1541_v25 = vmax.f32 %v1515_v44, 1e-24 }
 0x4e1   : > { %1585 = vst [vmem:[%s3151_s19 + $0x8] sm:$0xff] %v1569_v53 }
 0x4e2   : > { %2268 = vrsqrt.f32 %v1541_v25 }
 0x4e6   : > { %v1525_v63 = vpop.xlane.xlu0 %1524 }
 0x4e7   : > { %v2263_v8 = vpop.eup %2262  ;;  %v1546_v16 = vmax.f32 %v1525_v63, 1e-24 }
 0x4e8   : > { %v1574_v11 = vmul.f32 %v2263_v8, %v3063_v40 }
 0x4e9   : > { %2270 = vrsqrt.f32 %v1546_v16 }
 0x4ea   : > { %1590 = vst [vmem:[%s3151_s19 + $0x30] sm:$0xff] %v1574_v11  ;;  %v1527_v12 = vpop.xlane.xlu1 %1526  ;;  %v1521_v61 = vpop.xlane.xlu0 %1520 }
 0x4eb   : > { %v2265_v59 = vpop.eup %2264  ;;  %v1547_v62 = vmax.f32 %v1527_v12, 1e-24  ;;  %v1544_v6 = vmax.f32 %v1521_v61, 1e-24 }
 0x4ec   : > { %v2267_v18 = vpop.eup %2266  ;;  %v1575_v60 = vmul.f32 %v2265_v59, %v3069_v19 }
 0x4ed   : > { %v1572_v2 = vmul.f32 %v2267_v18, %v3065_v14  ;;  %2272 = vrsqrt.f32 %v1547_v62 }
 0x4ee   : > { %1591 = vst [vmem:[%s3151_s19 + $0x38] sm:$0xff] %v1575_v60  ;;  %2274 = vrsqrt.f32 %v1544_v6  ;;  %v1523_v5 = vpop.xlane.xlu1 %1522 }
 0x4ef   : > { %v2269_v40 = vpop.eup %2268  ;;  %1588 = vst [vmem:[%s3151_s19 + $0x20] sm:$0xff] %v1572_v2  ;;  %v1545_v0 = vmax.f32 %v1523_v5, 1e-24 }
 0x4f0   : > { %v1573_v22 = vmul.f32 %v2269_v40, %v3071_v13 }
 0x4f1   : > { %2276 = vrsqrt.f32 %v1545_v0 }
 0x4f2   : > { %1589 = vst [vmem:[%s3151_s19 + $0x28] sm:$0xff] %v1573_v22 }
 0x4f6   : > { %v2271_v7 = vpop.eup %2270 }
 0x4f7   : > { %v1578_v27 = vmul.f32 %v2271_v7, %v3079_v20 }
 0x4f9   : > { %1594 = vst [vmem:[%s3151_s19 + $0x50] sm:$0xff] %v1578_v27  ;;  %v1529_v19 = vpop.xlane.xlu0 %1528 }
 0x4fa   : > { %v2273_v14 = vpop.eup %2272  ;;  %v1548_v17 = vmax.f32 %v1529_v19, 1e-24 }
 0x4fb   : > { %v2275_v30 = vpop.eup %2274  ;;  %v1579_v23 = vmul.f32 %v2273_v14, %v3085_v26 }
 0x4fc   : > { %v1576_v31 = vmul.f32 %v2275_v30, %v3081_v9  ;;  %2278 = vrsqrt.f32 %v1548_v17 }
 0x4fd   : > { %1595 = vst [vmem:[%s3151_s19 + $0x58] sm:$0xff] %v1579_v23  ;;  %v1531_v13 = vpop.xlane.xlu1 %1530  ;;  %v1533_v57 = vpop.xlane.xlu0 %1532 }
 0x4fe   : > { %v2277_v34 = vpop.eup %2276  ;;  %1592 = vst [vmem:[%s3151_s19 + $0x40] sm:$0xff] %v1576_v31  ;;  %v1549_v38 = vmax.f32 %v1531_v13, 1e-24  ;;  %v1550_v20 = vmax.f32 %v1533_v57, 1e-24 }
 0x4ff   : > { %v1577_v39 = vmul.f32 %v2277_v34, %v3087_v24 }
 0x500   : > { %2280 = vrsqrt.f32 %v1549_v38 }
 0x501   : > { %1593 = vst [vmem:[%s3151_s19 + $0x48] sm:$0xff] %v1577_v39  ;;  %2282 = vrsqrt.f32 %v1550_v20  ;;  %v1535_v26 = vpop.xlane.xlu1 %1534 }
 0x502   : > { %v1551_v9 = vmax.f32 %v1535_v26, 1e-24 }
 0x504   : > { %2284 = vrsqrt.f32 %v1551_v9 }
 0x509   : > { %v2279_v29 = vpop.eup %2278 }
 0x50a   : > { %v1580_v47 = vmul.f32 %v2279_v29, %v3095_v21 }
 0x50c   : > { %1596 = vst [vmem:[%s3151_s19 + $0x60] sm:$0xff] %v1580_v47 }
 0x50d   : > { %v2281_v42 = vpop.eup %2280 }
 0x50e   : > { %v2283_v15 = vpop.eup %2282  ;;  %v1581_v43 = vmul.f32 %v2281_v42, %v3101_v28 }
 0x50f   : > { %v1582_v24 = vmul.f32 %v2283_v15, %v3097_v48 }
 0x510   : > { %1597 = vst [vmem:[%s3151_s19 + $0x68] sm:$0xff] %v1581_v43 }
 0x511   : > { %v2285_v33 = vpop.eup %2284  ;;  %1598 = vst [vmem:[%s3151_s19 + $0x70] sm:$0xff] %v1582_v24 }
 0x512   : > { %v1583_v32 = vmul.f32 %v2285_v33, %v3103_v35 }
 0x514   : > { %1599 = vst [vmem:[%s3151_s19 + $0x78] sm:$0xff] %v1583_v32 }
 0x515   : > { %2431 = shalt.err (!%p2428_p1)
}
 0x516   : > { %s2432_s22 = scalar_lea.hbm %s3189_s3, 2048  ;;  %s2436_s26 = scalar_lea.hbm %s3249_s8, 4096 }
 0x517   : > { %p2433_p4 = scmp.ne.s32.totalorder %s3189_s3, %s2432_s22  ;;  %p2437_p5 = scmp.lt.s32.totalorder %s3189_s3, %s3249_s8 }
 0x518   : > { %p2438_p3 = scmp.lt.s32.totalorder %s2436_s26, %s2432_s22 }
 0x519   : > { %p2434_p8 = pnand %p2433_p4, %p2669_p0 }
 0x51a   : > { %p2439_p10 = por %p2438_p3, %p2437_p5 }
 0x51b   : > { %p2435_p12 = pneg %p2434_p8 }
 0x51d   : > { %p2440_p2 = pnand %p2439_p10, %p2435_p12 }
 0x51f   : > { %2443 = shalt.err (!%p2440_p2)
}
 0x520   : > { %2037 = dma.vmem_to_hbm [thread:$0]  (%p2669_p0), %s3191_s5, 2048, %s3189_s3, %s1606_s13, %s2521_s18, %s2521_s18, %s2522_s1  }
 0x521 PF: > { %s1650_s12 = sand.u32 1, %s2490_s27   ;;  %p3273_p11 = scmp.ne.s32.totalorder %s3261_s16, 0 }
 0x522   : > { %p3274_p7 = scmp.ge.s32.totalorder %s2510_s10, 2  ;;  %s1651_s21 = scalar_lea.sflag [#allocation5], %s1650_s12 }
 0x524   : > { %p2055_p6 = pnand %p3274_p7, %p3273_p11 }
 0x526   : > { %p2056_p9 = pneg %p2055_p6 }
 0x528   : > { %2481 = dma.done.wait (%p2056_p9), %s1651_s21, 2048  }
 0x529   : > { %2483 = vsyncadd (%p2056_p9), %s1651_s21, 4294965248  ;;  %s1660_s15 = scalar_lea.sflag [#allocation13], %s1650_s12 }
 0x52a   : > { %2485 = dma.done.wait (%p2056_p9), %s1660_s15, 2048  }
 0x52b   : > { %2487 = vsyncadd (%p2056_p9), %s1660_s15, 4294965248  ;;  %s30_s10 = sadd.s32 1, %s2510_s10   ;;  %s3275_s20 = sld [smem:[#allocation19_spill]] }
 0x52c   : > { %p27_p13 = scmp.ge.s32.totalorder %s30_s10, 4   ;;  %s3276_s27 = smov %s2494_s28 }
 0x52d   : > { %s3277_s28 = smov %s2498_s29  ;;  %s3278_s29 = smov %s2681_s11 }
 0x52e   : > { %s3279_s30 = smov %s2506_s9  ;;  %29 = sbr.rel (!%p27_p13) target bundleno = 14 (0xe), region = 131 }
 0x531   : > { %s3280_s9 = smov %s3275_s20 }
 0x533   :  { %1665 = vsyncpa [#allocation4], 1 }
 0x534   :  { %1667 = vsyncpa [#allocation4 + $0x1], 1 }
 0x535   :  { %1668 = vsyncpa [#allocation7], 1 }
 0x536   :  { %1669 = vsyncpa [#allocation10], 1 }
 0x537   :  { %1670 = vsyncpa [#allocation5], 1 }
 0x538   :  { %1672 = vsyncpa [#allocation5 + $0x1], 1 }
 0x539   :  { %1673 = vsyncpa [#allocation13], 1 }
 0x53a   :  { %1675 = vsyncpa [#allocation13 + $0x1], 1 }

// kernel: _forward_impl.3
= control target key start
LH: loop header
LB: loop body
LE: loop exit
PB: predicated region body
PF: predicated region fallthrough
CT: control target
= control target key end

     0   :  { %14 = vsyncpa [#allocation4], 0  ;;  %s2838_s0 = inlined_call_operand.vmem [shape: f32[256,128], index: 0, kind: input, shape index: {}]   ;;  %s2839_s1 = inlined_call_operand.vmem [shape: bf16[128,128], index: 1, kind: input, shape index: {}]   ;;  %s2840_s2 = inlined_call_operand.vmem [shape: f32[3,128], index: 2, kind: input, shape index: {}]   ;;  %s2841_s3 = inlined_call_operand.vmem [shape: bf16[128,128], index: 3, kind: input, shape index: {}]   ;;  %s2842_s4 = inlined_call_operand.vmem [shape: f32[1,128], index: 4, kind: input, shape index: {}]   ;;  %s2843_s5 = inlined_call_operand.vmem [shape: bf16[128,128], index: 5, kind: input, shape index: {}]   ;;  %s2844_s6 = inlined_call_operand.vmem [shape: f32[1,128], index: 6, kind: input, shape index: {}]   ;;  %s2845_s7 = inlined_call_operand.hbm [shape: f32[256,128], index: 7, kind: output, shape index: {0}]   ;;  %s2846_s8 = inlined_call_operand.hbm [shape: f32[256,128], index: 8, kind: output, shape index: {1}]  }
   0x1   :  { %16 = vsyncpa [#allocation4 + $0x1], 0 }
   0x2   :  { %17 = vsyncpa [#allocation6], 0 }
   0x3   :  { %19 = vsyncpa [#allocation6 + $0x1], 0  ;;  %s2215_s27 = smov 0   ;;  %s2217_s28 = smov 0  }
   0x4   :  { %s2219_s29 = smov 0   ;;  %s2221_s30 = smov 0  }
   0x5   :  { %s2223_s9 = smov 0   ;;  %s2225_s10 = smov 0  }
   0x6 LB: > { %s1622_s11 = sadd.s32 4294967295, %s2164_s10   ;;  %s1623_s12 = sadd.s32 4294967294, %s2164_s10   ;;  %s2164_s10 = sphi %s2225_s10, %s25_s10   ;;  %s2160_s9 = sphi %s2223_s9, %s2860_s9   ;;  %s2156_s30 = sphi %s2221_s30, %s2859_s30   ;;  %s2152_s29 = sphi %s2219_s29, %s2858_s29   ;;  %s2148_s28 = sphi %s2217_s28, %s2857_s28   ;;  %s2144_s27 = sphi %s2215_s27, %s2856_s27  }
   0x7   : > { %s37_s13 = sadd.s32 1, %s2160_s9  ;;  %s203_s14 = sadd.s32 1, %s2152_s29 }
   0x8   : > { %p39_p0 = scmp.ge.s32.totalorder %s37_s13, 2  ;;  %p213_p1 = scmp.ne.s32.totalorder %s2152_s29, %s2148_s28 }
   0x9   : > { %p214_p2 = scmp.eq.s32.totalorder %s1622_s11, 1  ;;  %p219_p3 = scmp.ne.s32.totalorder %s2148_s28, %s2144_s27 }
   0xa   : > { %s2862_s13 = smov (%p39_p0, %s37_s13), 0  ;;  %p220_p5 = scmp.eq.s32.totalorder %s1623_s12, 1 }
   0xb   : > { %p2255_p4 = por %p214_p2, %p213_p1  ;;  %s200_s16 = ssub.s32 %s2160_s9, %s2862_s13 }
   0xc   : > { %p1627_p6 = scmp.ge.s32.totalorder %s2164_s10, 1  ;;  %p201_p7 = scmp.eq.s32.totalorder %s200_s16, 0 }
   0xd   : > { %p2262_p8 = por %p220_p5, %p219_p3  ;;  %p300_p9 = scmp.lt.s32.totalorder %s2164_s10, 3 }
   0xe   : > { %s2268_s18 = scalar_select %p201_p7, %s2152_s29, %s203_s14  }
   0xf   : > { %p301_p10 = pnand %p1627_p6, %p300_p9 }
  0x10   : > { %s1630_s21 = sshll.u32 (!%p301_p10), %s2156_s30, 4  ;;  %s2166_s19 = smov (!%p301_p10), [#allocation3]  }
  0x11   : > { %304 = sbr.rel (%p301_p10) target bundleno = 1209 (0x4b9), region = 48  ;;  %p348_p11 = scmp.lt.s32.totalorder (!%p301_p10), %s1630_s21, 31 }
  0x12   : > { %s2062_s20 = sshll.u32 (!%p301_p10), %s2166_s19, 4  ;;  %s2063_s20 = int_to_ptr.vmem [resolvable:$false] %s2062_s20 }
  0x16   : > { %v1906_v0 = vld [vmem:[%s2839_s1 + $0x38] sm:$0xff]   ;;  %v1907_v1 = vld [vmem:[%s2839_s1 + $0x30] sm:$0xff]   ;;  %s2864_s21 = smov (!%p348_p11, %s1630_s21), 31  ;;  %v1908_v2 = vld [vmem:[%s2839_s1 + $0x28] sm:$0xff]   ;;  %v638_v32 = vlaneseq }
  0x17   : > { %1732 = vmatprep.subr.bf16.mxu0 %v1906_v0  ;;  %s1631_s26 = sshll.u32 %s2864_s21, 3  ;;  %v1909_v3 = vld [vmem:[%s2839_s1 + $0x20] sm:$0xff]   ;;  %v1910_v7 = vld [vmem:[%s2839_s1 + $0x18] sm:$0xff]   ;;  %v1911_v8 = vld [vmem:[%s2839_s1 + $0x10] sm:$0xff]   ;;  %s2847_s21 = sshll.u32 %s2156_s30, 11 }
  0x18   : > { %1733 = vmatpush3.bf16.msra.mxu0 %v1906_v0  ;;  %s2283_s14 = scalar_lea.vmem %s2838_s0, %s1631_s26  ;;  %v1912_v9 = vld [vmem:[%s2839_s1 + $0x8] sm:$0xff]   ;;  %v1913_v10 = vld [vmem:[%s2839_s1] sm:$0xff]   ;;  %v2316_v33 = vshrl.u32 %v638_v32, 7  ;;  %s2616_s26 = sand.u32 1, %s2148_s28  }
  0x19   : > { %1734 = vmatprep.subr.bf16.mxu0 %v1907_v1  ;;  %v385_v4 = vld [vmem:[%s2283_s14] sm:$0xff]  ;;  %v386_v5 = vld [vmem:[%s2283_s14 + $0x8] sm:$0xff]  ;;  %v387_v11 = vld [vmem:[%s2283_s14 + $0x10] sm:$0xff]  ;;  %s2848_s11 = sshll.u32 %s2616_s26, 7  ;;  %s2716_s25 = scalar_lea.hbm %s2845_s7, %s2847_s21 }
  0x1a   : > { %v401_v6 = vpack.c.bf16 %v386_v5, %v385_v4  ;;  %v388_v12 = vld [vmem:[%s2283_s14 + $0x18] sm:$0xff]  ;;  %v389_v13 = vld [vmem:[%s2283_s14 + $0x20] sm:$0xff]  ;;  %v390_v14 = vld [vmem:[%s2283_s14 + $0x28] sm:$0xff]  ;;  %v640_v34 = vsub.s32 0, %v2316_v33 }
  0x1b   : > { %v402_v15 = vpack.c.bf16 %v388_v12, %v387_v11  ;;  %v403_v16 = vpack.c.bf16 %v390_v14, %v389_v13  ;;  %v391_v17 = vld [vmem:[%s2283_s14 + $0x30] sm:$0xff]  ;;  %v392_v18 = vld [vmem:[%s2283_s14 + $0x38] sm:$0xff]  ;;  %v393_v19 = vld [vmem:[%s2283_s14 + $0x40] sm:$0xff] }
  0x1c   : > { %1735 = vmatpush3.bf16.msra.mxu0 %v1907_v1  ;;  %1748 = vmatprep.mubr.bf16.mxu0 %v401_v6  ;;  %v394_v20 = vld [vmem:[%s2283_s14 + $0x48] sm:$0xff]  ;;  %v404_v21 = vpack.c.bf16 %v392_v18, %v391_v17  ;;  %v395_v23 = vld [vmem:[%s2283_s14 + $0x50] sm:$0xff]  ;;  %v396_v24 = vld [vmem:[%s2283_s14 + $0x58] sm:$0xff] }
  0x1d   : > { %1736 = vmatprep.subr.bf16.mxu0 %v1908_v2  ;;  %v405_v22 = vpack.c.bf16 %v394_v20, %v393_v19  ;;  %v397_v25 = vld [vmem:[%s2283_s14 + $0x60] sm:$0xff]  ;;  %v398_v26 = vld [vmem:[%s2283_s14 + $0x68] sm:$0xff]  ;;  %v406_v27 = vpack.c.bf16 %v396_v24, %v395_v23  ;;  %v399_v29 = vld [vmem:[%s2283_s14 + $0x70] sm:$0xff] }
  0x1e   : > { %v407_v28 = vpack.c.bf16 %v398_v26, %v397_v25  ;;  %v400_v30 = vld [vmem:[%s2283_s14 + $0x78] sm:$0xff]  ;;  %v2322_v35 = vld [vmem:[%s2840_s2] sm:$0x7]  ;;  %s2624_s14 = scalar_lea.vmem [#allocation3], %s2848_s11 }
  0x1f   : > { %v408_v31 = vpack.c.bf16 %v400_v30, %v399_v29  ;;  %v641_v36 = vrot.slane %v2322_v35, %v640_v34  ;;  %s1486_s22 = sshll.u32 %s2624_s14, 4  ;;  %s2718_s22 = int_to_ptr.vmem [resolvable:$true] %s1486_s22 }
  0x20   : > { %1737 = vmatpush3.bf16.msra.mxu0 %v1908_v2  ;;  %s2058_s16 = scalar_lea.vmem %s2718_s22, 2048  ;;  %p2065_p1 = scmp.lt.s32.totalorder %s2718_s22, %s2063_s20 }
  0x21   : > { %1738 = vmatprep.subr.bf16.mxu0 %v1909_v3  ;;  %p2059_p12 = scmp.ne.s32.totalorder %s2718_s22, %s2058_s16 }
  0x23   : > { %p2060_p13 = pnand %p2059_p12, %p2255_p4 }
  0x24   : > { %1739 = vmatpush3.bf16.msra.mxu0 %v1909_v3 }
  0x25   : > { %1740 = vmatprep.subr.bf16.mxu0 %v1910_v7  ;;  %p2061_p0 = pneg %p2060_p13 }
  0x28   : > { %1741 = vmatpush3.bf16.msra.mxu0 %v1910_v7 }
  0x29   : > { %1742 = vmatprep.subr.bf16.mxu0 %v1911_v8 }
  0x2c   : > { %1743 = vmatpush3.bf16.msra.mxu0 %v1911_v8 }
  0x2d   : > { %1744 = vmatprep.subr.bf16.mxu0 %v1912_v9 }
  0x30   : > { %1745 = vmatpush3.bf16.msra.mxu0 %v1912_v9 }
  0x31   : > { %1746 = vmatprep.subr.bf16.mxu0 %v1913_v10 }
  0x34   : > { %1747 = vmatpush3.bf16.msra.mxu0 %v1913_v10 }
  0x37   : > { %1749 = vmatmul.mubr.bf16.vlgmr.msra.gmra.mxu0 %v402_v15 }
  0x38   : > { %1752 = vmatprep.mubr.bf16.mxu0 %v403_v16 }
  0x3f   : > { %1753 = vmatmul.mubr.bf16.gmra.mxu0 %v404_v21 }
  0x40   : > { %1756 = vmatprep.mubr.bf16.mxu0 %v405_v22 }
  0x47   : > { %1757 = vmatmul.mubr.bf16.gmra.mxu0 %v406_v27 }
  0x48   : > { %1760 = vmatprep.mubr.bf16.mxu0 %v407_v28 }
  0x4f   : > { %1761 = vmatmul.mubr.bf16.gmra.mxu0 %v408_v31 }
  0xf7   : > { %v1750_v37 = vpop.f32.mrf.mxu0 }
  0xf8   : > { %v644_v38 = vadd.f32 %v1750_v37, %v641_v36 }
  0xf9   : > { %v523_v39 = vpop.f32.mrf.mxu0 }
  0xfa   : > { %v642_v40 = vadd.f32 %v641_v36, %v523_v39  ;;  %662 = vadd.xlane.f32.xlu1 %v644_v38 }
  0xfb   : > { %v1751_v41 = vpop.f32.mrf.mxu0 }
  0xfc   : > { %v645_v42 = vadd.f32 %v1751_v41, %v641_v36  ;;  %658 = vadd.xlane.f32.xlu0 %v642_v40 }
  0xfd   : > { %v526_v43 = vpop.f32.mrf.mxu0 }
  0xfe   : > { %v643_v44 = vadd.f32 %v641_v36, %v526_v43  ;;  %664 = vadd.xlane.f32.xlu1 %v645_v42 }
  0xff   : > { %v1754_v45 = vpop.f32.mrf.mxu0 }
 0x100   : > { %660 = vadd.xlane.f32.xlu0 %v643_v44  ;;  %v648_v50 = vadd.f32 %v1754_v45, %v641_v36 }
 0x101   : > { %v539_v46 = vpop.f32.mrf.mxu0 }
 0x102   : > { %v646_v47 = vadd.f32 %v641_v36, %v539_v46 }
 0x103   : > { %v1755_v48 = vpop.f32.mrf.mxu0 }
 0x104   : > { %666 = vadd.xlane.f32.xlu0 %v646_v47  ;;  %v649_v54 = vadd.f32 %v1755_v48, %v641_v36 }
 0x105   : > { %v542_v49 = vpop.f32.mrf.mxu0 }
 0x106   : > { %v647_v51 = vadd.f32 %v641_v36, %v542_v49 }
 0x107   : > { %v1758_v52 = vpop.f32.mrf.mxu0 }
 0x108   : > { %670 = vadd.xlane.f32.xlu0 %v648_v50  ;;  %668 = vadd.xlane.f32.xlu1 %v647_v51  ;;  %v2325_v58 = vadd.f32 %v1758_v52, %v641_v36 }
 0x109   : > { %v555_v53 = vpop.f32.mrf.mxu0 }
 0x10a   : > { %v650_v55 = vadd.f32 %v641_v36, %v555_v53 }
 0x10b   : > { %v1759_v56 = vpop.f32.mrf.mxu0 }
 0x10c   : > { %672 = vadd.xlane.f32.xlu1 %v649_v54  ;;  %674 = vadd.xlane.f32.xlu0 %v650_v55  ;;  %v2331_v62 = vadd.f32 %v1759_v56, %v641_v36 }
 0x10d   : > { %v558_v57 = vpop.f32.mrf.mxu0 }
 0x10e   : > { %v2327_v59 = vadd.f32 %v641_v36, %v558_v57 }
 0x10f   : > { %v1762_v60 = vpop.f32.mrf.mxu0 }
 0x110   : > { %678 = vadd.xlane.f32.xlu0 %v2325_v58  ;;  %676 = vadd.xlane.f32.xlu1 %v2327_v59  ;;  %v2337_v2 = vadd.f32 %v1762_v60, %v641_v36 }
 0x111   : > { %v571_v61 = vpop.f32.mrf.mxu0 }
 0x112   : > { %v2333_v63 = vadd.f32 %v641_v36, %v571_v61 }
 0x113   : > { %v1763_v0 = vpop.f32.mrf.mxu0 }
 0x114   : > { %680 = vadd.xlane.f32.xlu1 %v2331_v62  ;;  %682 = vadd.xlane.f32.xlu0 %v2333_v63  ;;  %v2343_v4 = vadd.f32 %v1763_v0, %v641_v36 }
 0x115   : > { %v574_v1 = vpop.f32.mrf.mxu0 }
 0x116   : > { %v2339_v3 = vadd.f32 %v641_v36, %v574_v1 }
 0x118   : > { %686 = vadd.xlane.f32.xlu0 %v2337_v2  ;;  %684 = vadd.xlane.f32.xlu1 %v2339_v3 }
 0x11c   : > { %688 = vadd.xlane.f32.xlu1 %v2343_v4 }
 0x183   : > { %v663_v5 = vpop.xlane.xlu1 %662 }
 0x184   : > { %v693_v7 = vmul.f32 0.0078125, %v663_v5 }
 0x185   : > { %v659_v6 = vpop.xlane.xlu0 %658 }
 0x186   : > { %v691_v8 = vmul.f32 0.0078125, %v659_v6  ;;  %v2348_v12 = vsub.f32 %v644_v38, %v693_v7 }
 0x187   : > { %v665_v9 = vpop.xlane.xlu1 %664 }
 0x188   : > { %v2346_v10 = vsub.f32 %v642_v40, %v691_v8  ;;  %v694_v13 = vmul.f32 0.0078125, %v665_v9  ;;  %v725_v20 = vmul.f32 %v2348_v12, %v2348_v12  ;;  %v1915_v9 = vld [vmem:[%s2841_s3 + $0x30] sm:$0xff]  }
 0x189   : > { %v661_v11 = vpop.xlane.xlu0 %660 }
 0x18a   : > { %v692_v14 = vmul.f32 0.0078125, %v661_v11  ;;  %v723_v15 = vmul.f32 %v2346_v10, %v2346_v10  ;;  %v2354_v18 = vsub.f32 %v645_v42, %v694_v13  ;;  %v1917_v11 = vld [vmem:[%s2841_s3 + $0x20] sm:$0xff]   ;;  %v1918_v13 = vld [vmem:[%s2841_s3 + $0x18] sm:$0xff]  }
 0x18c   : > { %v2352_v16 = vsub.f32 %v643_v44, %v692_v14  ;;  %739 = vadd.xlane.f32.xlu0 %v723_v15  ;;  %v726_v28 = vmul.f32 %v2354_v18, %v2354_v18  ;;  %v1919_v14 = vld [vmem:[%s2841_s3 + $0x10] sm:$0xff]   ;;  %v1920_v15 = vld [vmem:[%s2841_s3 + $0x8] sm:$0xff]  }
 0x18d   : > { %v667_v17 = vpop.xlane.xlu0 %666 }
 0x18e   : > { %v695_v19 = vmul.f32 0.0078125, %v667_v17  ;;  %v724_v21 = vmul.f32 %v2352_v16, %v2352_v16  ;;  %v1921_v17 = vld [vmem:[%s2841_s3] sm:$0xff]  }
 0x190   : > { %v2360_v22 = vsub.f32 %v646_v47, %v695_v19  ;;  %743 = vadd.xlane.f32.xlu0 %v725_v20  ;;  %741 = vadd.xlane.f32.xlu1 %v724_v21  ;;  %v2444_v19 = vld [vmem:[%s2843_s5 + $0x38] sm:$0xff]   ;;  %v2449_v20 = vld [vmem:[%s2843_s5 + $0x30] sm:$0xff]   ;;  %v2458_v21 = vld [vmem:[%s2843_s5 + $0x28] sm:$0xff]  }
 0x191   : > { %v671_v23 = vpop.xlane.xlu0 %670  ;;  %v669_v24 = vpop.xlane.xlu1 %668  ;;  %1796 = vmatprep.subr.bf16.mxu0 %v2444_v19 }
 0x192   : > { %v697_v25 = vmul.f32 0.0078125, %v671_v23  ;;  %v696_v26 = vmul.f32 0.0078125, %v669_v24  ;;  %v727_v27 = vmul.f32 %v2360_v22, %v2360_v22  ;;  %1797 = vmatpush3.bf16.msra.mxu0 %v2444_v19  ;;  %v2465_v23 = vld [vmem:[%s2843_s5 + $0x20] sm:$0xff]   ;;  %v2472_v24 = vld [vmem:[%s2843_s5 + $0x18] sm:$0xff]  }
 0x193   : > { %1798 = vmatprep.subr.bf16.mxu0 %v2449_v20 }
 0x194   : > { %v2366_v29 = vsub.f32 %v648_v50, %v697_v25  ;;  %v2368_v30 = vsub.f32 %v647_v51, %v696_v26  ;;  %747 = vadd.xlane.f32.xlu0 %v727_v27  ;;  %745 = vadd.xlane.f32.xlu1 %v726_v28 }
 0x195   : > { %v673_v31 = vpop.xlane.xlu1 %672  ;;  %v675_v32 = vpop.xlane.xlu0 %674 }
 0x196   : > { %v698_v34 = vmul.f32 0.0078125, %v673_v31  ;;  %v699_v36 = vmul.f32 0.0078125, %v675_v32  ;;  %v729_v37 = vmul.f32 %v2366_v29, %v2366_v29  ;;  %v728_v38 = vmul.f32 %v2368_v30, %v2368_v30  ;;  %1799 = vmatpush3.bf16.msra.mxu0 %v2449_v20 }
 0x197   : > { %1800 = vmatprep.subr.bf16.mxu0 %v2458_v21 }
 0x198   : > { %v2374_v39 = vsub.f32 %v649_v54, %v698_v34  ;;  %v2376_v40 = vsub.f32 %v650_v55, %v699_v36  ;;  %751 = vadd.xlane.f32.xlu0 %v729_v37  ;;  %749 = vadd.xlane.f32.xlu1 %v728_v38 }
 0x199   : > { %v679_v41 = vpop.xlane.xlu0 %678  ;;  %v677_v42 = vpop.xlane.xlu1 %676 }
 0x19a   : > { %v701_v43 = vmul.f32 0.0078125, %v679_v41  ;;  %v700_v44 = vmul.f32 0.0078125, %v677_v42  ;;  %v731_v45 = vmul.f32 %v2376_v40, %v2376_v40  ;;  %v730_v46 = vmul.f32 %v2374_v39, %v2374_v39  ;;  %1801 = vmatpush3.bf16.msra.mxu0 %v2458_v21 }
 0x19b   : > { %1802 = vmatprep.subr.bf16.mxu0 %v2465_v23 }
 0x19c   : > { %v2383_v47 = vsub.f32 %v2325_v58, %v701_v43  ;;  %v2386_v48 = vsub.f32 %v2327_v59, %v700_v44  ;;  %755 = vadd.xlane.f32.xlu0 %v731_v45  ;;  %753 = vadd.xlane.f32.xlu1 %v730_v46 }
 0x19d   : > { %v681_v49 = vpop.xlane.xlu1 %680  ;;  %v683_v50 = vpop.xlane.xlu0 %682 }
 0x19e   : > { %v702_v51 = vmul.f32 0.0078125, %v681_v49  ;;  %v703_v52 = vmul.f32 0.0078125, %v683_v50  ;;  %v733_v53 = vmul.f32 %v2383_v47, %v2383_v47  ;;  %v732_v54 = vmul.f32 %v2386_v48, %v2386_v48  ;;  %1803 = vmatpush3.bf16.msra.mxu0 %v2465_v23 }
 0x19f   : > { %1804 = vmatprep.subr.bf16.mxu0 %v2472_v24  ;;  %v837_v50 = vsub.s32 1, %v2316_v33 }
 0x1a0   : > { %v2393_v55 = vsub.f32 %v2331_v62, %v702_v51  ;;  %v2396_v56 = vsub.f32 %v2333_v63, %v703_v52  ;;  %759 = vadd.xlane.f32.xlu0 %v733_v53  ;;  %757 = vadd.xlane.f32.xlu1 %v732_v54 }
 0x1a1   : > { %v687_v57 = vpop.xlane.xlu0 %686  ;;  %v685_v58 = vpop.xlane.xlu1 %684 }
 0x1a2   : > { %v705_v59 = vmul.f32 0.0078125, %v687_v57  ;;  %v704_v60 = vmul.f32 0.0078125, %v685_v58  ;;  %v735_v61 = vmul.f32 %v2396_v56, %v2396_v56  ;;  %v734_v0 = vmul.f32 %v2393_v55, %v2393_v55  ;;  %1805 = vmatpush3.bf16.msra.mxu0 %v2472_v24 }
 0x1a3   : > { %v857_v57 = vsub.s32 2, %v2316_v33 }
 0x1a4   : > { %v2403_v1 = vsub.f32 %v2337_v2, %v705_v59  ;;  %v2406_v62 = vsub.f32 %v2339_v3, %v704_v60  ;;  %763 = vadd.xlane.f32.xlu0 %v735_v61  ;;  %761 = vadd.xlane.f32.xlu1 %v734_v0  ;;  %v1914_v3 = vld [vmem:[%s2841_s3 + $0x38] sm:$0xff]   ;;  %v2480_v60 = vrot.slane %v2322_v35, %v837_v50 }
 0x1a5   : > { %v689_v63 = vpop.xlane.xlu1 %688  ;;  %1764 = vmatprep.subr.bf16.mxu1 %v1914_v3 }
 0x1a6   : > { %v706_v5 = vmul.f32 0.0078125, %v689_v63  ;;  %v737_v6 = vmul.f32 %v2403_v1, %v2403_v1  ;;  %v736_v7 = vmul.f32 %v2406_v62, %v2406_v62  ;;  %1765 = vmatpush3.bf16.msra.mxu1 %v1914_v3 }
 0x1a7   : > { %1766 = vmatprep.subr.bf16.mxu1 %v1915_v9 }
 0x1a8   : > { %v2413_v8 = vsub.f32 %v2343_v4, %v706_v5  ;;  %767 = vadd.xlane.f32.xlu0 %v737_v6  ;;  %765 = vadd.xlane.f32.xlu1 %v736_v7  ;;  %v1916_v4 = vld [vmem:[%s2841_s3 + $0x28] sm:$0xff]  }
 0x1aa   : > { %v738_v2 = vmul.f32 %v2413_v8, %v2413_v8  ;;  %1767 = vmatpush3.bf16.msra.mxu1 %v1915_v9 }
 0x1ab   : > { %1768 = vmatprep.subr.bf16.mxu1 %v1916_v4 }
 0x1ac   : > { %769 = vadd.xlane.f32.xlu1 %v738_v2  ;;  %v2484_v2 = vrot.slane %v2322_v35, %v857_v57 }
 0x1ae   : > { %1769 = vmatpush3.bf16.msra.mxu1 %v1916_v4 }
 0x1af   : > { %1770 = vmatprep.subr.bf16.mxu1 %v1917_v11 }
 0x1b2   : > { %1771 = vmatpush3.bf16.msra.mxu1 %v1917_v11 }
 0x1b3   : > { %1772 = vmatprep.subr.bf16.mxu1 %v1918_v13 }
 0x1b6   : > { %1773 = vmatpush3.bf16.msra.mxu1 %v1918_v13 }
 0x1b7   : > { %1774 = vmatprep.subr.bf16.mxu1 %v1919_v14 }
 0x1ba   : > { %1775 = vmatpush3.bf16.msra.mxu1 %v1919_v14 }
 0x1bb   : > { %1776 = vmatprep.subr.bf16.mxu1 %v1920_v15 }
 0x1be   : > { %1777 = vmatpush3.bf16.msra.mxu1 %v1920_v15 }
 0x1bf   : > { %1778 = vmatprep.subr.bf16.mxu1 %v1921_v17 }
 0x1c2   : > { %1779 = vmatpush3.bf16.msra.mxu1 %v1921_v17 }
 0x1c3   : > { %1828 = vmatprep.subr.bf16.mxu1 %v2444_v19 }
 0x215   : > { %v740_v25 = vpop.xlane.xlu0 %739 }
 0x216   : > { %v771_v26 = vmul.f32 0.0078125, %v740_v25 }
 0x218   : > { %v787_v27 = vadd.f32 1e-05, %v771_v26 }
 0x219   : > { %v744_v28 = vpop.xlane.xlu0 %743  ;;  %v742_v31 = vpop.xlane.xlu1 %741 }
 0x21a   : > { %1930 = vrsqrt.f32 %v787_v27  ;;  %v773_v32 = vmul.f32 0.0078125, %v744_v28  ;;  %v772_v34 = vmul.f32 0.0078125, %v742_v31 }
 0x21c   : > { %v789_v36 = vadd.f32 1e-05, %v773_v32  ;;  %v788_v37 = vadd.f32 1e-05, %v772_v34 }
 0x21d   : > { %v748_v38 = vpop.xlane.xlu0 %747  ;;  %v746_v41 = vpop.xlane.xlu1 %745 }
 0x21e   : > { %1932 = vrsqrt.f32 %v789_v36  ;;  %v775_v42 = vmul.f32 0.0078125, %v748_v38  ;;  %v774_v43 = vmul.f32 0.0078125, %v746_v41 }
 0x21f   : > { %1934 = vrsqrt.f32 %v788_v37 }
 0x220   : > { %v791_v44 = vadd.f32 1e-05, %v775_v42  ;;  %v790_v45 = vadd.f32 1e-05, %v774_v43 }
 0x221   : > { %v752_v46 = vpop.xlane.xlu0 %751  ;;  %v750_v49 = vpop.xlane.xlu1 %749 }
 0x222   : > { %1936 = vrsqrt.f32 %v791_v44  ;;  %v777_v51 = vmul.f32 0.0078125, %v752_v46  ;;  %v776_v52 = vmul.f32 0.0078125, %v750_v49 }
 0x223   : > { %1938 = vrsqrt.f32 %v790_v45 }
 0x224   : > { %v793_v53 = vadd.f32 1e-05, %v777_v51  ;;  %v792_v54 = vadd.f32 1e-05, %v776_v52 }
 0x225   : > { %v756_v58 = vpop.xlane.xlu0 %755  ;;  %v754_v59 = vpop.xlane.xlu1 %753 }
 0x226   : > { %1940 = vrsqrt.f32 %v793_v53  ;;  %v779_v61 = vmul.f32 0.0078125, %v756_v58  ;;  %v778_v0 = vmul.f32 0.0078125, %v754_v59 }
 0x227   : > { %v1931_v63 = vpop.eup %1930  ;;  %1942 = vrsqrt.f32 %v792_v54 }
 0x228   : > { %v795_v5 = vadd.f32 1e-05, %v779_v61  ;;  %v794_v6 = vadd.f32 1e-05, %v778_v0  ;;  %v819_v7 = vmul.f32 %v1931_v63, %v2346_v10 }
 0x229   : > { %v760_v3 = vpop.xlane.xlu0 %759  ;;  %v758_v9 = vpop.xlane.xlu1 %757 }
 0x22a   : > { %1944 = vrsqrt.f32 %v795_v5  ;;  %v781_v33 = vmul.f32 0.0078125, %v760_v3  ;;  %v780_v4 = vmul.f32 0.0078125, %v758_v9  ;;  %v839_v11 = vmul.f32 %v2480_v60, %v819_v7 }
 0x22b   : > { %v1933_v13 = vpop.eup %1932  ;;  %1946 = vrsqrt.f32 %v794_v6 }
 0x22c   : > { %v1935_v14 = vpop.eup %1934  ;;  %v797_v15 = vadd.f32 1e-05, %v781_v33  ;;  %v796_v17 = vadd.f32 1e-05, %v780_v4  ;;  %v2488_v25 = vadd.f32 %v2484_v2, %v839_v11  ;;  %v821_v10 = vmul.f32 %v1933_v13, %v2348_v12 }
 0x22d   : > { %v764_v26 = vpop.xlane.xlu0 %763  ;;  %v762_v35 = vpop.xlane.xlu1 %761  ;;  %v820_v27 = vmul.f32 %v1935_v14, %v2352_v16 }
 0x22e   : > { %1948 = vrsqrt.f32 %v797_v15  ;;  %v783_v28 = vmul.f32 0.0078125, %v764_v26  ;;  %v782_v31 = vmul.f32 0.0078125, %v762_v35  ;;  %v1640_v32 = vmul.f32 -1.442695, %v2488_v25 }
 0x22f   : > { %v1937_v34 = vpop.eup %1936  ;;  %1950 = vrsqrt.f32 %v796_v17  ;;  %v840_v36 = vmul.f32 %v2480_v60, %v820_v27  ;;  %v841_v37 = vmul.f32 %v2480_v60, %v821_v10 }
 0x230   : > { %v1939_v38 = vpop.eup %1938  ;;  %v799_v41 = vadd.f32 1e-05, %v783_v28  ;;  %v798_v42 = vadd.f32 1e-05, %v782_v31  ;;  %1952 = vpow2.f32 %v1640_v32  ;;  %v823_v12 = vmul.f32 %v1937_v34, %v2360_v22 }
 0x231   : > { %v768_v43 = vpop.xlane.xlu0 %767  ;;  %v766_v44 = vpop.xlane.xlu1 %765  ;;  %v2497_v16 = vadd.f32 %v2484_v2, %v840_v36  ;;  %v822_v45 = vmul.f32 %v1939_v38, %v2354_v18  ;;  %v2501_v46 = vadd.f32 %v2484_v2, %v841_v37 }
 0x232   : > { %1954 = vrsqrt.f32 %v799_v41  ;;  %v785_v49 = vmul.f32 0.0078125, %v768_v43  ;;  %v784_v50 = vmul.f32 0.0078125, %v766_v44  ;;  %v843_v51 = vmul.f32 %v2480_v60, %v823_v12 }
 0x233   : > { %v1941_v52 = vpop.eup %1940  ;;  %1956 = vrsqrt.f32 %v798_v42  ;;  %v1641_v53 = vmul.f32 -1.442695, %v2497_v16  ;;  %v842_v22 = vmul.f32 %v2480_v60, %v822_v45  ;;  %v1642_v54 = vmul.f32 -1.442695, %v2501_v46 }
 0x234   : > { %v1943_v57 = vpop.eup %1942  ;;  %v801_v58 = vadd.f32 1e-05, %v785_v49  ;;  %v800_v59 = vadd.f32 1e-05, %v784_v50  ;;  %v2508_v18 = vadd.f32 %v2484_v2, %v843_v51  ;;  %v825_v61 = vmul.f32 %v1941_v52, %v2366_v29 }
 0x235   : > { %v770_v0 = vpop.xlane.xlu1 %769  ;;  %1958 = vpow2.f32 %v1641_v53  ;;  %v2512_v63 = vadd.f32 %v2484_v2, %v842_v22  ;;  %v824_v5 = vmul.f32 %v1943_v57, %v2368_v30 }
 0x236   : > { %1960 = vrsqrt.f32 %v801_v58  ;;  %v786_v6 = vmul.f32 0.0078125, %v770_v0  ;;  %v845_v7 = vmul.f32 %v2480_v60, %v825_v61  ;;  %v1644_v4 = vmul.f32 -1.442695, %v2508_v18 }
 0x237   : > { %v1945_v3 = vpop.eup %1944  ;;  %1962 = vrsqrt.f32 %v800_v59  ;;  %v1643_v9 = vmul.f32 -1.442695, %v2512_v63  ;;  %v844_v33 = vmul.f32 %v2480_v60, %v824_v5 }
 0x238   : > { %v1947_v29 = vpop.eup %1946  ;;  %v802_v11 = vadd.f32 1e-05, %v786_v6  ;;  %1964 = vpow2.f32 %v1642_v54  ;;  %v2520_v13 = vadd.f32 %v2484_v2, %v845_v7  ;;  %v827_v30 = vmul.f32 %v1945_v3, %v2376_v40 }
 0x239   : > { %1966 = vpow2.f32 %v1643_v9  ;;  %v2524_v14 = vadd.f32 %v2484_v2, %v844_v33  ;;  %v826_v15 = vmul.f32 %v1947_v29, %v2374_v39 }
 0x23a   : > { %1968 = vrsqrt.f32 %v802_v11  ;;  %v1646_v17 = vmul.f32 -1.442695, %v2520_v13  ;;  %v847_v10 = vmul.f32 %v2480_v60, %v827_v30 }
 0x23b   : > { %v1949_v26 = vpop.eup %1948  ;;  %1970 = vpow2.f32 %v1644_v4  ;;  %v1645_v35 = vmul.f32 -1.442695, %v2524_v14  ;;  %v846_v27 = vmul.f32 %v2480_v60, %v826_v15 }
 0x23c   : > { %v1951_v28 = vpop.eup %1950  ;;  %1972 = vpow2.f32 %v1646_v17  ;;  %v2532_v40 = vadd.f32 %v2484_v2, %v847_v10  ;;  %v829_v31 = vmul.f32 %v1949_v26, %v2383_v47 }
 0x23d   : > { %v1953_v32 = vpop.eup %1952  ;;  %1974 = vpow2.f32 %v1645_v35  ;;  %v2536_v39 = vadd.f32 %v2484_v2, %v846_v27  ;;  %v828_v34 = vmul.f32 %v1951_v28, %v2386_v48 }
 0x23e   : > { %v1648_v36 = vmul.f32 -1.442695, %v2532_v40  ;;  %v849_v37 = vmul.f32 %v2480_v60, %v829_v31  ;;  %v923_v41 = vadd.f32 1.0, %v1953_v32 }
 0x23f   : > { %v1955_v38 = vpop.eup %1954  ;;  %v1647_v42 = vmul.f32 -1.442695, %v2536_v39  ;;  %v848_v12 = vmul.f32 %v2480_v60, %v828_v34 }
 0x240   : > { %v1957_v43 = vpop.eup %1956  ;;  %v2544_v47 = vadd.f32 %v2484_v2, %v849_v37  ;;  %v831_v44 = vmul.f32 %v1955_v38, %v2396_v56 }
 0x241   : > { %1976 = vpow2.f32 %v1647_v42  ;;  %v2548_v45 = vadd.f32 %v2484_v2, %v848_v12  ;;  %v830_v48 = vmul.f32 %v1957_v43, %v2393_v55 }
 0x242   : > { %v1959_v49 = vpop.eup %1958  ;;  %1978 = vpow2.f32 %v1648_v36  ;;  %v1650_v50 = vmul.f32 -1.442695, %v2544_v47  ;;  %v851_v51 = vmul.f32 %v2480_v60, %v831_v44 }
 0x243   : > { %v1961_v52 = vpop.eup %1960  ;;  %v924_v53 = vadd.f32 1.0, %v1959_v49  ;;  %1980 = vrcp.f32 %v923_v41  ;;  %v1649_v22 = vmul.f32 -1.442695, %v2548_v45  ;;  %v850_v54 = vmul.f32 %v2480_v60, %v830_v48 }
 0x244   : > { %v1963_v56 = vpop.eup %1962  ;;  %1982 = vpow2.f32 %v1650_v50  ;;  %v833_v57 = vmul.f32 %v1961_v52, %v2403_v1  ;;  %v2561_v5 = vadd.f32 %v2484_v2, %v851_v51 }
 0x245   : > { %v1965_v58 = vpop.eup %1964  ;;  %1984 = vrcp.f32 %v924_v53  ;;  %v2557_v55 = vadd.f32 %v2484_v2, %v850_v54  ;;  %v832_v59 = vmul.f32 %v1963_v56, %v2406_v62 }
 0x246   : > { %v1967_v61 = vpop.eup %1966  ;;  %v925_v0 = vadd.f32 1.0, %v1965_v58  ;;  %1986 = vpow2.f32 %v1649_v22  ;;  %v853_v6 = vmul.f32 %v2480_v60, %v833_v57  ;;  %v1652_v10 = vmul.f32 -1.442695, %v2561_v5 }
 0x247   : > { %v1969_v7 = vpop.eup %1968  ;;  %v926_v3 = vadd.f32 1.0, %v1967_v61  ;;  %v1651_v9 = vmul.f32 -1.442695, %v2557_v55  ;;  %v852_v1 = vmul.f32 %v2480_v60, %v832_v59 }
 0x248   : > { %v1971_v33 = vpop.eup %1970  ;;  %1988 = vrcp.f32 %v925_v0  ;;  %v834_v4 = vmul.f32 %v1969_v7, %v2413_v8  ;;  %v2568_v62 = vadd.f32 %v2484_v2, %v853_v6 }
 0x249   : > { %v1973_v29 = vpop.eup %1972  ;;  %1990 = vrcp.f32 %v926_v3  ;;  %v927_v11 = vadd.f32 1.0, %v1971_v33  ;;  %v2571_v30 = vadd.f32 %v2484_v2, %v852_v1 }
 0x24a   : > { %v1975_v15 = vpop.eup %1974  ;;  %v929_v17 = vadd.f32 1.0, %v1973_v29  ;;  %1992 = vpow2.f32 %v1651_v9  ;;  %v854_v26 = vmul.f32 %v2480_v60, %v834_v4  ;;  %v1654_v28 = vmul.f32 -1.442695, %v2568_v62 }
 0x24b   : > { %v928_v35 = vadd.f32 1.0, %v1975_v15  ;;  %1994 = vrcp.f32 %v927_v11  ;;  %v1653_v8 = vmul.f32 -1.442695, %v2571_v30 }
 0x24c   : > { %1996 = vrcp.f32 %v929_v17  ;;  %v2577_v27 = vadd.f32 %v2484_v2, %v854_v26 }
 0x24d   : > { %1998 = vrcp.f32 %v928_v35 }
 0x24e   : > { %v1977_v31 = vpop.eup %1976  ;;  %2000 = vpow2.f32 %v1652_v10  ;;  %v1655_v36 = vmul.f32 -1.442695, %v2577_v27 }
 0x24f   : > { %v1979_v32 = vpop.eup %1978  ;;  %v930_v34 = vadd.f32 1.0, %v1977_v31  ;;  %2002 = vpow2.f32 %v1653_v8  ;;  %v1927_v31 = vld [vmem:[%s2843_s5 + $0x10] sm:$0xff]  }
 0x250   : > { %v1981_v37 = vpop.eup %1980  ;;  %v931_v60 = vadd.f32 1.0, %v1979_v32  ;;  %2004 = vpow2.f32 %v1654_v28  ;;  %1806 = vmatprep.subr.bf16.mxu0 %v1927_v31 }
 0x251   : > { %v1983_v38 = vpop.eup %1982  ;;  %2006 = vrcp.f32 %v930_v34  ;;  %v971_v2 = vmul.f32 %v1981_v37, %v2488_v25  ;;  %1807 = vmatpush3.bf16.msra.mxu0 %v1927_v31 }
 0x252   : > { %v1985_v41 = vpop.eup %1984  ;;  %2008 = vpow2.f32 %v1655_v36  ;;  %v933_v44 = vadd.f32 1.0, %v1983_v38 }
 0x253   : > { %v1987_v42 = vpop.eup %1986  ;;  %v972_v12 = vmul.f32 %v1985_v41, %v2497_v16  ;;  %2010 = vrcp.f32 %v931_v60 }
 0x254   : > { %v932_v43 = vadd.f32 1.0, %v1987_v42 }
 0x255   : > { %v1989_v48 = vpop.eup %1988  ;;  %v987_v49 = vpack.c.bf16 %v972_v12, %v971_v2 }
 0x256   : > { %v1991_v50 = vpop.eup %1990  ;;  %2012 = vrcp.f32 %v932_v43  ;;  %v973_v52 = vmul.f32 %v1989_v48, %v2501_v46 }
 0x257   : > { %v1993_v51 = vpop.eup %1992  ;;  %1780 = vmatprep.mubr.bf16.mxu1 %v987_v49  ;;  %v974_v53 = vmul.f32 %v1991_v50, %v2512_v63  ;;  %2014 = vrcp.f32 %v933_v44 }
 0x258   : > { %v1995_v22 = vpop.eup %1994  ;;  %v934_v54 = vadd.f32 1.0, %v1993_v51 }
 0x259   : > { %v1997_v25 = vpop.eup %1996  ;;  %v988_v56 = vpack.c.bf16 %v974_v53, %v973_v52  ;;  %v975_v58 = vmul.f32 %v1995_v22, %v2508_v18 }
 0x25a   : > { %v1999_v16 = vpop.eup %1998  ;;  %2016 = vrcp.f32 %v934_v54  ;;  %v977_v9 = vmul.f32 %v1997_v25, %v2520_v13 }
 0x25b   : > { %v2001_v57 = vpop.eup %2000  ;;  %1781 = vmatmul.mubr.bf16.vlgmr.msra.gmra.mxu1 %v988_v56  ;;  %v976_v59 = vmul.f32 %v1999_v16, %v2524_v14 }
 0x25c   : > { %v2003_v61 = vpop.eup %2002  ;;  %v935_v0 = vadd.f32 1.0, %v2001_v57  ;;  %1836 = vmatpush3.bf16.msra.mxu1 %v2444_v19 }
 0x25d   : > { %v2005_v46 = vpop.eup %2004  ;;  %v989_v6 = vpack.c.bf16 %v976_v59, %v975_v58  ;;  %v936_v63 = vadd.f32 1.0, %v2003_v61  ;;  %1829 = vmatprep.subr.bf16.mxu1 %v2449_v20 }
 0x25e   : > { %v2007_v7 = vpop.eup %2006  ;;  %2018 = vrcp.f32 %v935_v0  ;;  %v937_v3 = vadd.f32 1.0, %v2005_v46 }
 0x25f   : > { %1784 = vmatprep.mubr.bf16.mxu1 %v989_v6  ;;  %v978_v1 = vmul.f32 %v2007_v7, %v2536_v39  ;;  %2020 = vrcp.f32 %v936_v63  ;;  %v2009_v18 = vpop.eup %2008 }
 0x260   : > { %1837 = vmatpush3.bf16.msra.mxu1 %v2449_v20  ;;  %v2011_v14 = vpop.eup %2010  ;;  %v938_v19 = vadd.f32 1.0, %v2009_v18  ;;  %2022 = vrcp.f32 %v937_v3 }
 0x261   : > { %v990_v33 = vpack.c.bf16 %v978_v1, %v977_v9  ;;  %1830 = vmatprep.subr.bf16.mxu1 %v2458_v21  ;;  %v979_v29 = vmul.f32 %v2011_v14, %v2532_v40 }
 0x262   : > { %2024 = vrcp.f32 %v938_v19  ;;  %v1665_v19 = vld [vmem:[%s2844_s6] ss:$0 sm:$0xff] }
 0x263   : > { %v2013_v4 = vpop.eup %2012  ;;  %1785 = vmatmul.mubr.bf16.gmra.mxu1 %v990_v33 }
 0x264   : > { %v980_v11 = vmul.f32 %v2013_v4, %v2548_v45  ;;  %1838 = vmatpush3.bf16.msra.mxu1 %v2458_v21  ;;  %v2015_v13 = vpop.eup %2014 }
 0x265   : > { %1831 = vmatprep.subr.bf16.mxu1 %v2465_v23  ;;  %v981_v15 = vmul.f32 %v2015_v13, %v2544_v47 }
 0x266   : > { %v991_v39 = vpack.c.bf16 %v980_v11, %v979_v29 }
 0x267   : > { %v2017_v20 = vpop.eup %2016 }
 0x268   : > { %1788 = vmatprep.mubr.bf16.mxu1 %v991_v39  ;;  %v982_v17 = vmul.f32 %v2017_v20, %v2557_v55  ;;  %1839 = vmatpush3.bf16.msra.mxu1 %v2465_v23 }
 0x269   : > { %1832 = vmatprep.subr.bf16.mxu1 %v2472_v24 }
 0x26a   : > { %v992_v10 = vpack.c.bf16 %v982_v17, %v981_v15 }
 0x26b   : > { %v2019_v40 = vpop.eup %2018 }
 0x26c   : > { %v2021_v26 = vpop.eup %2020  ;;  %1789 = vmatmul.mubr.bf16.gmra.mxu1 %v992_v10  ;;  %v983_v21 = vmul.f32 %v2019_v40, %v2561_v5  ;;  %v1929_v5 = vld [vmem:[%s2843_s5] sm:$0xff]  }
 0x26d   : > { %v984_v45 = vmul.f32 %v2021_v26, %v2571_v30  ;;  %1840 = vmatpush3.bf16.msra.mxu1 %v2472_v24  ;;  %v2023_v35 = vpop.eup %2022  ;;  %v1928_v24 = vld [vmem:[%s2843_s5 + $0x8] sm:$0xff]  }
 0x26e   : > { %v985_v47 = vmul.f32 %v2023_v35, %v2568_v62  ;;  %1833 = vmatprep.subr.bf16.mxu1 %v1927_v31  ;;  %1808 = vmatprep.subr.bf16.mxu0 %v1928_v24  ;;  %v1656_v62 = vld [vmem:[%s2842_s4] ss:$0 sm:$0xff] }
 0x26f   : > { %v993_v8 = vpack.c.bf16 %v984_v45, %v983_v21  ;;  %v2025_v28 = vpop.eup %2024  ;;  %1809 = vmatpush3.bf16.msra.mxu0 %v1928_v24 }
 0x270   : > { %v986_v23 = vmul.f32 %v2025_v28, %v2577_v27  ;;  %1810 = vmatprep.subr.bf16.mxu0 %v1929_v5 }
 0x271   : > { %1792 = vmatprep.mubr.bf16.mxu1 %v993_v8  ;;  %1841 = vmatpush3.bf16.msra.mxu1 %v1927_v31 }
 0x272   : > { %v994_v55 = vpack.c.bf16 %v986_v23, %v985_v47  ;;  %1834 = vmatprep.subr.bf16.mxu1 %v1928_v24 }
 0x273   : > { %1811 = vmatpush3.bf16.msra.mxu0 %v1929_v5 }
 0x274   : > { %1793 = vmatmul.mubr.bf16.gmra.mxu1 %v994_v55 }
 0x275   : > { %1842 = vmatpush3.bf16.msra.mxu1 %v1928_v24 }
 0x276   : > { %1835 = vmatprep.subr.bf16.mxu1 %v1929_v5 }
 0x279   : > { %1843 = vmatpush3.bf16.msra.mxu1 %v1929_v5 }
 0x31b   : > { %v1782_v30 = vpop.f32.mrf.mxu1 }
 0x31c   : > { %v1109_v27 = vadd.f32 %v1782_v30, %v1656_v62 }
 0x31d   : > { %v1100_v32 = vpop.f32.mrf.mxu1 }
 0x31e   : > { %1165 = vst [vmem:[%s2624_s14 + $0x10] sm:$0xff] %v1109_v27  ;;  %v1101_v34 = vadd.f32 %v1656_v62, %v1100_v32 }
 0x31f   : > { %v1783_v36 = vpop.f32.mrf.mxu1 }
 0x320   : > { %1163 = vst [vmem:[%s2624_s14] sm:$0xff] %v1101_v34  ;;  %v1112_v37 = vadd.f32 %v1783_v36, %v1656_v62 }
 0x321   : > { %v1103_v60 = vpop.f32.mrf.mxu1 }
 0x322   : > { %1166 = vst [vmem:[%s2624_s14 + $0x18] sm:$0xff] %v1112_v37  ;;  %v1104_v38 = vadd.f32 %v1656_v62, %v1103_v60  ;;  %v1180_v12 = vpack.c.bf16 %v1112_v37, %v1109_v27 }
 0x323   : > { %v1786_v41 = vpop.f32.mrf.mxu1 }
 0x324   : > { %1164 = vst [vmem:[%s2624_s14 + $0x8] sm:$0xff] %v1104_v38  ;;  %v1179_v42 = vpack.c.bf16 %v1104_v38, %v1101_v34  ;;  %v1125_v2 = vadd.f32 %v1786_v41, %v1656_v62 }
 0x325   : > { %v1116_v43 = vpop.f32.mrf.mxu1 }
 0x326   : > { %1169 = vst [vmem:[%s2624_s14 + $0x30] sm:$0xff] %v1125_v2  ;;  %v1117_v44 = vadd.f32 %v1656_v62, %v1116_v43  ;;  %1812 = vmatprep.mubr.bf16.mxu0 %v1179_v42 }
 0x327   : > { %v1787_v48 = vpop.f32.mrf.mxu1  ;;  %1813 = vmatmul.mubr.bf16.vlgmr.msra.gmra.mxu0 %v1180_v12 }
 0x328   : > { %1167 = vst [vmem:[%s2624_s14 + $0x20] sm:$0xff] %v1117_v44  ;;  %v1128_v49 = vadd.f32 %v1787_v48, %v1656_v62 }
 0x329   : > { %v1119_v50 = vpop.f32.mrf.mxu1 }
 0x32a   : > { %1170 = vst [vmem:[%s2624_s14 + $0x38] sm:$0xff] %v1128_v49  ;;  %v1120_v51 = vadd.f32 %v1656_v62, %v1119_v50  ;;  %v1182_v22 = vpack.c.bf16 %v1128_v49, %v1125_v2 }
 0x32c   : > { %1168 = vst [vmem:[%s2624_s14 + $0x28] sm:$0xff] %v1120_v51  ;;  %v1181_v52 = vpack.c.bf16 %v1120_v51, %v1117_v44  ;;  %v1790_v53 = vpop.f32.mrf.mxu1 }
 0x32d   : > { %v1141_v54 = vadd.f32 %v1790_v53, %v1656_v62 }
 0x32e   : > { %v1132_v25 = vpop.f32.mrf.mxu1  ;;  %1816 = vmatprep.mubr.bf16.mxu0 %v1181_v52 }
 0x32f   : > { %1173 = vst [vmem:[%s2624_s14 + $0x50] sm:$0xff] %v1141_v54  ;;  %v1133_v56 = vadd.f32 %v1656_v62, %v1132_v25  ;;  %1817 = vmatmul.mubr.bf16.gmra.mxu0 %v1182_v22 }
 0x330   : > { %v1791_v16 = vpop.f32.mrf.mxu1 }
 0x331   : > { %1171 = vst [vmem:[%s2624_s14 + $0x40] sm:$0xff] %v1133_v56  ;;  %v1144_v57 = vadd.f32 %v1791_v16, %v1656_v62 }
 0x332   : > { %v1135_v58 = vpop.f32.mrf.mxu1 }
 0x333   : > { %1174 = vst [vmem:[%s2624_s14 + $0x58] sm:$0xff] %v1144_v57  ;;  %v1136_v59 = vadd.f32 %v1656_v62, %v1135_v58  ;;  %v1184_v46 = vpack.c.bf16 %v1144_v57, %v1141_v54 }
 0x334   : > { %v1794_v0 = vpop.f32.mrf.mxu1 }
 0x335   : > { %1172 = vst [vmem:[%s2624_s14 + $0x48] sm:$0xff] %v1136_v59  ;;  %v1183_v61 = vpack.c.bf16 %v1136_v59, %v1133_v56  ;;  %v1157_v6 = vadd.f32 %v1794_v0, %v1656_v62 }
 0x336   : > { %v1148_v63 = vpop.f32.mrf.mxu1 }
 0x337   : > { %1820 = vmatprep.mubr.bf16.mxu1 %v1183_v61  ;;  %1177 = vst [vmem:[%s2624_s14 + $0x70] sm:$0xff] %v1157_v6  ;;  %v1149_v7 = vadd.f32 %v1656_v62, %v1148_v63 }
 0x338   : > { %1821 = vmatmul.mubr.bf16.vlgmr.msra.gmra.mxu1 %v1184_v46  ;;  %v1795_v3 = vpop.f32.mrf.mxu1 }
 0x339   : > { %1175 = vst [vmem:[%s2624_s14 + $0x60] sm:$0xff] %v1149_v7  ;;  %v1160_v9 = vadd.f32 %v1795_v3, %v1656_v62 }
 0x33a   : > { %v1151_v1 = vpop.f32.mrf.mxu1 }
 0x33b   : > { %1178 = vst [vmem:[%s2624_s14 + $0x78] sm:$0xff] %v1160_v9  ;;  %v1152_v18 = vadd.f32 %v1656_v62, %v1151_v1  ;;  %v1186_v33 = vpack.c.bf16 %v1160_v9, %v1157_v6 }
 0x33d   : > { %1176 = vst [vmem:[%s2624_s14 + $0x68] sm:$0xff] %v1152_v18  ;;  %v1185_v14 = vpack.c.bf16 %v1152_v18, %v1149_v7  ;;  %s2064_s14 = scalar_lea.vmem %s2063_s20, 4096 }
 0x33e   : > { %p2066_p2 = scmp.lt.s32.totalorder %s2064_s14, %s2058_s16 }
 0x33f   : > { %1824 = vmatprep.mubr.bf16.mxu1 %v1185_v14 }
 0x340   : > { %1825 = vmatmul.mubr.bf16.gmra.mxu1 %v1186_v33  ;;  %p2067_p3 = por %p2066_p2, %p2065_p1 }
 0x342   : > { %p2068_p5 = pnand %p2067_p3, %p2061_p0 }
 0x3e7   : > { %v1814_v4 = vpop.f32.mrf.mxu0 }
 0x3e8   : > { %v2645_v29 = vadd.f32 %v1814_v4, %v1665_v19 }
 0x3e9   : > { %v1292_v11 = vpop.f32.mrf.mxu0 }
 0x3ea   : > { %v2647_v13 = vadd.f32 %v1665_v19, %v1292_v11  ;;  %v1357_v39 = vmul.f32 %v2645_v29, %v2645_v29 }
 0x3eb   : > { %v1815_v20 = vpop.f32.mrf.mxu0 }
 0x3ec   : > { %v2651_v15 = vadd.f32 %v1815_v20, %v1665_v19  ;;  %1375 = vadd.xlane.f32.xlu0 %v1357_v39  ;;  %v1355_v26 = vmul.f32 %v2647_v13, %v2647_v13 }
 0x3ed   : > { %v1295_v17 = vpop.f32.mrf.mxu0 }
 0x3ee   : > { %v2653_v10 = vadd.f32 %v1665_v19, %v1295_v17  ;;  %v1358_v40 = vmul.f32 %v2651_v15, %v2651_v15 }
 0x3ef   : > { %v1818_v21 = vpop.f32.mrf.mxu0 }
 0x3f0   : > { %v2659_v45 = vadd.f32 %v1818_v21, %v1665_v19  ;;  %1377 = vadd.xlane.f32.xlu1 %v1358_v40  ;;  %1371 = vadd.xlane.f32.xlu0 %v1355_v26  ;;  %v1356_v28 = vmul.f32 %v2653_v10, %v2653_v10 }
 0x3f1   : > { %v1308_v35 = vpop.f32.mrf.mxu0 }
 0x3f2   : > { %v2661_v8 = vadd.f32 %v1665_v19, %v1308_v35  ;;  %v1361_v47 = vmul.f32 %v2659_v45, %v2659_v45 }
 0x3f3   : > { %v1819_v23 = vpop.f32.mrf.mxu0 }
 0x3f4   : > { %v2667_v55 = vadd.f32 %v1819_v23, %v1665_v19  ;;  %1373 = vadd.xlane.f32.xlu1 %v1356_v28  ;;  %1383 = vadd.xlane.f32.xlu0 %v1361_v47  ;;  %v1359_v62 = vmul.f32 %v2661_v8, %v2661_v8 }
 0x3f5   : > { %v1311_v31 = vpop.f32.mrf.mxu0 }
 0x3f6   : > { %v2669_v24 = vadd.f32 %v1665_v19, %v1311_v31  ;;  %v1362_v5 = vmul.f32 %v2667_v55, %v2667_v55 }
 0x3f8   : > { %v1822_v30 = vpop.f32.mrf.mxu1  ;;  %1385 = vadd.xlane.f32.xlu1 %v1362_v5  ;;  %1379 = vadd.xlane.f32.xlu0 %v1359_v62  ;;  %v1360_v34 = vmul.f32 %v2669_v24, %v2669_v24 }
 0x3f9   : > { %v2675_v27 = vadd.f32 %v1822_v30, %v1665_v19 }
 0x3fa   : > { %v1324_v32 = vpop.f32.mrf.mxu1 }
 0x3fb   : > { %v2679_v36 = vadd.f32 %v1665_v19, %v1324_v32  ;;  %v1365_v37 = vmul.f32 %v2675_v27, %v2675_v27 }
 0x3fc   : > { %v1823_v60 = vpop.f32.mrf.mxu1  ;;  %1381 = vadd.xlane.f32.xlu1 %v1360_v34 }
 0x3fd   : > { %v2683_v38 = vadd.f32 %v1823_v60, %v1665_v19  ;;  %1391 = vadd.xlane.f32.xlu0 %v1365_v37  ;;  %v1363_v12 = vmul.f32 %v2679_v36, %v2679_v36 }
 0x3fe   : > { %v1327_v41 = vpop.f32.mrf.mxu1 }
 0x3ff   : > { %v2685_v42 = vadd.f32 %v1665_v19, %v1327_v41  ;;  %v1366_v2 = vmul.f32 %v2683_v38, %v2683_v38 }
 0x400   : > { %v1826_v43 = vpop.f32.mrf.mxu1 }
 0x401   : > { %1393 = vadd.xlane.f32.xlu1 %v1366_v2  ;;  %1387 = vadd.xlane.f32.xlu0 %v1363_v12  ;;  %v1364_v48 = vmul.f32 %v2685_v42, %v2685_v42  ;;  %v2695_v51 = vadd.f32 %v1826_v43, %v1665_v19 }
 0x402   : > { %v1340_v44 = vpop.f32.mrf.mxu1 }
 0x403   : > { %v2693_v49 = vadd.f32 %v1665_v19, %v1340_v44  ;;  %v1369_v56 = vmul.f32 %v2695_v51, %v2695_v51 }
 0x404   : > { %v1827_v50 = vpop.f32.mrf.mxu1 }
 0x405   : > { %1389 = vadd.xlane.f32.xlu1 %v1364_v48  ;;  %v1367_v52 = vmul.f32 %v2693_v49, %v2693_v49  ;;  %v2701_v54 = vadd.f32 %v1827_v50, %v1665_v19 }
 0x406   : > { %v1343_v53 = vpop.f32.mrf.mxu1 }
 0x407   : > { %v2699_v22 = vadd.f32 %v1665_v19, %v1343_v53  ;;  %1395 = vadd.xlane.f32.xlu0 %v1367_v52  ;;  %v1370_v16 = vmul.f32 %v2701_v54, %v2701_v54 }
 0x409   : > { %v1368_v25 = vmul.f32 %v2699_v22, %v2699_v22 }
 0x40b   : > { %1397 = vadd.xlane.f32.xlu1 %v1368_v25  ;;  %1399 = vadd.xlane.f32.xlu0 %v1369_v56 }
 0x40f   : > { %1401 = vadd.xlane.f32.xlu1 %v1370_v16 }
 0x410   : > { %2071 = shalt.err (!%p2068_p5)
}
 0x411   : > { %s2072_s23 = scalar_lea.hbm %s2716_s25, 2048  ;;  %s2076_s19 = scalar_lea.hbm %s2845_s7, 4096 }
 0x412   : > { %p2073_p6 = scmp.ne.s32.totalorder %s2716_s25, %s2072_s23  ;;  %p2077_p10 = scmp.lt.s32.totalorder %s2716_s25, %s2845_s7 }
 0x413   : > { %p2078_p11 = scmp.lt.s32.totalorder %s2076_s19, %s2072_s23 }
 0x414   : > { %p2074_p7 = pnand %p2073_p6, %p2255_p4 }
 0x415   : > { %p2079_p12 = por %p2078_p11, %p2077_p10 }
 0x416   : > { %p2075_p9 = pneg %p2074_p7 }
 0x418   : > { %p2080_p13 = pnand %p2079_p12, %p2075_p9 }
 0x41a   : > { %2083 = shalt.err (!%p2080_p13)
}
 0x41b   : > { %s2849_s16 = smov 128   ;;  %s2168_s20 = smov 8  }
 0x41c   : > { %s2852_s21 = scalar_lea.sflag [#allocation4], %s2616_s26  ;;  %s2853_s11 = sshll.u32 %s2616_s26, 7 }
 0x41d   : > { %1844 = dma.vmem_to_hbm [thread:$0]  (%p2255_p4), %s2718_s22, 2048, %s2716_s25, %s2852_s21, %s2849_s16, %s2849_s16, %s2168_s20  }
 0x41e   : > { %s2749_s22 = scalar_lea.vmem [#allocation5], %s2853_s11  ;;  %s2854_s12 = sshll.u32 %s2156_s30, 11 }
 0x41f   : > { %s1502_s25 = sshll.u32 %s2749_s22, 4  ;;  %s2787_s24 = scalar_lea.hbm %s2846_s8, %s2854_s12  ;;  %s2789_s25 = int_to_ptr.vmem [resolvable:$true] %s1502_s25 }
 0x420   : > { %s1473_s19 = scalar_lea.sflag [#allocation6], %s2616_s26  ;;  %s2084_s21 = scalar_lea.vmem %s2789_s25, 2048 }
 0x421   : > { %p2085_p0 = scmp.ne.s32.totalorder %s2789_s25, %s2084_s21  ;;  %s2169_s11 = smov [#allocation5]  }
 0x422   : > { %s2088_s16 = sshll.u32 %s2169_s11, 4  ;;  %s2089_s16 = int_to_ptr.vmem [resolvable:$false] %s2088_s16 }
 0x423   : > { %p2086_p1 = pnand %p2085_p0, %p2255_p4  ;;  %s2090_s30 = scalar_lea.vmem %s2089_s16, 4096 }
 0x424   : > { %p2091_p3 = scmp.lt.s32.totalorder %s2789_s25, %s2089_s16  ;;  %p2092_p5 = scmp.lt.s32.totalorder %s2090_s30, %s2084_s21 }
 0x425   : > { %p2087_p2 = pneg %p2086_p1 }
 0x426   : > { %p2093_p6 = por %p2092_p5, %p2091_p3 }
 0x428   : > { %p2094_p7 = pnand %p2093_p6, %p2087_p2 }
 0x475   : > { %v1376_v57 = vpop.xlane.xlu0 %1375 }
 0x476   : > { %v1405_v58 = vmax.f32 %v1376_v57, 1e-24 }
 0x478   : > { %2026 = vrsqrt.f32 %v1405_v58 }
 0x479   : > { %v1372_v59 = vpop.xlane.xlu0 %1371  ;;  %v1378_v61 = vpop.xlane.xlu1 %1377 }
 0x47a   : > { %v1403_v0 = vmax.f32 %v1372_v59, 1e-24  ;;  %v1406_v46 = vmax.f32 %v1378_v61, 1e-24 }
 0x47c   : > { %2028 = vrsqrt.f32 %v1403_v0 }
 0x47d   : > { %2030 = vrsqrt.f32 %v1406_v46  ;;  %v1384_v6 = vpop.xlane.xlu0 %1383  ;;  %v1374_v63 = vpop.xlane.xlu1 %1373 }
 0x47e   : > { %v1409_v7 = vmax.f32 %v1384_v6, 1e-24  ;;  %v1404_v3 = vmax.f32 %v1374_v63, 1e-24 }
 0x480   : > { %2032 = vrsqrt.f32 %v1409_v7 }
 0x481   : > { %2034 = vrsqrt.f32 %v1404_v3  ;;  %v1380_v9 = vpop.xlane.xlu0 %1379  ;;  %v1386_v1 = vpop.xlane.xlu1 %1385 }
 0x482   : > { %v1407_v18 = vmax.f32 %v1380_v9, 1e-24  ;;  %v1410_v14 = vmax.f32 %v1386_v1, 1e-24 }
 0x484   : > { %2036 = vrsqrt.f32 %v1407_v18 }
 0x485   : > { %v2027_v33 = vpop.eup %2026  ;;  %2038 = vrsqrt.f32 %v1410_v14  ;;  %v1382_v19 = vpop.xlane.xlu1 %1381 }
 0x486   : > { %v1437_v4 = vmul.f32 %v2027_v33, %v2645_v29  ;;  %v1392_v11 = vpop.xlane.xlu0 %1391  ;;  %v1408_v39 = vmax.f32 %v1382_v19, 1e-24 }
 0x487   : > { %v1413_v20 = vmax.f32 %v1392_v11, 1e-24 }
 0x488   : > { %1453 = vst [vmem:[%s2749_s22 + $0x10] sm:$0xff] %v1437_v4  ;;  %2040 = vrsqrt.f32 %v1408_v39 }
 0x489   : > { %v2029_v17 = vpop.eup %2028  ;;  %2042 = vrsqrt.f32 %v1413_v20 }
 0x48a   : > { %v2031_v40 = vpop.eup %2030  ;;  %v1435_v26 = vmul.f32 %v2029_v17, %v2647_v13  ;;  %v1388_v21 = vpop.xlane.xlu0 %1387 }
 0x48b   : > { %v1394_v35 = vpop.xlane.xlu1 %1393  ;;  %v1438_v29 = vmul.f32 %v2031_v40, %v2651_v15  ;;  %v1411_v28 = vmax.f32 %v1388_v21, 1e-24 }
 0x48c   : > { %v1414_v47 = vmax.f32 %v1394_v35, 1e-24  ;;  %1451 = vst [vmem:[%s2749_s22] sm:$0xff] %v1435_v26 }
 0x48d   : > { %v2033_v23 = vpop.eup %2032  ;;  %1454 = vst [vmem:[%s2749_s22 + $0x18] sm:$0xff] %v1438_v29  ;;  %2044 = vrsqrt.f32 %v1411_v28 }
 0x48e   : > { %v2035_v31 = vpop.eup %2034  ;;  %v1441_v5 = vmul.f32 %v2033_v23, %v2659_v45  ;;  %2046 = vrsqrt.f32 %v1414_v47 }
 0x48f   : > { %v1390_v62 = vpop.xlane.xlu1 %1389  ;;  %v1436_v13 = vmul.f32 %v2035_v31, %v2653_v10 }
 0x490   : > { %v1412_v30 = vmax.f32 %v1390_v62, 1e-24  ;;  %1457 = vst [vmem:[%s2749_s22 + $0x30] sm:$0xff] %v1441_v5  ;;  %v1396_v15 = vpop.xlane.xlu0 %1395 }
 0x491   : > { %v2037_v32 = vpop.eup %2036  ;;  %1452 = vst [vmem:[%s2749_s22 + $0x8] sm:$0xff] %v1436_v13  ;;  %v1415_v60 = vmax.f32 %v1396_v15, 1e-24 }
 0x492   : > { %2048 = vrsqrt.f32 %v1412_v30  ;;  %v2039_v34 = vpop.eup %2038  ;;  %v1439_v37 = vmul.f32 %v2037_v32, %v2661_v8 }
 0x493   : > { %v1442_v41 = vmul.f32 %v2039_v34, %v2667_v55  ;;  %2050 = vrsqrt.f32 %v1415_v60 }
 0x494   : > { %1455 = vst [vmem:[%s2749_s22 + $0x20] sm:$0xff] %v1439_v37  ;;  %v1400_v2 = vpop.xlane.xlu0 %1399  ;;  %v1398_v10 = vpop.xlane.xlu1 %1397 }
 0x495   : > { %v2041_v45 = vpop.eup %2040  ;;  %1458 = vst [vmem:[%s2749_s22 + $0x38] sm:$0xff] %v1442_v41  ;;  %v1417_v44 = vmax.f32 %v1400_v2, 1e-24  ;;  %v1416_v48 = vmax.f32 %v1398_v10, 1e-24 }
 0x496   : > { %v2043_v12 = vpop.eup %2042  ;;  %v1440_v43 = vmul.f32 %v2041_v45, %v2669_v24 }
 0x497   : > { %v1445_v50 = vmul.f32 %v2043_v12, %v2675_v27  ;;  %2052 = vrsqrt.f32 %v1417_v44 }
 0x498   : > { %1456 = vst [vmem:[%s2749_s22 + $0x28] sm:$0xff] %v1440_v43  ;;  %2054 = vrsqrt.f32 %v1416_v48  ;;  %v1402_v8 = vpop.xlane.xlu1 %1401 }
 0x499   : > { %1461 = vst [vmem:[%s2749_s22 + $0x50] sm:$0xff] %v1445_v50  ;;  %v1418_v52 = vmax.f32 %v1402_v8, 1e-24 }
 0x49a   : > { %v2045_v55 = vpop.eup %2044 }
 0x49b   : > { %v2047_v53 = vpop.eup %2046  ;;  %v1443_v25 = vmul.f32 %v2045_v55, %v2679_v36  ;;  %2056 = vrsqrt.f32 %v1418_v52 }
 0x49c   : > { %v1446_v24 = vmul.f32 %v2047_v53, %v2683_v38 }
 0x49d   : > { %1459 = vst [vmem:[%s2749_s22 + $0x40] sm:$0xff] %v1443_v25 }
 0x49e   : > { %1462 = vst [vmem:[%s2749_s22 + $0x58] sm:$0xff] %v1446_v24 }
 0x49f   : > { %v2049_v27 = vpop.eup %2048 }
 0x4a0   : > { %v1444_v56 = vmul.f32 %v2049_v27, %v2685_v42  ;;  %v2051_v16 = vpop.eup %2050 }
 0x4a1   : > { %v1447_v57 = vmul.f32 %v2051_v16, %v2693_v49 }
 0x4a2   : > { %1460 = vst [vmem:[%s2749_s22 + $0x48] sm:$0xff] %v1444_v56 }
 0x4a3   : > { %1463 = vst [vmem:[%s2749_s22 + $0x60] sm:$0xff] %v1447_v57 }
 0x4a4   : > { %v2053_v36 = vpop.eup %2052 }
 0x4a5   : > { %v2055_v58 = vpop.eup %2054  ;;  %v1449_v38 = vmul.f32 %v2053_v36, %v2695_v51 }
 0x4a6   : > { %v1448_v59 = vmul.f32 %v2055_v58, %v2699_v22 }
 0x4a7   : > { %1465 = vst [vmem:[%s2749_s22 + $0x70] sm:$0xff] %v1449_v38 }
 0x4a8   : > { %v2057_v61 = vpop.eup %2056  ;;  %1464 = vst [vmem:[%s2749_s22 + $0x68] sm:$0xff] %v1448_v59 }
 0x4a9   : > { %v1450_v42 = vmul.f32 %v2057_v61, %v2701_v54 }
 0x4ab   : > { %1466 = vst [vmem:[%s2749_s22 + $0x78] sm:$0xff] %v1450_v42 }
 0x4ac   : > { %2097 = shalt.err (!%p2094_p7)
}
 0x4ad   : > { %s2098_s22 = scalar_lea.hbm %s2787_s24, 2048  ;;  %s2102_s14 = scalar_lea.hbm %s2846_s8, 4096 }
 0x4ae   : > { %p2099_p9 = scmp.ne.s32.totalorder %s2787_s24, %s2098_s22  ;;  %p2103_p12 = scmp.lt.s32.totalorder %s2787_s24, %s2846_s8 }
 0x4af   : > { %p2104_p13 = scmp.lt.s32.totalorder %s2102_s14, %s2098_s22 }
 0x4b0   : > { %p2100_p10 = pnand %p2099_p9, %p2255_p4 }
 0x4b1   : > { %p2105_p0 = por %p2104_p13, %p2103_p12 }
 0x4b2   : > { %p2101_p11 = pneg %p2100_p10 }
 0x4b4   : > { %p2106_p1 = pnand %p2105_p0, %p2101_p11 }
 0x4b6   : > { %2109 = shalt.err (!%p2106_p1)
}
 0x4b7   : > { %s2855_s16 = smov 128  }
 0x4b8   : > { %1845 = dma.vmem_to_hbm [thread:$0]  (%p2255_p4), %s2789_s25, 2048, %s2787_s24, %s1473_s19, %s2855_s16, %s2855_s16, %s2168_s20  }
 0x4b9 PF: > { %p1855_p2 = scmp.ge.s32.totalorder %s2164_s10, 2  ;;  %s1517_s21 = sand.u32 1, %s2144_s27  }
 0x4ba   : > { %s1518_s30 = scalar_lea.sflag [#allocation4], %s1517_s21 }
 0x4bb   : > { %p1849_p3 = pnand %p1855_p2, %p2262_p8 }
 0x4bd   : > { %p1850_p5 = pneg %p1849_p3 }
 0x4bf   : > { %2135 = dma.done.wait (%p1850_p5), %s1518_s30, 2048  }
 0x4c0   : > { %2137 = vsyncadd (%p1850_p5), %s1518_s30, 4294965248  ;;  %s1527_s22 = scalar_lea.sflag [#allocation6], %s1517_s21 }
 0x4c1   : > { %2139 = dma.done.wait (%p1850_p5), %s1527_s22, 2048  }
 0x4c2   : > { %2141 = vsyncadd (%p1850_p5), %s1527_s22, 4294965248  ;;  %s25_s10 = sadd.s32 1, %s2164_s10   ;;  %s2856_s27 = smov %s2148_s28 }
 0x4c3   : > { %p22_p6 = scmp.ge.s32.totalorder %s25_s10, 4   ;;  %s2857_s28 = smov %s2152_s29 }
 0x4c4   : > { %s2858_s29 = smov %s2268_s18  ;;  %s2859_s30 = smov %s2160_s9 }
 0x4c5   : > { %s2860_s9 = smov %s2862_s13  ;;  %24 = sbr.rel (!%p22_p6) target bundleno = 6 (0x6), region = 111 }
 0x4ca   :  { %1532 = vsyncpa [#allocation4], 1 }
 0x4cb   :  { %1534 = vsyncpa [#allocation4 + $0x1], 1 }
 0x4cc   :  { %1535 = vsyncpa [#allocation6], 1 }
 0x4cd   :  { %1537 = vsyncpa [#allocation6 + $0x1], 1 }

</bundles_post_ra>
